<compile_context>
chip_gen: v5e
topology: v5e:2x2
jax: 0.10.0
libtpu: 0.0.40
codegen_flags: <defaults>
</compile_context>

<pallas_src>
import functools

import numpy as np

import jax
import jax.numpy as jnp
from jax.experimental import pallas as pl
from jax.experimental.pallas import tpu as pltpu

LEAKY_SLOPE = 0.2
BN_EPS = 1e-5


# ------------------------- Pallas kernel -------------------------

def _conv3x3s2_kernel(*refs, oh, ow, oc, prologue, pad_out, emit_stats):
    """Fused: [BN affine + LeakyReLU prologue] -> 3x3/stride-2 conv (implicit GEMM)
    -> [per-image BN statistics epilogue] -> zero-padded output store."""
    it = iter(refs)
    x_ref = next(it)                                   # (1, A, 2, WP*C) f32, A = OH+1
    w_ref = next(it)                                   # (3, WP*C, OW*OC) bf16
    if prologue:
        scale_ref = next(it)                           # (1, WP*C) f32
        shift_ref = next(it)                           # (1, WP*C) f32
        mask_ref = next(it)                            # (A, 2, WP*C) f32 (1 interior / 0 ring)
    y_ref = next(it)
    stats_ref = next(it) if emit_stats else None

    acc = jnp.zeros((oh, ow * oc), jnp.float32)
    # Padded-input row 2*i + kh lives at (pair a0 + i, parity r) of the
    # row-pair-split input:  kh=0 -> (i, 0), kh=1 -> (i, 1), kh=2 -> (i+1, 0).
    for kh, (a0, r) in enumerate(((0, 0), (0, 1), (1, 0))):
        lhs = x_ref[0, a0:a0 + oh, r, :]               # (OH, WP*C) f32
        if prologue:
            # Fused epilogue of the previous block: BatchNorm affine + LeakyReLU,
            # then re-zero the spatial zero-padding ring (affine would map 0 -> leaky(shift)).
            lhs = lhs * scale_ref[...] + shift_ref[...]
            lhs = jnp.where(lhs > 0, lhs, LEAKY_SLOPE * lhs)
            lhs = lhs * mask_ref[a0:a0 + oh, r, :]
        acc = acc + jnp.dot(lhs.astype(jnp.bfloat16), w_ref[kh],
                            preferred_element_type=jnp.float32)

    if emit_stats:
        # Per-image partial BatchNorm statistics; the tiny (OW, OC) -> OC
        # reduction and mean/var finalization are done outside in plain JAX.
        stats_ref[0, 0:1, :] = jnp.sum(acc, axis=0, keepdims=True)
        stats_ref[0, 1:2, :] = jnp.sum(acc * acc, axis=0, keepdims=True)

    if pad_out:
        # Emit the output already zero-padded for the next layer's conv.
        y_ref[...] = jnp.zeros_like(y_ref)
        y_ref[0, 1:oh + 1, oc:(ow + 1) * oc] = acc
    else:
        y_ref[0] = acc


def conv3x3s2(x, wb, c_in, scale=None, shift=None, pad_out=True, emit_stats=False):
    """x: (N, HP, WP*C) zero-padded NHWC activation with (W, C) flattened.
       wb: (3, WP*C, OW*OC) pre-expanded bf16 implicit-GEMM weight.
       Returns (N, OH+2, (OW+2)*OC) [padded] or (N, OH, OW*OC), plus optional
       (N, 2, OW*OC) per-image BN partial statistics."""
    n, hp, wpc = x.shape
    wp = wpc // c_in
    oh, ow = hp // 2 - 1, wp // 2 - 1
    oc = wb.shape[2] // ow
    a_dim = hp // 2
    prologue = scale is not None

    x4 = x.reshape(n, a_dim, 2, wpc)                   # free row-pair split

    kern = functools.partial(_conv3x3s2_kernel, oh=oh, ow=ow, oc=oc,
                             prologue=prologue, pad_out=pad_out,
                             emit_stats=emit_stats)

    in_specs = [pl.BlockSpec((1, a_dim, 2, wpc), lambda i: (i, 0, 0, 0)),
                pl.BlockSpec(wb.shape, lambda i: (0, 0, 0))]
    args = [x4, wb]
    if prologue:
        scale_t = jnp.tile(scale.astype(jnp.float32), wp).reshape(1, wpc)
        shift_t = jnp.tile(shift.astype(jnp.float32), wp).reshape(1, wpc)
        mask = (jnp.zeros((hp, wpc), jnp.float32)
                .at[1:hp - 1, c_in:wpc - c_in].set(1.0)
                .reshape(a_dim, 2, wpc))               # compile-time constant
        in_specs += [pl.BlockSpec((1, wpc), lambda i: (0, 0)),
                     pl.BlockSpec((1, wpc), lambda i: (0, 0)),
                     pl.BlockSpec((a_dim, 2, wpc), lambda i: (0, 0, 0))]
        args += [scale_t, shift_t, mask]

    if pad_out:
        y_shape = jax.ShapeDtypeStruct((n, oh + 2, (ow + 2) * oc), jnp.float32)
        y_spec = pl.BlockSpec((1, oh + 2, (ow + 2) * oc), lambda i: (i, 0, 0))
    else:
        y_shape = jax.ShapeDtypeStruct((n, oh, ow * oc), jnp.float32)
        y_spec = pl.BlockSpec((1, oh, ow * oc), lambda i: (i, 0, 0))

    if emit_stats:
        out_shape = (y_shape, jax.ShapeDtypeStruct((n, 2, ow * oc), jnp.float32))
        out_specs = (y_spec, pl.BlockSpec((1, 2, ow * oc), lambda i: (i, 0, 0)))
    else:
        out_shape, out_specs = y_shape, y_spec

    return pl.pallas_call(
        kern,
        grid=(n,),
        in_specs=in_specs,
        out_specs=out_specs,
        out_shape=out_shape,
        compiler_params=pltpu.CompilerParams(dimension_semantics=("parallel",)),
    )(*args)


# ------------------------- Parameter init / prep -------------------------

def init_params(key, color_channels, out_features):
    """Torch-layout parameters (OIHW conv weights, biases, BN gamma/beta)."""
    f = out_features
    shapes = {"w0": (f, color_channels, 3, 3),
              "w1": (2 * f, f, 3, 3),
              "w2": (4 * f, 2 * f, 3, 3),
              "w3": (8 * f, 4 * f, 3, 3),
              "w4": (1, 8 * f, 2, 2)}
    params = {}
    keys = iter(jax.random.split(key, 13))
    for name, shp in shapes.items():
        fan_in = shp[1] * shp[2] * shp[3]
        params[name] = jax.random.normal(next(keys), shp, jnp.float32) / jnp.sqrt(float(fan_in))
    params["b0"] = 0.1 * jax.random.normal(next(keys), (f,), jnp.float32)
    params["b4"] = 0.1 * jax.random.normal(next(keys), (1,), jnp.float32)
    for i, c in zip((1, 2, 3), (2 * f, 4 * f, 8 * f)):
        params[f"g{i}"] = 1.0 + 0.1 * jax.random.normal(next(keys), (c,), jnp.float32)
        params[f"be{i}"] = 0.1 * jax.random.normal(next(keys), (c,), jnp.float32)
    return params


def _build_conv_matrix(w_oihw, wp, ow):
    """(OC, IC, 3, 3) conv weight -> (3, WP*IC, OW*OC) implicit-GEMM matrix (bf16).
    Column-selection (stride 2, kw taps) is embedded so the kernel needs no
    strided/gather access at all; built once at prep time."""
    w = np.asarray(w_oihw, np.float32)
    oc, ic, nkh, nkw = w.shape
    out = np.zeros((nkh, wp * ic, ow * oc), np.float32)
    for kh in range(nkh):
        for kw in range(nkw):
            for j in range(ow):
                col = 2 * j + kw                       # padded input column tapped
                out[kh, col * ic:(col + 1) * ic, j * oc:(j + 1) * oc] = w[:, :, kh, kw].T
    return jnp.asarray(out, jnp.bfloat16)


def prep_params(params, image_size):
    """One-time weight transforms (hoisted out of the jitted forward)."""
    pp = {}
    s = image_size
    for i in range(4):
        pp[f"w{i}"] = _build_conv_matrix(params[f"w{i}"], s + 2, s // 2)
        s = s // 2
    assert s == 2, "final Conv2d(8F,1,2,2) path assumes a 32x32-style input"
    w4 = np.asarray(params["w4"], np.float32)          # (1, 8F, 2, 2)
    pp["w4"] = jnp.asarray(np.transpose(w4, (2, 3, 1, 0)).reshape(-1, 1), jnp.float32)
    pp["b0"] = params["b0"].astype(jnp.float32)
    pp["b4"] = params["b4"].astype(jnp.float32)
    for i in (1, 2, 3):
        pp[f"g{i}"] = params[f"g{i}"].astype(jnp.float32)
        pp[f"be{i}"] = params[f"be{i}"].astype(jnp.float32)
    return pp


# ------------------------- Forward pass -------------------------

def discriminator_forward(pp, x_nchw):
    n, cc = x_nchw.shape[0], x_nchw.shape[1]
    f = pp["b0"].shape[0]

    # NCHW -> NHWC, zero-pad spatially (pad=1), flatten (W, C) into one axis.
    x = jnp.transpose(x_nchw, (0, 2, 3, 1)).astype(jnp.float32)
    x = jnp.pad(x, ((0, 0), (1, 1), (1, 1), (0, 0)))
    x = x.reshape(n, x.shape[1], x.shape[2] * cc)

    # Layer 0: Conv(cc -> f, 3, 2, 1); its bias + LeakyReLU are folded into the
    # next layer's prologue (scale=1, shift=bias), so the kernel emits raw conv.
    y = conv3x3s2(x, pp["w0"], cc, pad_out=True, emit_stats=False)

    scale = jnp.ones((f,), jnp.float32)
    shift = pp["b0"]
    c_in = f
    for i in (1, 2, 3):
        last = i == 3
        y, stats = conv3x3s2(y, pp[f"w{i}"], c_in, scale=scale, shift=shift,
                             pad_out=not last, emit_stats=True)
        oc = pp[f"g{i}"].shape[0]
        ow = stats.shape[2] // oc
        oh = y.shape[1] if last else y.shape[1] - 2
        count = n * oh * ow
        s = jnp.sum(stats.reshape(n, 2, ow, oc), axis=(0, 2))   # (2, OC), tiny
        mean = s[0] / count
        var = s[1] / count - mean * mean                        # biased, as BN fwd
        scale = pp[f"g{i}"] * jax.lax.rsqrt(var + BN_EPS)
        shift = pp[f"be{i}"] - mean * scale
        c_in = oc

    # BN3 affine + LeakyReLU, then Conv2d(8f, 1, 2, 2) + Sigmoid in plain JAX.
    # TODO(synk): final conv has OC=1 / M=batch (MXU + lane utilization ~0); kept
    # outside Pallas per the perf review -- pallas_call overhead would dominate.
    oc3 = pp["g3"].shape[0]
    oh3, ow3 = y.shape[1], y.shape[2] // oc3
    y = y.reshape(n, oh3, ow3, oc3)
    a = y * scale.reshape(1, 1, 1, -1) + shift.reshape(1, 1, 1, -1)
    a = jnp.where(a > 0, a, LEAKY_SLOPE * a)
    logits = a.reshape(n, -1) @ pp["w4"] + pp["b4"].reshape(1, 1)
    return jax.nn.sigmoid(logits).reshape(n, 1, 1, 1)


# ------------------------- Pure-JAX reference (sanity check) -------------------------

def reference_forward(params, x_nchw):
    def conv(x, w, b, stride, pad):
        out = jax.lax.conv_general_dilated(
            x, w, (stride, stride), [(pad, pad), (pad, pad)],
            dimension_numbers=("NCHW", "OIHW", "NCHW"))
        if b is not None:
            out = out + b[None, :, None, None]
        return out

    def leaky(x):
        return jnp.where(x > 0, x, LEAKY_SLOPE * x)

    x = leaky(conv(x_nchw, params["w0"], params["b0"], 2, 1))
    for k in (1, 2, 3):
        x = conv(x, params[f"w{k}"], None, 2, 1)
        mean = jnp.mean(x, axis=(0, 2, 3), keepdims=True)
        var = jnp.mean((x - mean) ** 2, axis=(0, 2, 3), keepdims=True)
        x = (x - mean) * jax.lax.rsqrt(var + BN_EPS)
        x = x * params[f"g{k}"][None, :, None, None] + params[f"be{k}"][None, :, None, None]
        x = leaky(x)
    x = conv(x, params["w4"], params["b4"], 2, 0)
    return jax.nn.sigmoid(x)


if __name__ == "__main__":
    key = jax.random.PRNGKey(0)
    pkey, xkey = jax.random.split(key)
    color_channels, out_features = 3, 8
    params = init_params(pkey, color_channels, out_features)
    x = jax.random.normal(xkey, (2, color_channels, 32, 32), jnp.float32)

    pp = prep_params(params, image_size=32)
    fwd = jax.jit(discriminator_forward)
    out = jax.block_until_ready(fwd(pp, x))

    ref = jax.block_until_ready(reference_forward(params, x))
    assert out.shape == (2, 1, 1, 1), out.shape
    # bf16 GEMM operands (f32 accumulation / f32 BN stats) vs an all-f32 reference.
    max_err = float(jnp.max(jnp.abs(out - ref)))
    assert max_err < 2e-2, f"max abs err vs reference: {max_err}"
    print("KERNEL_OK")
</pallas_src>

<mosaic_0001>
module attributes {stable_mosaic.version = 11 : i64} {
  func.func @_conv3x3s2_kernel(%arg0: i32, %arg1: memref<1x17x2x102xf32, #tpu.memory_space<vmem>>, %arg2: memref<3x102x128xbf16, #tpu.memory_space<vmem>>, %arg3: memref<1x18x144xf32, #tpu.memory_space<vmem>>) attributes {dimension_semantics = [#tpu.dimension_semantics<parallel>], iteration_bounds = array<i64: 2>, scalar_prefetch = 0 : i64, scratch_operands = 0 : i64, tpu.core_type = #tpu.core_type<tc>, window_params = [{transform_indices = @transform_0, window_bounds = array<i64: 1, 17, 2, 102>}, {pipeline_mode = #tpu.pipeline_mode<synchronous>, transform_indices = @transform_1, window_bounds = array<i64: 3, 102, 128>}, {transform_indices = @transform_2, window_bounds = array<i64: 1, 18, 144>}]} {
    %cst = arith.constant 0.000000e+00 : f32
    %0 = vector.broadcast %cst : f32 to vector<16x128xf32>
    %c0 = arith.constant 0 : index
    %c0_0 = arith.constant 0 : index
    %c0_1 = arith.constant 0 : index
    %c0_2 = arith.constant 0 : index
    %1 = vector.load %arg1[%c0, %c0_0, %c0_1, %c0_2] : memref<1x17x2x102xf32, #tpu.memory_space<vmem>>, vector<1x16x1x102xf32>
    %2 = vector.shape_cast %1 : vector<1x16x1x102xf32> to vector<16x102xf32>
    %3 = arith.truncf %2 : vector<16x102xf32> to vector<16x102xbf16>
    %c0_3 = arith.constant 0 : index
    %c0_4 = arith.constant 0 : index
    %c0_5 = arith.constant 0 : index
    %4 = vector.load %arg2[%c0_3, %c0_4, %c0_5] : memref<3x102x128xbf16, #tpu.memory_space<vmem>>, vector<1x102x128xbf16>
    %5 = vector.shape_cast %4 : vector<1x102x128xbf16> to vector<102x128xbf16>
    %cst_6 = arith.constant dense<0.000000e+00> : vector<16x128xf32>
    %6 = tpu.matmul %3, %5, %cst_6 {dimension_numbers = #tpu.dot_dimension_numbers<[1], [0], [0], [1], [0, 0, 1, 1], [], []>} : vector<16x102xbf16>, vector<102x128xbf16>, vector<16x128xf32> -> vector<16x128xf32>
    %7 = arith.addf %0, %6 : vector<16x128xf32>
    %c0_7 = arith.constant 0 : index
    %c0_8 = arith.constant 0 : index
    %c1 = arith.constant 1 : index
    %c0_9 = arith.constant 0 : index
    %8 = vector.load %arg1[%c0_7, %c0_8, %c1, %c0_9] : memref<1x17x2x102xf32, #tpu.memory_space<vmem>>, vector<1x16x1x102xf32>
    %9 = vector.shape_cast %8 : vector<1x16x1x102xf32> to vector<16x102xf32>
    %10 = arith.truncf %9 : vector<16x102xf32> to vector<16x102xbf16>
    %c1_10 = arith.constant 1 : index
    %c0_11 = arith.constant 0 : index
    %c0_12 = arith.constant 0 : index
    %11 = vector.load %arg2[%c1_10, %c0_11, %c0_12] : memref<3x102x128xbf16, #tpu.memory_space<vmem>>, vector<1x102x128xbf16>
    %12 = vector.shape_cast %11 : vector<1x102x128xbf16> to vector<102x128xbf16>
    %cst_13 = arith.constant dense<0.000000e+00> : vector<16x128xf32>
    %13 = tpu.matmul %10, %12, %cst_13 {dimension_numbers = #tpu.dot_dimension_numbers<[1], [0], [0], [1], [0, 0, 1, 1], [], []>} : vector<16x102xbf16>, vector<102x128xbf16>, vector<16x128xf32> -> vector<16x128xf32>
    %14 = arith.addf %7, %13 : vector<16x128xf32>
    %c0_14 = arith.constant 0 : index
    %c1_15 = arith.constant 1 : index
    %c0_16 = arith.constant 0 : index
    %c0_17 = arith.constant 0 : index
    %15 = vector.load %arg1[%c0_14, %c1_15, %c0_16, %c0_17] : memref<1x17x2x102xf32, #tpu.memory_space<vmem>>, vector<1x16x1x102xf32>
    %16 = vector.shape_cast %15 : vector<1x16x1x102xf32> to vector<16x102xf32>
    %17 = arith.truncf %16 : vector<16x102xf32> to vector<16x102xbf16>
    %c2 = arith.constant 2 : index
    %c0_18 = arith.constant 0 : index
    %c0_19 = arith.constant 0 : index
    %18 = vector.load %arg2[%c2, %c0_18, %c0_19] : memref<3x102x128xbf16, #tpu.memory_space<vmem>>, vector<1x102x128xbf16>
    %19 = vector.shape_cast %18 : vector<1x102x128xbf16> to vector<102x128xbf16>
    %cst_20 = arith.constant dense<0.000000e+00> : vector<16x128xf32>
    %20 = tpu.matmul %17, %19, %cst_20 {dimension_numbers = #tpu.dot_dimension_numbers<[1], [0], [0], [1], [0, 0, 1, 1], [], []>} : vector<16x102xbf16>, vector<102x128xbf16>, vector<16x128xf32> -> vector<16x128xf32>
    %21 = arith.addf %14, %20 : vector<16x128xf32>
    %cst_21 = arith.constant 0.000000e+00 : f32
    %22 = vector.broadcast %cst_21 : f32 to vector<1x18x144xf32>
    %c0_22 = arith.constant 0 : index
    %c0_23 = arith.constant 0 : index
    %c0_24 = arith.constant 0 : index
    %23 = vector.load %arg3[%c0_22, %c0_23, %c0_24] : memref<1x18x144xf32, #tpu.memory_space<vmem>>, vector<1x18x144xf32>
    tpu.vector_store %arg3[%c0_22, %c0_23, %c0_24], %22 {strides = array<i32>} : memref<1x18x144xf32, #tpu.memory_space<vmem>>, vector<1x18x144xf32>,
    %c0_25 = arith.constant 0 : index
    %c1_26 = arith.constant 1 : index
    %c8 = arith.constant 8 : index
    %24 = vector.load %arg3[%c0_25, %c1_26, %c8] : memref<1x18x144xf32, #tpu.memory_space<vmem>>, vector<1x16x128xf32>
    %25 = vector.shape_cast %24 : vector<1x16x128xf32> to vector<16x128xf32>
    %26 = vector.shape_cast %21 : vector<16x128xf32> to vector<1x16x128xf32>
    tpu.vector_store %arg3[%c0_25, %c1_26, %c8], %26 {strides = array<i32>} : memref<1x18x144xf32, #tpu.memory_space<vmem>>, vector<1x16x128xf32>,
    return
  }
  func.func @transform_0(%arg0: i32) -> (i32, i32, i32, i32) {
    %c0_i32 = arith.constant 0 : i32
    %c0_i32_0 = arith.constant 0 : i32
    %c0_i32_1 = arith.constant 0 : i32
    %c0_i32_2 = arith.constant 0 : i32
    return %arg0, %c0_i32, %c0_i32_0, %c0_i32_1 : i32, i32, i32, i32
  }
  func.func @transform_1(%arg0: i32) -> (i32, i32, i32) {
    %c0_i32 = arith.constant 0 : i32
    %c0_i32_0 = arith.constant 0 : i32
    %c0_i32_1 = arith.constant 0 : i32
    %c0_i32_2 = arith.constant 0 : i32
    return %c0_i32, %c0_i32_0, %c0_i32_1 : i32, i32, i32
  }
  func.func @transform_2(%arg0: i32) -> (i32, i32, i32) {
    %c0_i32 = arith.constant 0 : i32
    %c0_i32_0 = arith.constant 0 : i32
    %c0_i32_1 = arith.constant 0 : i32
    return %arg0, %c0_i32, %c0_i32_0 : i32, i32, i32
  }
}

module attributes {stable_mosaic.version = 11 : i64} {
  func.func @_conv3x3s2_kernel(%arg0: i32, %arg1: memref<1x9x2x144xf32, #tpu.memory_space<vmem>>, %arg2: memref<3x144x128xbf16, #tpu.memory_space<vmem>>, %arg3: memref<1x144xf32, #tpu.memory_space<vmem>>, %arg4: memref<1x144xf32, #tpu.memory_space<vmem>>, %arg5: memref<9x2x144xf32, #tpu.memory_space<vmem>>, %arg6: memref<1x10x160xf32, #tpu.memory_space<vmem>>, %arg7: memref<1x2x128xf32, #tpu.memory_space<vmem>>) attributes {dimension_semantics = [#tpu.dimension_semantics<parallel>], iteration_bounds = array<i64: 2>, scalar_prefetch = 0 : i64, scratch_operands = 0 : i64, tpu.core_type = #tpu.core_type<tc>, window_params = [{transform_indices = @transform_0, window_bounds = array<i64: 1, 9, 2, 144>}, {pipeline_mode = #tpu.pipeline_mode<synchronous>, transform_indices = @transform_1, window_bounds = array<i64: 3, 144, 128>}, {pipeline_mode = #tpu.pipeline_mode<synchronous>, transform_indices = @transform_2, window_bounds = array<i64: 1, 144>}, {pipeline_mode = #tpu.pipeline_mode<synchronous>, transform_indices = @transform_3, window_bounds = array<i64: 1, 144>}, {pipeline_mode = #tpu.pipeline_mode<synchronous>, transform_indices = @transform_4, window_bounds = array<i64: 9, 2, 144>}, {transform_indices = @transform_5, window_bounds = array<i64: 1, 10, 160>}, {transform_indices = @transform_6, window_bounds = array<i64: 1, 2, 128>}]} {
    %cst = arith.constant 0.000000e+00 : f32
    %0 = vector.broadcast %cst : f32 to vector<8x128xf32>
    %c0 = arith.constant 0 : index
    %c0_0 = arith.constant 0 : index
    %c0_1 = arith.constant 0 : index
    %c0_2 = arith.constant 0 : index
    %1 = vector.load %arg1[%c0, %c0_0, %c0_1, %c0_2] : memref<1x9x2x144xf32, #tpu.memory_space<vmem>>, vector<1x8x1x144xf32>
    %2 = vector.shape_cast %1 : vector<1x8x1x144xf32> to vector<8x144xf32>
    %c0_3 = arith.constant 0 : index
    %c0_4 = arith.constant 0 : index
    %3 = vector.load %arg3[%c0_3, %c0_4] : memref<1x144xf32, #tpu.memory_space<vmem>>, vector<1x144xf32>
    %4 = vector.broadcast %3 : vector<1x144xf32> to vector<8x144xf32>
    %5 = arith.mulf %2, %4 : vector<8x144xf32>
    %c0_5 = arith.constant 0 : index
    %c0_6 = arith.constant 0 : index
    %6 = vector.load %arg4[%c0_5, %c0_6] : memref<1x144xf32, #tpu.memory_space<vmem>>, vector<1x144xf32>
    %7 = vector.broadcast %6 : vector<1x144xf32> to vector<8x144xf32>
    %8 = arith.addf %5, %7 : vector<8x144xf32>
    %cst_7 = arith.constant 0.000000e+00 : f32
    %9 = vector.broadcast %cst_7 : f32 to vector<8x144xf32>
    %10 = arith.cmpf ogt, %8, %9 : vector<8x144xf32>
    %cst_8 = arith.constant 2.000000e-01 : f32
    %11 = vector.broadcast %cst_8 : f32 to vector<8x144xf32>
    %12 = arith.mulf %11, %8 : vector<8x144xf32>
    %13 = arith.select %10, %8, %12 : vector<8x144xi1>, vector<8x144xf32>
    %c0_9 = arith.constant 0 : index
    %c0_10 = arith.constant 0 : index
    %c0_11 = arith.constant 0 : index
    %14 = vector.load %arg5[%c0_9, %c0_10, %c0_11] : memref<9x2x144xf32, #tpu.memory_space<vmem>>, vector<8x1x144xf32>
    %15 = vector.shape_cast %14 : vector<8x1x144xf32> to vector<8x144xf32>
    %16 = arith.mulf %13, %15 : vector<8x144xf32>
    %17 = arith.truncf %16 : vector<8x144xf32> to vector<8x144xbf16>
    %c0_12 = arith.constant 0 : index
    %c0_13 = arith.constant 0 : index
    %c0_14 = arith.constant 0 : index
    %18 = vector.load %arg2[%c0_12, %c0_13, %c0_14] : memref<3x144x128xbf16, #tpu.memory_space<vmem>>, vector<1x144x128xbf16>
    %19 = vector.shape_cast %18 : vector<1x144x128xbf16> to vector<144x128xbf16>
    %cst_15 = arith.constant dense<0.000000e+00> : vector<8x128xf32>
    %20 = tpu.matmul %17, %19, %cst_15 {dimension_numbers = #tpu.dot_dimension_numbers<[1], [0], [0], [1], [0, 0, 1, 1], [], []>} : vector<8x144xbf16>, vector<144x128xbf16>, vector<8x128xf32> -> vector<8x128xf32>
    %21 = arith.addf %0, %20 : vector<8x128xf32>
    %c0_16 = arith.constant 0 : index
    %c0_17 = arith.constant 0 : index
    %c1 = arith.constant 1 : index
    %c0_18 = arith.constant 0 : index
    %22 = vector.load %arg1[%c0_16, %c0_17, %c1, %c0_18] : memref<1x9x2x144xf32, #tpu.memory_space<vmem>>, vector<1x8x1x144xf32>
    %23 = vector.shape_cast %22 : vector<1x8x1x144xf32> to vector<8x144xf32>
    %c0_19 = arith.constant 0 : index
    %c0_20 = arith.constant 0 : index
    %24 = vector.load %arg3[%c0_19, %c0_20] : memref<1x144xf32, #tpu.memory_space<vmem>>, vector<1x144xf32>
    %25 = vector.broadcast %24 : vector<1x144xf32> to vector<8x144xf32>
    %26 = arith.mulf %23, %25 : vector<8x144xf32>
    %c0_21 = arith.constant 0 : index
    %c0_22 = arith.constant 0 : index
    %27 = vector.load %arg4[%c0_21, %c0_22] : memref<1x144xf32, #tpu.memory_space<vmem>>, vector<1x144xf32>
    %28 = vector.broadcast %27 : vector<1x144xf32> to vector<8x144xf32>
    %29 = arith.addf %26, %28 : vector<8x144xf32>
    %cst_23 = arith.constant 0.000000e+00 : f32
    %30 = vector.broadcast %cst_23 : f32 to vector<8x144xf32>
    %31 = arith.cmpf ogt, %29, %30 : vector<8x144xf32>
    %cst_24 = arith.constant 2.000000e-01 : f32
    %32 = vector.broadcast %cst_24 : f32 to vector<8x144xf32>
    %33 = arith.mulf %32, %29 : vector<8x144xf32>
    %34 = arith.select %31, %29, %33 : vector<8x144xi1>, vector<8x144xf32>
    %c0_25 = arith.constant 0 : index
    %c1_26 = arith.constant 1 : index
    %c0_27 = arith.constant 0 : index
    %35 = vector.load %arg5[%c0_25, %c1_26, %c0_27] : memref<9x2x144xf32, #tpu.memory_space<vmem>>, vector<8x1x144xf32>
    %36 = vector.shape_cast %35 : vector<8x1x144xf32> to vector<8x144xf32>
    %37 = arith.mulf %34, %36 : vector<8x144xf32>
    %38 = arith.truncf %37 : vector<8x144xf32> to vector<8x144xbf16>
    %c1_28 = arith.constant 1 : index
    %c0_29 = arith.constant 0 : index
    %c0_30 = arith.constant 0 : index
    %39 = vector.load %arg2[%c1_28, %c0_29, %c0_30] : memref<3x144x128xbf16, #tpu.memory_space<vmem>>, vector<1x144x128xbf16>
    %40 = vector.shape_cast %39 : vector<1x144x128xbf16> to vector<144x128xbf16>
    %cst_31 = arith.constant dense<0.000000e+00> : vector<8x128xf32>
    %41 = tpu.matmul %38, %40, %cst_31 {dimension_numbers = #tpu.dot_dimension_numbers<[1], [0], [0], [1], [0, 0, 1, 1], [], []>} : vector<8x144xbf16>, vector<144x128xbf16>, vector<8x128xf32> -> vector<8x128xf32>
    %42 = arith.addf %21, %41 : vector<8x128xf32>
    %c0_32 = arith.constant 0 : index
    %c1_33 = arith.constant 1 : index
    %c0_34 = arith.constant 0 : index
    %c0_35 = arith.constant 0 : index
    %43 = vector.load %arg1[%c0_32, %c1_33, %c0_34, %c0_35] : memref<1x9x2x144xf32, #tpu.memory_space<vmem>>, vector<1x8x1x144xf32>
    %44 = vector.shape_cast %43 : vector<1x8x1x144xf32> to vector<8x144xf32>
    %c0_36 = arith.constant 0 : index
    %c0_37 = arith.constant 0 : index
    %45 = vector.load %arg3[%c0_36, %c0_37] : memref<1x144xf32, #tpu.memory_space<vmem>>, vector<1x144xf32>
    %46 = vector.broadcast %45 : vector<1x144xf32> to vector<8x144xf32>
    %47 = arith.mulf %44, %46 : vector<8x144xf32>
    %c0_38 = arith.constant 0 : index
    %c0_39 = arith.constant 0 : index
    %48 = vector.load %arg4[%c0_38, %c0_39] : memref<1x144xf32, #tpu.memory_space<vmem>>, vector<1x144xf32>
    %49 = vector.broadcast %48 : vector<1x144xf32> to vector<8x144xf32>
    %50 = arith.addf %47, %49 : vector<8x144xf32>
    %cst_40 = arith.constant 0.000000e+00 : f32
    %51 = vector.broadcast %cst_40 : f32 to vector<8x144xf32>
    %52 = arith.cmpf ogt, %50, %51 : vector<8x144xf32>
    %cst_41 = arith.constant 2.000000e-01 : f32
    %53 = vector.broadcast %cst_41 : f32 to vector<8x144xf32>
    %54 = arith.mulf %53, %50 : vector<8x144xf32>
    %55 = arith.select %52, %50, %54 : vector<8x144xi1>, vector<8x144xf32>
    %c1_42 = arith.constant 1 : index
    %c0_43 = arith.constant 0 : index
    %c0_44 = arith.constant 0 : index
    %56 = vector.load %arg5[%c1_42, %c0_43, %c0_44] : memref<9x2x144xf32, #tpu.memory_space<vmem>>, vector<8x1x144xf32>
    %57 = vector.shape_cast %56 : vector<8x1x144xf32> to vector<8x144xf32>
    %58 = arith.mulf %55, %57 : vector<8x144xf32>
    %59 = arith.truncf %58 : vector<8x144xf32> to vector<8x144xbf16>
    %c2 = arith.constant 2 : index
    %c0_45 = arith.constant 0 : index
    %c0_46 = arith.constant 0 : index
    %60 = vector.load %arg2[%c2, %c0_45, %c0_46] : memref<3x144x128xbf16, #tpu.memory_space<vmem>>, vector<1x144x128xbf16>
    %61 = vector.shape_cast %60 : vector<1x144x128xbf16> to vector<144x128xbf16>
    %cst_47 = arith.constant dense<0.000000e+00> : vector<8x128xf32>
    %62 = tpu.matmul %59, %61, %cst_47 {dimension_numbers = #tpu.dot_dimension_numbers<[1], [0], [0], [1], [0, 0, 1, 1], [], []>} : vector<8x144xbf16>, vector<144x128xbf16>, vector<8x128xf32> -> vector<8x128xf32>
    %63 = arith.addf %42, %62 : vector<8x128xf32>
    %cst_48 = arith.constant dense<0.000000e+00> : vector<128xf32>
    %64 = vector.multi_reduction <add>, %63, %cst_48 [0] : vector<8x128xf32> to vector<128xf32>
    %65 = vector.shape_cast %64 : vector<128xf32> to vector<1x128xf32>
    %c0_49 = arith.constant 0 : index
    %c0_50 = arith.constant 0 : index
    %c0_51 = arith.constant 0 : index
    %66 = vector.load %arg7[%c0_49, %c0_50, %c0_51] : memref<1x2x128xf32, #tpu.memory_space<vmem>>, vector<1x1x128xf32>
    %67 = vector.shape_cast %66 : vector<1x1x128xf32> to vector<1x128xf32>
    %68 = vector.shape_cast %65 : vector<1x128xf32> to vector<1x1x128xf32>
    tpu.vector_store %arg7[%c0_49, %c0_50, %c0_51], %68 {strides = array<i32>} : memref<1x2x128xf32, #tpu.memory_space<vmem>>, vector<1x1x128xf32>,
    %69 = arith.mulf %63, %63 : vector<8x128xf32>
    %cst_52 = arith.constant dense<0.000000e+00> : vector<128xf32>
    %70 = vector.multi_reduction <add>, %69, %cst_52 [0] : vector<8x128xf32> to vector<128xf32>
    %71 = vector.shape_cast %70 : vector<128xf32> to vector<1x128xf32>
    %c0_53 = arith.constant 0 : index
    %c1_54 = arith.constant 1 : index
    %c0_55 = arith.constant 0 : index
    %72 = vector.load %arg7[%c0_53, %c1_54, %c0_55] : memref<1x2x128xf32, #tpu.memory_space<vmem>>, vector<1x1x128xf32>
    %73 = vector.shape_cast %72 : vector<1x1x128xf32> to vector<1x128xf32>
    %74 = vector.shape_cast %71 : vector<1x128xf32> to vector<1x1x128xf32>
    tpu.vector_store %arg7[%c0_53, %c1_54, %c0_55], %74 {strides = array<i32>} : memref<1x2x128xf32, #tpu.memory_space<vmem>>, vector<1x1x128xf32>,
    %cst_56 = arith.constant 0.000000e+00 : f32
    %75 = vector.broadcast %cst_56 : f32 to vector<1x10x160xf32>
    %c0_57 = arith.constant 0 : index
    %c0_58 = arith.constant 0 : index
    %c0_59 = arith.constant 0 : index
    %76 = vector.load %arg6[%c0_57, %c0_58, %c0_59] : memref<1x10x160xf32, #tpu.memory_space<vmem>>, vector<1x10x160xf32>
    tpu.vector_store %arg6[%c0_57, %c0_58, %c0_59], %75 {strides = array<i32>} : memref<1x10x160xf32, #tpu.memory_space<vmem>>, vector<1x10x160xf32>,
    %c0_60 = arith.constant 0 : index
    %c1_61 = arith.constant 1 : index
    %c16 = arith.constant 16 : index
    %77 = vector.load %arg6[%c0_60, %c1_61, %c16] : memref<1x10x160xf32, #tpu.memory_space<vmem>>, vector<1x8x128xf32>
    %78 = vector.shape_cast %77 : vector<1x8x128xf32> to vector<8x128xf32>
    %79 = vector.shape_cast %63 : vector<8x128xf32> to vector<1x8x128xf32>
    tpu.vector_store %arg6[%c0_60, %c1_61, %c16], %79 {strides = array<i32>} : memref<1x10x160xf32, #tpu.memory_space<vmem>>, vector<1x8x128xf32>,
    return
  }
  func.func @transform_0(%arg0: i32) -> (i32, i32, i32, i32) {
    %c0_i32 = arith.constant 0 : i32
    %c0_i32_0 = arith.constant 0 : i32
    %c0_i32_1 = arith.constant 0 : i32
    %c0_i32_2 = arith.constant 0 : i32
    return %arg0, %c0_i32, %c0_i32_0, %c0_i32_1 : i32, i32, i32, i32
  }
  func.func @transform_1(%arg0: i32) -> (i32, i32, i32) {
    %c0_i32 = arith.constant 0 : i32
    %c0_i32_0 = arith.constant 0 : i32
    %c0_i32_1 = arith.constant 0 : i32
    %c0_i32_2 = arith.constant 0 : i32
    return %c0_i32, %c0_i32_0, %c0_i32_1 : i32, i32, i32
  }
  func.func @transform_2(%arg0: i32) -> (i32, i32) {
    %c0_i32 = arith.constant 0 : i32
    %c0_i32_0 = arith.constant 0 : i32
    %c0_i32_1 = arith.constant 0 : i32
    return %c0_i32, %c0_i32_0 : i32, i32
  }
  func.func @transform_3(%arg0: i32) -> (i32, i32) {
    %c0_i32 = arith.constant 0 : i32
    %c0_i32_0 = arith.constant 0 : i32
    %c0_i32_1 = arith.constant 0 : i32
    return %c0_i32, %c0_i32_0 : i32, i32
  }
  func.func @transform_4(%arg0: i32) -> (i32, i32, i32) {
    %c0_i32 = arith.constant 0 : i32
    %c0_i32_0 = arith.constant 0 : i32
    %c0_i32_1 = arith.constant 0 : i32
    %c0_i32_2 = arith.constant 0 : i32
    return %c0_i32, %c0_i32_0, %c0_i32_1 : i32, i32, i32
  }
  func.func @transform_5(%arg0: i32) -> (i32, i32, i32) {
    %c0_i32 = arith.constant 0 : i32
    %c0_i32_0 = arith.constant 0 : i32
    %c0_i32_1 = arith.constant 0 : i32
    return %arg0, %c0_i32, %c0_i32_0 : i32, i32, i32
  }
  func.func @transform_6(%arg0: i32) -> (i32, i32, i32) {
    %c0_i32 = arith.constant 0 : i32
    %c0_i32_0 = arith.constant 0 : i32
    %c0_i32_1 = arith.constant 0 : i32
    return %arg0, %c0_i32, %c0_i32_0 : i32, i32, i32
  }
}

module attributes {stable_mosaic.version = 11 : i64} {
  func.func @_conv3x3s2_kernel(%arg0: i32, %arg1: memref<1x5x2x160xf32, #tpu.memory_space<vmem>>, %arg2: memref<3x160x128xbf16, #tpu.memory_space<vmem>>, %arg3: memref<1x160xf32, #tpu.memory_space<vmem>>, %arg4: memref<1x160xf32, #tpu.memory_space<vmem>>, %arg5: memref<5x2x160xf32, #tpu.memory_space<vmem>>, %arg6: memref<1x6x192xf32, #tpu.memory_space<vmem>>, %arg7: memref<1x2x128xf32, #tpu.memory_space<vmem>>) attributes {dimension_semantics = [#tpu.dimension_semantics<parallel>], iteration_bounds = array<i64: 2>, scalar_prefetch = 0 : i64, scratch_operands = 0 : i64, tpu.core_type = #tpu.core_type<tc>, window_params = [{transform_indices = @transform_0, window_bounds = array<i64: 1, 5, 2, 160>}, {pipeline_mode = #tpu.pipeline_mode<synchronous>, transform_indices = @transform_1, window_bounds = array<i64: 3, 160, 128>}, {pipeline_mode = #tpu.pipeline_mode<synchronous>, transform_indices = @transform_2, window_bounds = array<i64: 1, 160>}, {pipeline_mode = #tpu.pipeline_mode<synchronous>, transform_indices = @transform_3, window_bounds = array<i64: 1, 160>}, {pipeline_mode = #tpu.pipeline_mode<synchronous>, transform_indices = @transform_4, window_bounds = array<i64: 5, 2, 160>}, {transform_indices = @transform_5, window_bounds = array<i64: 1, 6, 192>}, {transform_indices = @transform_6, window_bounds = array<i64: 1, 2, 128>}]} {
    %cst = arith.constant 0.000000e+00 : f32
    %0 = vector.broadcast %cst : f32 to vector<4x128xf32>
    %c0 = arith.constant 0 : index
    %c0_0 = arith.constant 0 : index
    %c0_1 = arith.constant 0 : index
    %c0_2 = arith.constant 0 : index
    %1 = vector.load %arg1[%c0, %c0_0, %c0_1, %c0_2] : memref<1x5x2x160xf32, #tpu.memory_space<vmem>>, vector<1x4x1x160xf32>
    %2 = vector.shape_cast %1 : vector<1x4x1x160xf32> to vector<4x160xf32>
    %c0_3 = arith.constant 0 : index
    %c0_4 = arith.constant 0 : index
    %3 = vector.load %arg3[%c0_3, %c0_4] : memref<1x160xf32, #tpu.memory_space<vmem>>, vector<1x160xf32>
    %4 = vector.broadcast %3 : vector<1x160xf32> to vector<4x160xf32>
    %5 = arith.mulf %2, %4 : vector<4x160xf32>
    %c0_5 = arith.constant 0 : index
    %c0_6 = arith.constant 0 : index
    %6 = vector.load %arg4[%c0_5, %c0_6] : memref<1x160xf32, #tpu.memory_space<vmem>>, vector<1x160xf32>
    %7 = vector.broadcast %6 : vector<1x160xf32> to vector<4x160xf32>
    %8 = arith.addf %5, %7 : vector<4x160xf32>
    %cst_7 = arith.constant 0.000000e+00 : f32
    %9 = vector.broadcast %cst_7 : f32 to vector<4x160xf32>
    %10 = arith.cmpf ogt, %8, %9 : vector<4x160xf32>
    %cst_8 = arith.constant 2.000000e-01 : f32
    %11 = vector.broadcast %cst_8 : f32 to vector<4x160xf32>
    %12 = arith.mulf %11, %8 : vector<4x160xf32>
    %13 = arith.select %10, %8, %12 : vector<4x160xi1>, vector<4x160xf32>
    %c0_9 = arith.constant 0 : index
    %c0_10 = arith.constant 0 : index
    %c0_11 = arith.constant 0 : index
    %14 = vector.load %arg5[%c0_9, %c0_10, %c0_11] : memref<5x2x160xf32, #tpu.memory_space<vmem>>, vector<4x1x160xf32>
    %15 = vector.shape_cast %14 : vector<4x1x160xf32> to vector<4x160xf32>
    %16 = arith.mulf %13, %15 : vector<4x160xf32>
    %17 = arith.truncf %16 : vector<4x160xf32> to vector<4x160xbf16>
    %c0_12 = arith.constant 0 : index
    %c0_13 = arith.constant 0 : index
    %c0_14 = arith.constant 0 : index
    %18 = vector.load %arg2[%c0_12, %c0_13, %c0_14] : memref<3x160x128xbf16, #tpu.memory_space<vmem>>, vector<1x160x128xbf16>
    %19 = vector.shape_cast %18 : vector<1x160x128xbf16> to vector<160x128xbf16>
    %cst_15 = arith.constant dense<0.000000e+00> : vector<4x128xf32>
    %20 = tpu.matmul %17, %19, %cst_15 {dimension_numbers = #tpu.dot_dimension_numbers<[1], [0], [0], [1], [0, 0, 1, 1], [], []>} : vector<4x160xbf16>, vector<160x128xbf16>, vector<4x128xf32> -> vector<4x128xf32>
    %21 = arith.addf %0, %20 : vector<4x128xf32>
    %c0_16 = arith.constant 0 : index
    %c0_17 = arith.constant 0 : index
    %c1 = arith.constant 1 : index
    %c0_18 = arith.constant 0 : index
    %22 = vector.load %arg1[%c0_16, %c0_17, %c1, %c0_18] : memref<1x5x2x160xf32, #tpu.memory_space<vmem>>, vector<1x4x1x160xf32>
    %23 = vector.shape_cast %22 : vector<1x4x1x160xf32> to vector<4x160xf32>
    %c0_19 = arith.constant 0 : index
    %c0_20 = arith.constant 0 : index
    %24 = vector.load %arg3[%c0_19, %c0_20] : memref<1x160xf32, #tpu.memory_space<vmem>>, vector<1x160xf32>
    %25 = vector.broadcast %24 : vector<1x160xf32> to vector<4x160xf32>
    %26 = arith.mulf %23, %25 : vector<4x160xf32>
    %c0_21 = arith.constant 0 : index
    %c0_22 = arith.constant 0 : index
    %27 = vector.load %arg4[%c0_21, %c0_22] : memref<1x160xf32, #tpu.memory_space<vmem>>, vector<1x160xf32>
    %28 = vector.broadcast %27 : vector<1x160xf32> to vector<4x160xf32>
    %29 = arith.addf %26, %28 : vector<4x160xf32>
    %cst_23 = arith.constant 0.000000e+00 : f32
    %30 = vector.broadcast %cst_23 : f32 to vector<4x160xf32>
    %31 = arith.cmpf ogt, %29, %30 : vector<4x160xf32>
    %cst_24 = arith.constant 2.000000e-01 : f32
    %32 = vector.broadcast %cst_24 : f32 to vector<4x160xf32>
    %33 = arith.mulf %32, %29 : vector<4x160xf32>
    %34 = arith.select %31, %29, %33 : vector<4x160xi1>, vector<4x160xf32>
    %c0_25 = arith.constant 0 : index
    %c1_26 = arith.constant 1 : index
    %c0_27 = arith.constant 0 : index
    %35 = vector.load %arg5[%c0_25, %c1_26, %c0_27] : memref<5x2x160xf32, #tpu.memory_space<vmem>>, vector<4x1x160xf32>
    %36 = vector.shape_cast %35 : vector<4x1x160xf32> to vector<4x160xf32>
    %37 = arith.mulf %34, %36 : vector<4x160xf32>
    %38 = arith.truncf %37 : vector<4x160xf32> to vector<4x160xbf16>
    %c1_28 = arith.constant 1 : index
    %c0_29 = arith.constant 0 : index
    %c0_30 = arith.constant 0 : index
    %39 = vector.load %arg2[%c1_28, %c0_29, %c0_30] : memref<3x160x128xbf16, #tpu.memory_space<vmem>>, vector<1x160x128xbf16>
    %40 = vector.shape_cast %39 : vector<1x160x128xbf16> to vector<160x128xbf16>
    %cst_31 = arith.constant dense<0.000000e+00> : vector<4x128xf32>
    %41 = tpu.matmul %38, %40, %cst_31 {dimension_numbers = #tpu.dot_dimension_numbers<[1], [0], [0], [1], [0, 0, 1, 1], [], []>} : vector<4x160xbf16>, vector<160x128xbf16>, vector<4x128xf32> -> vector<4x128xf32>
    %42 = arith.addf %21, %41 : vector<4x128xf32>
    %c0_32 = arith.constant 0 : index
    %c1_33 = arith.constant 1 : index
    %c0_34 = arith.constant 0 : index
    %c0_35 = arith.constant 0 : index
    %43 = vector.load %arg1[%c0_32, %c1_33, %c0_34, %c0_35] : memref<1x5x2x160xf32, #tpu.memory_space<vmem>>, vector<1x4x1x160xf32>
    %44 = vector.shape_cast %43 : vector<1x4x1x160xf32> to vector<4x160xf32>
    %c0_36 = arith.constant 0 : index
    %c0_37 = arith.constant 0 : index
    %45 = vector.load %arg3[%c0_36, %c0_37] : memref<1x160xf32, #tpu.memory_space<vmem>>, vector<1x160xf32>
    %46 = vector.broadcast %45 : vector<1x160xf32> to vector<4x160xf32>
    %47 = arith.mulf %44, %46 : vector<4x160xf32>
    %c0_38 = arith.constant 0 : index
    %c0_39 = arith.constant 0 : index
    %48 = vector.load %arg4[%c0_38, %c0_39] : memref<1x160xf32, #tpu.memory_space<vmem>>, vector<1x160xf32>
    %49 = vector.broadcast %48 : vector<1x160xf32> to vector<4x160xf32>
    %50 = arith.addf %47, %49 : vector<4x160xf32>
    %cst_40 = arith.constant 0.000000e+00 : f32
    %51 = vector.broadcast %cst_40 : f32 to vector<4x160xf32>
    %52 = arith.cmpf ogt, %50, %51 : vector<4x160xf32>
    %cst_41 = arith.constant 2.000000e-01 : f32
    %53 = vector.broadcast %cst_41 : f32 to vector<4x160xf32>
    %54 = arith.mulf %53, %50 : vector<4x160xf32>
    %55 = arith.select %52, %50, %54 : vector<4x160xi1>, vector<4x160xf32>
    %c1_42 = arith.constant 1 : index
    %c0_43 = arith.constant 0 : index
    %c0_44 = arith.constant 0 : index
    %56 = vector.load %arg5[%c1_42, %c0_43, %c0_44] : memref<5x2x160xf32, #tpu.memory_space<vmem>>, vector<4x1x160xf32>
    %57 = vector.shape_cast %56 : vector<4x1x160xf32> to vector<4x160xf32>
    %58 = arith.mulf %55, %57 : vector<4x160xf32>
    %59 = arith.truncf %58 : vector<4x160xf32> to vector<4x160xbf16>
    %c2 = arith.constant 2 : index
    %c0_45 = arith.constant 0 : index
    %c0_46 = arith.constant 0 : index
    %60 = vector.load %arg2[%c2, %c0_45, %c0_46] : memref<3x160x128xbf16, #tpu.memory_space<vmem>>, vector<1x160x128xbf16>
    %61 = vector.shape_cast %60 : vector<1x160x128xbf16> to vector<160x128xbf16>
    %cst_47 = arith.constant dense<0.000000e+00> : vector<4x128xf32>
    %62 = tpu.matmul %59, %61, %cst_47 {dimension_numbers = #tpu.dot_dimension_numbers<[1], [0], [0], [1], [0, 0, 1, 1], [], []>} : vector<4x160xbf16>, vector<160x128xbf16>, vector<4x128xf32> -> vector<4x128xf32>
    %63 = arith.addf %42, %62 : vector<4x128xf32>
    %cst_48 = arith.constant dense<0.000000e+00> : vector<128xf32>
    %64 = vector.multi_reduction <add>, %63, %cst_48 [0] : vector<4x128xf32> to vector<128xf32>
    %65 = vector.shape_cast %64 : vector<128xf32> to vector<1x128xf32>
    %c0_49 = arith.constant 0 : index
    %c0_50 = arith.constant 0 : index
    %c0_51 = arith.constant 0 : index
    %66 = vector.load %arg7[%c0_49, %c0_50, %c0_51] : memref<1x2x128xf32, #tpu.memory_space<vmem>>, vector<1x1x128xf32>
    %67 = vector.shape_cast %66 : vector<1x1x128xf32> to vector<1x128xf32>
    %68 = vector.shape_cast %65 : vector<1x128xf32> to vector<1x1x128xf32>
    tpu.vector_store %arg7[%c0_49, %c0_50, %c0_51], %68 {strides = array<i32>} : memref<1x2x128xf32, #tpu.memory_space<vmem>>, vector<1x1x128xf32>,
    %69 = arith.mulf %63, %63 : vector<4x128xf32>
    %cst_52 = arith.constant dense<0.000000e+00> : vector<128xf32>
    %70 = vector.multi_reduction <add>, %69, %cst_52 [0] : vector<4x128xf32> to vector<128xf32>
    %71 = vector.shape_cast %70 : vector<128xf32> to vector<1x128xf32>
    %c0_53 = arith.constant 0 : index
    %c1_54 = arith.constant 1 : index
    %c0_55 = arith.constant 0 : index
    %72 = vector.load %arg7[%c0_53, %c1_54, %c0_55] : memref<1x2x128xf32, #tpu.memory_space<vmem>>, vector<1x1x128xf32>
    %73 = vector.shape_cast %72 : vector<1x1x128xf32> to vector<1x128xf32>
    %74 = vector.shape_cast %71 : vector<1x128xf32> to vector<1x1x128xf32>
    tpu.vector_store %arg7[%c0_53, %c1_54, %c0_55], %74 {strides = array<i32>} : memref<1x2x128xf32, #tpu.memory_space<vmem>>, vector<1x1x128xf32>,
    %cst_56 = arith.constant 0.000000e+00 : f32
    %75 = vector.broadcast %cst_56 : f32 to vector<1x6x192xf32>
    %c0_57 = arith.constant 0 : index
    %c0_58 = arith.constant 0 : index
    %c0_59 = arith.constant 0 : index
    %76 = vector.load %arg6[%c0_57, %c0_58, %c0_59] : memref<1x6x192xf32, #tpu.memory_space<vmem>>, vector<1x6x192xf32>
    tpu.vector_store %arg6[%c0_57, %c0_58, %c0_59], %75 {strides = array<i32>} : memref<1x6x192xf32, #tpu.memory_space<vmem>>, vector<1x6x192xf32>,
    %c0_60 = arith.constant 0 : index
    %c1_61 = arith.constant 1 : index
    %c32 = arith.constant 32 : index
    %77 = vector.load %arg6[%c0_60, %c1_61, %c32] : memref<1x6x192xf32, #tpu.memory_space<vmem>>, vector<1x4x128xf32>
    %78 = vector.shape_cast %77 : vector<1x4x128xf32> to vector<4x128xf32>
    %79 = vector.shape_cast %63 : vector<4x128xf32> to vector<1x4x128xf32>
    tpu.vector_store %arg6[%c0_60, %c1_61, %c32], %79 {strides = array<i32>} : memref<1x6x192xf32, #tpu.memory_space<vmem>>, vector<1x4x128xf32>,
    return
  }
  func.func @transform_0(%arg0: i32) -> (i32, i32, i32, i32) {
    %c0_i32 = arith.constant 0 : i32
    %c0_i32_0 = arith.constant 0 : i32
    %c0_i32_1 = arith.constant 0 : i32
    %c0_i32_2 = arith.constant 0 : i32
    return %arg0, %c0_i32, %c0_i32_0, %c0_i32_1 : i32, i32, i32, i32
  }
  func.func @transform_1(%arg0: i32) -> (i32, i32, i32) {
    %c0_i32 = arith.constant 0 : i32
    %c0_i32_0 = arith.constant 0 : i32
    %c0_i32_1 = arith.constant 0 : i32
    %c0_i32_2 = arith.constant 0 : i32
    return %c0_i32, %c0_i32_0, %c0_i32_1 : i32, i32, i32
  }
  func.func @transform_2(%arg0: i32) -> (i32, i32) {
    %c0_i32 = arith.constant 0 : i32
    %c0_i32_0 = arith.constant 0 : i32
    %c0_i32_1 = arith.constant 0 : i32
    return %c0_i32, %c0_i32_0 : i32, i32
  }
  func.func @transform_3(%arg0: i32) -> (i32, i32) {
    %c0_i32 = arith.constant 0 : i32
    %c0_i32_0 = arith.constant 0 : i32
    %c0_i32_1 = arith.constant 0 : i32
    return %c0_i32, %c0_i32_0 : i32, i32
  }
  func.func @transform_4(%arg0: i32) -> (i32, i32, i32) {
    %c0_i32 = arith.constant 0 : i32
    %c0_i32_0 = arith.constant 0 : i32
    %c0_i32_1 = arith.constant 0 : i32
    %c0_i32_2 = arith.constant 0 : i32
    return %c0_i32, %c0_i32_0, %c0_i32_1 : i32, i32, i32
  }
  func.func @transform_5(%arg0: i32) -> (i32, i32, i32) {
    %c0_i32 = arith.constant 0 : i32
    %c0_i32_0 = arith.constant 0 : i32
    %c0_i32_1 = arith.constant 0 : i32
    return %arg0, %c0_i32, %c0_i32_0 : i32, i32, i32
  }
  func.func @transform_6(%arg0: i32) -> (i32, i32, i32) {
    %c0_i32 = arith.constant 0 : i32
    %c0_i32_0 = arith.constant 0 : i32
    %c0_i32_1 = arith.constant 0 : i32
    return %arg0, %c0_i32, %c0_i32_0 : i32, i32, i32
  }
}

module attributes {stable_mosaic.version = 11 : i64} {
  func.func @_conv3x3s2_kernel(%arg0: i32, %arg1: memref<1x3x2x192xf32, #tpu.memory_space<vmem>>, %arg2: memref<3x192x128xbf16, #tpu.memory_space<vmem>>, %arg3: memref<1x192xf32, #tpu.memory_space<vmem>>, %arg4: memref<1x192xf32, #tpu.memory_space<vmem>>, %arg5: memref<3x2x192xf32, #tpu.memory_space<vmem>>, %arg6: memref<1x2x128xf32, #tpu.memory_space<vmem>>, %arg7: memref<1x2x128xf32, #tpu.memory_space<vmem>>) attributes {dimension_semantics = [#tpu.dimension_semantics<parallel>], iteration_bounds = array<i64: 2>, scalar_prefetch = 0 : i64, scratch_operands = 0 : i64, tpu.core_type = #tpu.core_type<tc>, window_params = [{transform_indices = @transform_0, window_bounds = array<i64: 1, 3, 2, 192>}, {pipeline_mode = #tpu.pipeline_mode<synchronous>, transform_indices = @transform_1, window_bounds = array<i64: 3, 192, 128>}, {pipeline_mode = #tpu.pipeline_mode<synchronous>, transform_indices = @transform_2, window_bounds = array<i64: 1, 192>}, {pipeline_mode = #tpu.pipeline_mode<synchronous>, transform_indices = @transform_3, window_bounds = array<i64: 1, 192>}, {pipeline_mode = #tpu.pipeline_mode<synchronous>, transform_indices = @transform_4, window_bounds = array<i64: 3, 2, 192>}, {transform_indices = @transform_5, window_bounds = array<i64: 1, 2, 128>}, {transform_indices = @transform_6, window_bounds = array<i64: 1, 2, 128>}]} {
    %cst = arith.constant 0.000000e+00 : f32
    %0 = vector.broadcast %cst : f32 to vector<2x128xf32>
    %c0 = arith.constant 0 : index
    %c0_0 = arith.constant 0 : index
    %c0_1 = arith.constant 0 : index
    %c0_2 = arith.constant 0 : index
    %1 = vector.load %arg1[%c0, %c0_0, %c0_1, %c0_2] : memref<1x3x2x192xf32, #tpu.memory_space<vmem>>, vector<1x2x1x192xf32>
    %2 = vector.shape_cast %1 : vector<1x2x1x192xf32> to vector<2x192xf32>
    %c0_3 = arith.constant 0 : index
    %c0_4 = arith.constant 0 : index
    %3 = vector.load %arg3[%c0_3, %c0_4] : memref<1x192xf32, #tpu.memory_space<vmem>>, vector<1x192xf32>
    %4 = vector.broadcast %3 : vector<1x192xf32> to vector<2x192xf32>
    %5 = arith.mulf %2, %4 : vector<2x192xf32>
    %c0_5 = arith.constant 0 : index
    %c0_6 = arith.constant 0 : index
    %6 = vector.load %arg4[%c0_5, %c0_6] : memref<1x192xf32, #tpu.memory_space<vmem>>, vector<1x192xf32>
    %7 = vector.broadcast %6 : vector<1x192xf32> to vector<2x192xf32>
    %8 = arith.addf %5, %7 : vector<2x192xf32>
    %cst_7 = arith.constant 0.000000e+00 : f32
    %9 = vector.broadcast %cst_7 : f32 to vector<2x192xf32>
    %10 = arith.cmpf ogt, %8, %9 : vector<2x192xf32>
    %cst_8 = arith.constant 2.000000e-01 : f32
    %11 = vector.broadcast %cst_8 : f32 to vector<2x192xf32>
    %12 = arith.mulf %11, %8 : vector<2x192xf32>
    %13 = arith.select %10, %8, %12 : vector<2x192xi1>, vector<2x192xf32>
    %c0_9 = arith.constant 0 : index
    %c0_10 = arith.constant 0 : index
    %c0_11 = arith.constant 0 : index
    %14 = vector.load %arg5[%c0_9, %c0_10, %c0_11] : memref<3x2x192xf32, #tpu.memory_space<vmem>>, vector<2x1x192xf32>
    %15 = vector.shape_cast %14 : vector<2x1x192xf32> to vector<2x192xf32>
    %16 = arith.mulf %13, %15 : vector<2x192xf32>
    %17 = arith.truncf %16 : vector<2x192xf32> to vector<2x192xbf16>
    %c0_12 = arith.constant 0 : index
    %c0_13 = arith.constant 0 : index
    %c0_14 = arith.constant 0 : index
    %18 = vector.load %arg2[%c0_12, %c0_13, %c0_14] : memref<3x192x128xbf16, #tpu.memory_space<vmem>>, vector<1x192x128xbf16>
    %19 = vector.shape_cast %18 : vector<1x192x128xbf16> to vector<192x128xbf16>
    %cst_15 = arith.constant dense<0.000000e+00> : vector<2x128xf32>
    %20 = tpu.matmul %17, %19, %cst_15 {dimension_numbers = #tpu.dot_dimension_numbers<[1], [0], [0], [1], [0, 0, 1, 1], [], []>} : vector<2x192xbf16>, vector<192x128xbf16>, vector<2x128xf32> -> vector<2x128xf32>
    %21 = arith.addf %0, %20 : vector<2x128xf32>
    %c0_16 = arith.constant 0 : index
    %c0_17 = arith.constant 0 : index
    %c1 = arith.constant 1 : index
    %c0_18 = arith.constant 0 : index
    %22 = vector.load %arg1[%c0_16, %c0_17, %c1, %c0_18] : memref<1x3x2x192xf32, #tpu.memory_space<vmem>>, vector<1x2x1x192xf32>
    %23 = vector.shape_cast %22 : vector<1x2x1x192xf32> to vector<2x192xf32>
    %c0_19 = arith.constant 0 : index
    %c0_20 = arith.constant 0 : index
    %24 = vector.load %arg3[%c0_19, %c0_20] : memref<1x192xf32, #tpu.memory_space<vmem>>, vector<1x192xf32>
    %25 = vector.broadcast %24 : vector<1x192xf32> to vector<2x192xf32>
    %26 = arith.mulf %23, %25 : vector<2x192xf32>
    %c0_21 = arith.constant 0 : index
    %c0_22 = arith.constant 0 : index
    %27 = vector.load %arg4[%c0_21, %c0_22] : memref<1x192xf32, #tpu.memory_space<vmem>>, vector<1x192xf32>
    %28 = vector.broadcast %27 : vector<1x192xf32> to vector<2x192xf32>
    %29 = arith.addf %26, %28 : vector<2x192xf32>
    %cst_23 = arith.constant 0.000000e+00 : f32
    %30 = vector.broadcast %cst_23 : f32 to vector<2x192xf32>
    %31 = arith.cmpf ogt, %29, %30 : vector<2x192xf32>
    %cst_24 = arith.constant 2.000000e-01 : f32
    %32 = vector.broadcast %cst_24 : f32 to vector<2x192xf32>
    %33 = arith.mulf %32, %29 : vector<2x192xf32>
    %34 = arith.select %31, %29, %33 : vector<2x192xi1>, vector<2x192xf32>
    %c0_25 = arith.constant 0 : index
    %c1_26 = arith.constant 1 : index
    %c0_27 = arith.constant 0 : index
    %35 = vector.load %arg5[%c0_25, %c1_26, %c0_27] : memref<3x2x192xf32, #tpu.memory_space<vmem>>, vector<2x1x192xf32>
    %36 = vector.shape_cast %35 : vector<2x1x192xf32> to vector<2x192xf32>
    %37 = arith.mulf %34, %36 : vector<2x192xf32>
    %38 = arith.truncf %37 : vector<2x192xf32> to vector<2x192xbf16>
    %c1_28 = arith.constant 1 : index
    %c0_29 = arith.constant 0 : index
    %c0_30 = arith.constant 0 : index
    %39 = vector.load %arg2[%c1_28, %c0_29, %c0_30] : memref<3x192x128xbf16, #tpu.memory_space<vmem>>, vector<1x192x128xbf16>
    %40 = vector.shape_cast %39 : vector<1x192x128xbf16> to vector<192x128xbf16>
    %cst_31 = arith.constant dense<0.000000e+00> : vector<2x128xf32>
    %41 = tpu.matmul %38, %40, %cst_31 {dimension_numbers = #tpu.dot_dimension_numbers<[1], [0], [0], [1], [0, 0, 1, 1], [], []>} : vector<2x192xbf16>, vector<192x128xbf16>, vector<2x128xf32> -> vector<2x128xf32>
    %42 = arith.addf %21, %41 : vector<2x128xf32>
    %c0_32 = arith.constant 0 : index
    %c1_33 = arith.constant 1 : index
    %c0_34 = arith.constant 0 : index
    %c0_35 = arith.constant 0 : index
    %43 = vector.load %arg1[%c0_32, %c1_33, %c0_34, %c0_35] : memref<1x3x2x192xf32, #tpu.memory_space<vmem>>, vector<1x2x1x192xf32>
    %44 = vector.shape_cast %43 : vector<1x2x1x192xf32> to vector<2x192xf32>
    %c0_36 = arith.constant 0 : index
    %c0_37 = arith.constant 0 : index
    %45 = vector.load %arg3[%c0_36, %c0_37] : memref<1x192xf32, #tpu.memory_space<vmem>>, vector<1x192xf32>
    %46 = vector.broadcast %45 : vector<1x192xf32> to vector<2x192xf32>
    %47 = arith.mulf %44, %46 : vector<2x192xf32>
    %c0_38 = arith.constant 0 : index
    %c0_39 = arith.constant 0 : index
    %48 = vector.load %arg4[%c0_38, %c0_39] : memref<1x192xf32, #tpu.memory_space<vmem>>, vector<1x192xf32>
    %49 = vector.broadcast %48 : vector<1x192xf32> to vector<2x192xf32>
    %50 = arith.addf %47, %49 : vector<2x192xf32>
    %cst_40 = arith.constant 0.000000e+00 : f32
    %51 = vector.broadcast %cst_40 : f32 to vector<2x192xf32>
    %52 = arith.cmpf ogt, %50, %51 : vector<2x192xf32>
    %cst_41 = arith.constant 2.000000e-01 : f32
    %53 = vector.broadcast %cst_41 : f32 to vector<2x192xf32>
    %54 = arith.mulf %53, %50 : vector<2x192xf32>
    %55 = arith.select %52, %50, %54 : vector<2x192xi1>, vector<2x192xf32>
    %c1_42 = arith.constant 1 : index
    %c0_43 = arith.constant 0 : index
    %c0_44 = arith.constant 0 : index
    %56 = vector.load %arg5[%c1_42, %c0_43, %c0_44] : memref<3x2x192xf32, #tpu.memory_space<vmem>>, vector<2x1x192xf32>
    %57 = vector.shape_cast %56 : vector<2x1x192xf32> to vector<2x192xf32>
    %58 = arith.mulf %55, %57 : vector<2x192xf32>
    %59 = arith.truncf %58 : vector<2x192xf32> to vector<2x192xbf16>
    %c2 = arith.constant 2 : index
    %c0_45 = arith.constant 0 : index
    %c0_46 = arith.constant 0 : index
    %60 = vector.load %arg2[%c2, %c0_45, %c0_46] : memref<3x192x128xbf16, #tpu.memory_space<vmem>>, vector<1x192x128xbf16>
    %61 = vector.shape_cast %60 : vector<1x192x128xbf16> to vector<192x128xbf16>
    %cst_47 = arith.constant dense<0.000000e+00> : vector<2x128xf32>
    %62 = tpu.matmul %59, %61, %cst_47 {dimension_numbers = #tpu.dot_dimension_numbers<[1], [0], [0], [1], [0, 0, 1, 1], [], []>} : vector<2x192xbf16>, vector<192x128xbf16>, vector<2x128xf32> -> vector<2x128xf32>
    %63 = arith.addf %42, %62 : vector<2x128xf32>
    %cst_48 = arith.constant dense<0.000000e+00> : vector<128xf32>
    %64 = vector.multi_reduction <add>, %63, %cst_48 [0] : vector<2x128xf32> to vector<128xf32>
    %65 = vector.shape_cast %64 : vector<128xf32> to vector<1x128xf32>
    %c0_49 = arith.constant 0 : index
    %c0_50 = arith.constant 0 : index
    %c0_51 = arith.constant 0 : index
    %66 = vector.load %arg7[%c0_49, %c0_50, %c0_51] : memref<1x2x128xf32, #tpu.memory_space<vmem>>, vector<1x1x128xf32>
    %67 = vector.shape_cast %66 : vector<1x1x128xf32> to vector<1x128xf32>
    %68 = vector.shape_cast %65 : vector<1x128xf32> to vector<1x1x128xf32>
    tpu.vector_store %arg7[%c0_49, %c0_50, %c0_51], %68 {strides = array<i32>} : memref<1x2x128xf32, #tpu.memory_space<vmem>>, vector<1x1x128xf32>,
    %69 = arith.mulf %63, %63 : vector<2x128xf32>
    %cst_52 = arith.constant dense<0.000000e+00> : vector<128xf32>
    %70 = vector.multi_reduction <add>, %69, %cst_52 [0] : vector<2x128xf32> to vector<128xf32>
    %71 = vector.shape_cast %70 : vector<128xf32> to vector<1x128xf32>
    %c0_53 = arith.constant 0 : index
    %c1_54 = arith.constant 1 : index
    %c0_55 = arith.constant 0 : index
    %72 = vector.load %arg7[%c0_53, %c1_54, %c0_55] : memref<1x2x128xf32, #tpu.memory_space<vmem>>, vector<1x1x128xf32>
    %73 = vector.shape_cast %72 : vector<1x1x128xf32> to vector<1x128xf32>
    %74 = vector.shape_cast %71 : vector<1x128xf32> to vector<1x1x128xf32>
    tpu.vector_store %arg7[%c0_53, %c1_54, %c0_55], %74 {strides = array<i32>} : memref<1x2x128xf32, #tpu.memory_space<vmem>>, vector<1x1x128xf32>,
    %c0_56 = arith.constant 0 : index
    %c0_57 = arith.constant 0 : index
    %c0_58 = arith.constant 0 : index
    %75 = vector.load %arg6[%c0_56, %c0_57, %c0_58] : memref<1x2x128xf32, #tpu.memory_space<vmem>>, vector<1x2x128xf32>
    %76 = vector.shape_cast %75 : vector<1x2x128xf32> to vector<2x128xf32>
    %77 = vector.shape_cast %63 : vector<2x128xf32> to vector<1x2x128xf32>
    tpu.vector_store %arg6[%c0_56, %c0_57, %c0_58], %77 {strides = array<i32>} : memref<1x2x128xf32, #tpu.memory_space<vmem>>, vector<1x2x128xf32>,
    return
  }
  func.func @transform_0(%arg0: i32) -> (i32, i32, i32, i32) {
    %c0_i32 = arith.constant 0 : i32
    %c0_i32_0 = arith.constant 0 : i32
    %c0_i32_1 = arith.constant 0 : i32
    %c0_i32_2 = arith.constant 0 : i32
    return %arg0, %c0_i32, %c0_i32_0, %c0_i32_1 : i32, i32, i32, i32
  }
  func.func @transform_1(%arg0: i32) -> (i32, i32, i32) {
    %c0_i32 = arith.constant 0 : i32
    %c0_i32_0 = arith.constant 0 : i32
    %c0_i32_1 = arith.constant 0 : i32
    %c0_i32_2 = arith.constant 0 : i32
    return %c0_i32, %c0_i32_0, %c0_i32_1 : i32, i32, i32
  }
  func.func @transform_2(%arg0: i32) -> (i32, i32) {
    %c0_i32 = arith.constant 0 : i32
    %c0_i32_0 = arith.constant 0 : i32
    %c0_i32_1 = arith.constant 0 : i32
    return %c0_i32, %c0_i32_0 : i32, i32
  }
  func.func @transform_3(%arg0: i32) -> (i32, i32) {
    %c0_i32 = arith.constant 0 : i32
    %c0_i32_0 = arith.constant 0 : i32
    %c0_i32_1 = arith.constant 0 : i32
    return %c0_i32, %c0_i32_0 : i32, i32
  }
  func.func @transform_4(%arg0: i32) -> (i32, i32, i32) {
    %c0_i32 = arith.constant 0 : i32
    %c0_i32_0 = arith.constant 0 : i32
    %c0_i32_1 = arith.constant 0 : i32
    %c0_i32_2 = arith.constant 0 : i32
    return %c0_i32, %c0_i32_0, %c0_i32_1 : i32, i32, i32
  }
  func.func @transform_5(%arg0: i32) -> (i32, i32, i32) {
    %c0_i32 = arith.constant 0 : i32
    %c0_i32_0 = arith.constant 0 : i32
    %c0_i32_1 = arith.constant 0 : i32
    return %arg0, %c0_i32, %c0_i32_0 : i32, i32, i32
  }
  func.func @transform_6(%arg0: i32) -> (i32, i32, i32) {
    %c0_i32 = arith.constant 0 : i32
    %c0_i32_0 = arith.constant 0 : i32
    %c0_i32_1 = arith.constant 0 : i32
    return %arg0, %c0_i32, %c0_i32_0 : i32, i32, i32
  }
}

</mosaic_0001>

<bundles_post_ra>
// kernel: tile.30
= control target key start
LH: loop header
LB: loop body
LE: loop exit
PB: predicated region body
PF: predicated region fallthrough
CT: control target
= control target key end

     0   :  { %s34_s0 = inlined_call_operand.vmem [shape: f32[8], index: 0, kind: input, shape index: {}]   ;;  %s35_s1 = inlined_call_operand.vmem [shape: f32[18,8], index: 1, kind: output, shape index: {}]  }
   0x1   :  { %v4_v0 = vld [vmem:[%s34_s0] ss:$0 sm:$0xff] }
   0x2   :  { %5 = vst [vmem:[%s35_s1] sm:$0xff] %v4_v0 }
   0x3   :  { %10 = vst [vmem:[%s35_s1 + $0x8] sm:$0xff] %v4_v0 }
   0x4   :  { %11 = vst [vmem:[%s35_s1 + $0x10] sm:$0xff] %v4_v0 }

// kernel: tile.31
= control target key start
LH: loop header
LB: loop body
LE: loop exit
PB: predicated region body
PF: predicated region fallthrough
CT: control target
= control target key end

     0   :  { %s140_s10 = smov 120   ;;  %s141_s11 = smov 104   ;;  %vm4_vm0 = vcmask 64512   ;;  %vm10_vm1 = vcmask 1048512   ;;  %vm16_vm2 = vcmask 982912   ;;  %vm22_vm3 = vcmask 917312   ;;  %s219_s0 = inlined_call_operand.vmem [shape: f32[18,8], index: 0, kind: input, shape index: {}]   ;;  %s220_s1 = inlined_call_operand.vmem [shape: f32[1,144], index: 1, kind: output, shape index: {}]  }
   0x1   :  { %v109_v0 = vld [vmem:[%s219_s0 + $0xf] sm:$0x1]   ;;  %v111_v1 = vld [vmem:[%s219_s0 + $0xd] sm:$0x1]   ;;  %v113_v2 = vld [vmem:[%s219_s0 + $0xb] sm:$0x1]  }
   0x2   :  { %8 = vrot.lane.b32.xlu0 %v109_v0, %s140_s10  ;;  %20 = vrot.lane.b32.xlu1 %v111_v1, %s141_s11  ;;  %s142_s14 = smov 88   ;;  %v110_v3 = vld [vmem:[%s219_s0 + $0xe] sm:$0x1]   ;;  %v112_v4 = vld [vmem:[%s219_s0 + $0xc] sm:$0x1]   ;;  %s143_s19 = smov 112  }
   0x3   :  { %32 = vrot.lane.b32.xlu2 %v113_v2, %s142_s14  ;;  %s144_s20 = smov 96   ;;  %v114_v5 = vld [vmem:[%s219_s0 + $0xa] sm:$0x1]   ;;  %s145_s23 = smov 80   ;;  %v115_v6 = vld [vmem:[%s219_s0 + $0x9] sm:$0x1]  }
   0x4   :  { %v116_v7 = vld [vmem:[%s219_s0 + $0x8] sm:$0x1]   ;;  %s146_s28 = smov 72   ;;  %s147_s29 = smov 64   ;;  %v117_v8 = vld [vmem:[%s219_s0 + $0x7] sm:$0x1]  }
   0x5   :  { %s148_s3 = smov 56   ;;  %v118_v9 = vld [vmem:[%s219_s0 + $0x6] sm:$0x1]   ;;  %v119_v10 = vld [vmem:[%s219_s0 + $0x5] sm:$0x1]   ;;  %s149_s8 = smov 48  }
   0x6   :  { %s150_s9 = smov 40   ;;  %v120_v11 = vld [vmem:[%s219_s0 + $0x4] sm:$0x1]   ;;  %s151_s12 = smov 32   ;;  %v121_v12 = vld [vmem:[%s219_s0 + $0x3] sm:$0x1]  }
   0x7   :  { %v122_v13 = vld [vmem:[%s219_s0 + $0x2] sm:$0x1]   ;;  %s91_s17 = smov 3  ;;  %s152_s18 = smov 24   ;;  %vm28_vm4 = vcmask 851712   ;;  %vm34_vm5 = vcmask 786112  }
   0x8   :  { %v123_v14 = vld [vmem:[%s219_s0 + $0x1] ss:$16 sm:%s91_s17]   ;;  %s154_s22 = smov 8   ;;  %vm40_vm6 = vcmask 720512   ;;  %vm46_vm7 = vcmask 654912   ;;  %vm52_vm8 = vcmask 589312  }
   0x9   :  { %vm58_vm9 = vcmask 523712   ;;  %vm64_vm10 = vcmask 458112   ;;  %vm70_vm11 = vcmask 392512   ;;  %vm76_vm12 = vcmask 326912  }
   0xa   :  { %14 = vrot.lane.b32.xlu0 %v110_v3, %s143_s19  ;;  %26 = vrot.lane.b32.xlu1 %v112_v4, %s144_s20  ;;  %s153_s19 = smov 16   ;;  %vm82_vm13 = vcmask 261312   ;;  %vm88_vm14 = vcmask 195712   ;;  %vm95_vm15 = vcmask 130112  }
   0xb   :  { %38 = vrot.lane.b32.xlu2 %v114_v5, %s145_s23  ;;  %s2_s23 = smov 3 }
   0xc   :  { %v3_v15 = vld [vmem:[%s219_s0] ss:$16 sm:%s2_s23]  }
   0xd   :  { %5 = vst.msk [vmem:[#allocation0] ss:$8 sm:$0x3] %vm4_vm0, %v3_v15  }
  0x12   :  { %44 = vrot.lane.b32.xlu0 %v115_v6, %s146_s28  ;;  %50 = vrot.lane.b32.xlu1 %v116_v7, %s147_s29 }
  0x13   :  { %56 = vrot.lane.b32.xlu2 %v117_v8, %s148_s3 }
  0x1a   :  { %62 = vrot.lane.b32.xlu0 %v118_v9, %s149_s8  ;;  %68 = vrot.lane.b32.xlu1 %v119_v10, %s150_s9 }
  0x1b   :  { %74 = vrot.lane.b32.xlu2 %v120_v11, %s151_s12 }
  0x22   :  { %80 = vrot.lane.b32.xlu0 %v121_v12, %s152_s18  ;;  %86 = vrot.lane.b32.xlu1 %v122_v13, %s153_s19 }
  0x23   :  { %93 = vrot.lane.b32.xlu2 %v123_v14, %s154_s22 }
  0x5d   :  { %v33_v16 = vpop.permute.xlu2 %32  }
  0x65   :  { %v39_v17 = vpop.permute.xlu2 %38  }
  0x6d   :  { %v57_v18 = vpop.permute.xlu2 %56  }
  0x74   :  { %v9_v19 = vpop.permute.xlu0 %8   ;;  %v21_v20 = vpop.permute.xlu1 %20  }
  0x75   :  { %11 = vst.msk [vmem:[#allocation0] sm:$0x1] %vm10_vm1, %v9_v19   ;;  %v75_v21 = vpop.permute.xlu2 %74  }
  0x7c   :  { %v15_v22 = vpop.permute.xlu0 %14   ;;  %v27_v23 = vpop.permute.xlu1 %26  }
  0x7d   :  { %17 = vst.msk [vmem:[#allocation0] sm:$0x1] %vm16_vm2, %v15_v22   ;;  %v94_v24 = vpop.permute.xlu2 %93  }
  0x7e   :  { %23 = vst.msk [vmem:[#allocation0] sm:$0x1] %vm22_vm3, %v21_v20  }
  0x7f   :  { %29 = vst.msk [vmem:[#allocation0] sm:$0x1] %vm28_vm4, %v27_v23  }
  0x80   :  { %35 = vst.msk [vmem:[#allocation0] sm:$0x1] %vm34_vm5, %v33_v16  }
  0x81   :  { %41 = vst.msk [vmem:[#allocation0] sm:$0x1] %vm40_vm6, %v39_v17  }
  0x84   :  { %v45_v25 = vpop.permute.xlu0 %44   ;;  %v51_v26 = vpop.permute.xlu1 %50  }
  0x85   :  { %47 = vst.msk [vmem:[#allocation0] sm:$0x1] %vm46_vm7, %v45_v25  }
  0x86   :  { %53 = vst.msk [vmem:[#allocation0] sm:$0x1] %vm52_vm8, %v51_v26  }
  0x87   :  { %59 = vst.msk [vmem:[#allocation0] sm:$0x1] %vm58_vm9, %v57_v18  }
  0x8c   :  { %v63_v27 = vpop.permute.xlu0 %62   ;;  %v69_v28 = vpop.permute.xlu1 %68  }
  0x8d   :  { %65 = vst.msk [vmem:[#allocation0] sm:$0x1] %vm64_vm10, %v63_v27  }
  0x8e   :  { %71 = vst.msk [vmem:[#allocation0] sm:$0x1] %vm70_vm11, %v69_v28  }
  0x8f   :  { %77 = vst.msk [vmem:[#allocation0] sm:$0x1] %vm76_vm12, %v75_v21  }
  0x94   :  { %v81_v29 = vpop.permute.xlu0 %80   ;;  %v87_v30 = vpop.permute.xlu1 %86  }
  0x95   :  { %83 = vst.msk [vmem:[#allocation0] sm:$0x1] %vm82_vm13, %v81_v29  }
  0x96   :  { %89 = vst.msk [vmem:[#allocation0] sm:$0x1] %vm88_vm14, %v87_v30  }
  0x97   :  { %96 = vst.msk [vmem:[#allocation0] ss:$8 sm:$0x3] %vm95_vm15, %v94_v24  }
  0x9e   :  { %v99_v31 = vld [vmem:[#allocation0] sm:$0x1]  ;;  %v104_v32 = vld [vmem:[#allocation0 + $0x8] sm:$0x1] }
  0x9f   :  { %102 = vst [vmem:[%s220_s1] sm:$0x1] %v99_v31 }
  0xa0   :  { %124 = vst [vmem:[%s220_s1 + $0x1] sm:$0x1] %v104_v32 }

// kernel: tile.26
= control target key start
LH: loop header
LB: loop body
LE: loop exit
PB: predicated region body
PF: predicated region fallthrough
CT: control target
= control target key end

     0   :  { %s26_s0 = inlined_call_operand.<no memory space> [shape: f32[], index: 0, kind: input, shape index: {}]   ;;  %s27_s1 = inlined_call_operand.vmem [shape: f32[1,144], index: 1, kind: output, shape index: {}]  }
   0x1   :  { %v2_v0 = vstv %s26_s0 }
   0x2   :  { %3 = vst [vmem:[%s27_s1] sm:$0x1] %v2_v0 }
   0x3   :  { %6 = vst [vmem:[%s27_s1 + $0x1] sm:$0x1] %v2_v0 }

// kernel: discriminator_forward.4
= control target key start
LH: loop header
LB: loop body
LE: loop exit
PB: predicated region body
PF: predicated region fallthrough
CT: control target
= control target key end

     0   :  { %s925_s9 = smov 0   ;;  %s1125_s0 = inlined_call_operand.vmem [shape: f32[2,17,2,102], index: 0, kind: input, shape index: {}]   ;;  %s1126_s1 = inlined_call_operand.vmem [shape: bf16[3,102,128], index: 1, kind: input, shape index: {}]   ;;  %s1127_s2 = inlined_call_operand.vmem [shape: f32[2,18,144], index: 2, kind: output, shape index: {}]  }
   0x1 LB: > { %s744_s10 = sadd.s32 4294967295, %s906_s9   ;;  %p748_p0 = scmp.ge.s32.totalorder %s906_s9, 1  ;;  %s906_s9 = sphi %s925_s9, %s12_s9  }
   0x2   : > { %p112_p1 = scmp.lt.s32.totalorder %s906_s9, 3 }
   0x4   : > { %p113_p2 = pnand %p748_p0, %p112_p1 }
   0x5   : > { %p134_p3 = scmp.lt.s32.totalorder (!%p113_p2), %s744_s10, 1 }
   0x6   : > { %116 = sbr.rel (%p113_p2) target bundleno = 332 (0x14c), region = 28 }
   0xb   : > { %v763_v0 = vld [vmem:[%s1126_s1 + $0x64] sm:$0x7]  ;;  %v189_v1 = vld [vmem:[%s1126_s1 + $0x30] sm:$0x7]  ;;  %v842_v4 = vld [vmem:[%s1126_s1 + $0x98] sm:$0x7] }
   0xc   : > { %v329_v2 = vunpack.c.l.b16 %v763_v0  ;;  %v451_v3 = vunpack.c.l.b16 %v189_v1  ;;  %vm347_vm0 = vcmask 1042432   ;;  %v618_v5 = vunpack.c.l.b16 %v842_v4  ;;  %s1129_s10 = smov (!%p134_p3, %s744_s10), 1  ;;  %v881_v12 = vld [vmem:[%s1126_s1 + $0x5c] sm:$0xff]  ;;  %v875_v13 = vld [vmem:[%s1126_s1 + $0x28] sm:$0xff]  ;;  %v887_v14 = vld [vmem:[%s1126_s1 + $0x90] sm:$0xff] }
   0xd   : > { %s888_s17 = smul.u32 34, %s1129_s10  ;;  %v880_v15 = vld [vmem:[%s1126_s1 + $0x54] sm:$0xff]  ;;  %v874_v16 = vld [vmem:[%s1126_s1 + $0x20] sm:$0xff]  ;;  %vm269_vm1 = vcmask 1041409   ;;  %v886_v20 = vld [vmem:[%s1126_s1 + $0x88] sm:$0xff]  ;;  %vm272_vm2 = vcmask 1042434  }
   0xe   : > { %v336_v6 = vpack.c.b16 %v329_v2, %v329_v2  ;;  %v458_v7 = vpack.c.b16 %v451_v3, %v451_v3  ;;  %v625_v8 = vpack.c.b16 %v618_v5, %v618_v5  ;;  %vm275_vm3 = vcmask 1043459   ;;  %v879_v50 = vld [vmem:[%s1126_s1 + $0x4c] sm:$0xff]  ;;  %v873_v51 = vld [vmem:[%s1126_s1 + $0x18] sm:$0xff]  ;;  %v885_v56 = vld [vmem:[%s1126_s1 + $0x80] sm:$0xff] }
   0xf   : > { %s957_s26 = scalar_lea.vmem %s1125_s0, %s888_s17  ;;  %vm278_vm4 = vcmask 1044484   ;;  %vm281_vm5 = vcmask 1045509   ;;  %vm284_vm6 = vcmask 1046534   ;;  %vm287_vm7 = vcmask 1047559   ;;  %v878_v5 = vld [vmem:[%s1126_s1 + $0x44] sm:$0xff] }
  0x10   : > { %v349_v9 = vsel %vm347_vm0, %v336_v6, 0  ;;  %v469_v10 = vsel %vm347_vm0, %v458_v7, 0  ;;  %v636_v11 = vsel %vm347_vm0, %v625_v8, 0  ;;  %v190_v17 = vld [vmem:[%s957_s26 + $0x1] sm:$0x1]  ;;  %v872_v6 = vld [vmem:[%s1126_s1 + $0x10] sm:$0xff] }
  0x11   : > { %352 = vmatpush.bf16.msra.mxu0 %v349_v9  ;;  %472 = vmatpush.bf16.msra.mxu1 %v469_v10  ;;  %v191_v18 = vld [vmem:[%s957_s26 + $0x3] sm:$0x1]  ;;  %v192_v19 = vld [vmem:[%s957_s26 + $0x5] sm:$0x1]  ;;  %v193_v21 = vld [vmem:[%s957_s26 + $0x7] sm:$0x1]  ;;  %v206_v34 = vpack.c.bf16 %v190_v17, %v190_v17 }
  0x12   : > { %639 = vmatpush.bf16.msra.mxu2 %v636_v11  ;;  %v194_v22 = vld [vmem:[%s957_s26 + $0x9] sm:$0x1]  ;;  %v195_v23 = vld [vmem:[%s957_s26 + $0xb] sm:$0x1]  ;;  %v207_v24 = vpack.c.bf16 %v191_v18, %v191_v18  ;;  %v208_v25 = vpack.c.bf16 %v192_v19, %v192_v19  ;;  %v196_v26 = vld [vmem:[%s957_s26 + $0xd] sm:$0x1]  ;;  %v209_v29 = vpack.c.bf16 %v193_v21, %v193_v21 }
  0x13   : > { %v197_v27 = vld [vmem:[%s957_s26 + $0xf] sm:$0x1]  ;;  %v198_v28 = vld [vmem:[%s957_s26 + $0x11] sm:$0x1]  ;;  %v210_v30 = vpack.c.bf16 %v194_v22, %v194_v22  ;;  %v199_v31 = vld [vmem:[%s957_s26 + $0x13] sm:$0x1]  ;;  %v211_v35 = vpack.c.bf16 %v195_v23, %v195_v23  ;;  %v212_v36 = vpack.c.bf16 %v196_v26, %v196_v26  ;;  %v252_v57 = vunpack.c.l.b16 %v206_v34 }
  0x14   : > { %v200_v32 = vld [vmem:[%s957_s26 + $0x15] sm:$0x1]  ;;  %v201_v33 = vld [vmem:[%s957_s26 + $0x17] sm:$0x1]  ;;  %v213_v37 = vpack.c.bf16 %v197_v27, %v197_v27  ;;  %v202_v38 = vld [vmem:[%s957_s26 + $0x19] sm:$0x1]  ;;  %v214_v41 = vpack.c.bf16 %v198_v28, %v198_v28  ;;  %v215_v42 = vpack.c.bf16 %v199_v31, %v199_v31  ;;  %v253_v48 = vunpack.c.l.b16 %v207_v24 }
  0x15   : > { %353 = vmatpush.bf16.msra.mxu0 %v881_v12  ;;  %473 = vmatpush.bf16.msra.mxu1 %v875_v13  ;;  %v203_v39 = vld [vmem:[%s957_s26 + $0x1b] sm:$0x1]  ;;  %v204_v40 = vld [vmem:[%s957_s26 + $0x1d] sm:$0x1]  ;;  %v216_v43 = vpack.c.bf16 %v200_v32, %v200_v32  ;;  %v217_v44 = vpack.c.bf16 %v201_v33, %v201_v33  ;;  %v205_v45 = vld [vmem:[%s957_s26 + $0x1f] sm:$0x1]  ;;  %v218_v46 = vpack.c.bf16 %v202_v38, %v202_v38  ;;  %v254_v49 = vunpack.c.l.b16 %v208_v25 }
  0x16   : > { %640 = vmatpush.bf16.msra.mxu2 %v887_v14  ;;  %v219_v47 = vpack.c.bf16 %v203_v39, %v203_v39  ;;  %v220_v52 = vpack.c.bf16 %v204_v40, %v204_v40  ;;  %v221_v53 = vpack.c.bf16 %v205_v45, %v205_v45  ;;  %v255_v54 = vunpack.c.l.b16 %v209_v29  ;;  %v884_v11 = vld [vmem:[%s1126_s1 + $0x78] sm:$0xff]  ;;  %v871_v18 = vld [vmem:[%s1126_s1 + $0x8] sm:$0xff]  ;;  %v146_v23 = vld [vmem:[%s957_s26 + $0x2] sm:$0x1] }
  0x17   : > { %v256_v55 = vunpack.c.l.b16 %v210_v30  ;;  %v257_v58 = vunpack.c.l.b16 %v211_v35  ;;  %v258_v59 = vunpack.c.l.b16 %v212_v36  ;;  %v261_v60 = vunpack.c.l.b16 %v215_v42  ;;  %v877_v17 = vld [vmem:[%s1126_s1 + $0x3c] sm:$0xff]  ;;  %v147_v28 = vld [vmem:[%s957_s26 + $0x4] sm:$0x1]  ;;  %v148_v29 = vld [vmem:[%s957_s26 + $0x6] sm:$0x1] }
  0x18   : > { %v259_v61 = vunpack.c.l.b16 %v213_v37  ;;  %v262_v62 = vunpack.c.l.b16 %v216_v43  ;;  %v263_v63 = vunpack.c.l.b16 %v217_v44  ;;  %v264_v0 = vunpack.c.l.b16 %v218_v46  ;;  %v149_v34 = vld [vmem:[%s957_s26 + $0x8] sm:$0x1]  ;;  %v150_v35 = vld [vmem:[%s957_s26 + $0xa] sm:$0x1]  ;;  %v883_v36 = vld [vmem:[%s1126_s1 + $0x70] sm:$0xff] }
  0x19   : > { %354 = vmatpush.bf16.msra.mxu0 %v880_v15  ;;  %474 = vmatpush.bf16.msra.mxu1 %v874_v16  ;;  %v260_v1 = vunpack.c.l.b16 %v214_v41  ;;  %v265_v2 = vunpack.c.l.b16 %v219_v47  ;;  %v268_v3 = vrot.slane %v253_v48, 7  ;;  %v271_v4 = vrot.slane %v254_v49, 6  ;;  %v1006_v16 = vld [vmem:[%s957_s26] sm:$0x1]  ;;  %v151_v39 = vld [vmem:[%s957_s26 + $0xc] sm:$0x1] }
  0x1a   : > { %641 = vmatpush.bf16.msra.mxu2 %v886_v20  ;;  %v266_v7 = vunpack.c.l.b16 %v220_v52  ;;  %v999_v8 = vunpack.c.l.b16 %v221_v53  ;;  %v274_v9 = vrot.slane %v255_v54, 5  ;;  %v277_v10 = vrot.slane %v256_v55, 4  ;;  %v152_v40 = vld [vmem:[%s957_s26 + $0xe] sm:$0x1]  ;;  %v154_v45 = vld [vmem:[%s957_s26 + $0x12] sm:$0x1] }
  0x1b   : > { %v270_v12 = vsel %vm269_vm1, %v268_v3, %v252_v57  ;;  %v280_v13 = vrot.slane %v257_v58, 3  ;;  %v289_v14 = vrot.slane %v261_v60, 7  ;;  %v291_v15 = vrot.slane %v262_v62, 6  ;;  %v155_v46 = vld [vmem:[%s957_s26 + $0x14] sm:$0x1]  ;;  %v870_v58 = vld [vmem:[%s1126_s1] sm:$0xff] }
  0x1c   : > { %v273_v19 = vsel %vm272_vm2, %v271_v4, %v270_v12  ;;  %v283_v20 = vrot.slane %v258_v59, 2  ;;  %v293_v21 = vrot.slane %v263_v63, 5  ;;  %v295_v22 = vrot.slane %v264_v0, 4  ;;  %v156_v47 = vld [vmem:[%s957_s26 + $0x16] sm:$0x1]  ;;  %v882_v63 = vld [vmem:[%s1126_s1 + $0x68] sm:$0xff] }
  0x1d   : > { %355 = vmatpush.bf16.msra.mxu0 %v879_v50  ;;  %475 = vmatpush.bf16.msra.mxu1 %v873_v51  ;;  %v276_v24 = vsel %vm275_vm3, %v274_v9, %v273_v19  ;;  %v286_v25 = vrot.slane %v259_v61, 1  ;;  %v290_v26 = vsel %vm269_vm1, %v289_v14, %v260_v1  ;;  %v297_v27 = vrot.slane %v265_v2, 3  ;;  %v153_v52 = vld [vmem:[%s957_s26 + $0x10] sm:$0x1]  ;;  %v157_v53 = vld [vmem:[%s957_s26 + $0x18] sm:$0x1] }
  0x1e   : > { %642 = vmatpush.bf16.msra.mxu2 %v885_v56  ;;  %v279_v30 = vsel %vm278_vm4, %v277_v10, %v276_v24  ;;  %v292_v31 = vsel %vm272_vm2, %v291_v15, %v290_v26  ;;  %v299_v32 = vrot.slane %v266_v7, 2  ;;  %v301_v33 = vrot.slane %v999_v8, 1  ;;  %v158_v54 = vld [vmem:[%s957_s26 + $0x1a] sm:$0x1]  ;;  %v159_v60 = vld [vmem:[%s957_s26 + $0x1c] sm:$0x1] }
  0x1f   : > { %v282_v37 = vsel %vm281_vm5, %v280_v13, %v279_v30  ;;  %v294_v38 = vsel %vm275_vm3, %v293_v21, %v292_v31  ;;  %v161_v41 = vpack.c.bf16 %v1006_v16, %v1006_v16  ;;  %v162_v42 = vpack.c.bf16 %v146_v23, %v146_v23  ;;  %v876_v57 = vld [vmem:[%s1126_s1 + $0x34] sm:$0xff]  ;;  %v160_v1 = vld [vmem:[%s957_s26 + $0x1e] sm:$0x1] }
  0x20   : > { %v285_v43 = vsel %vm284_vm6, %v283_v20, %v282_v37  ;;  %v296_v44 = vsel %vm278_vm4, %v295_v22, %v294_v38  ;;  %v163_v48 = vpack.c.bf16 %v147_v28, %v147_v28  ;;  %v164_v49 = vpack.c.bf16 %v148_v29, %v148_v29  ;;  %v814_v37 = vld [vmem:[%s957_s26 + $0x2] sm:$0x1] }
  0x21   : > { %356 = vmatpush.bf16.msra.mxu0 %v878_v5  ;;  %476 = vmatpush.bf16.msra.mxu1 %v872_v6  ;;  %v288_v50 = vsel %vm287_vm7, %v286_v25, %v285_v43  ;;  %v298_v51 = vsel %vm281_vm5, %v297_v27, %v296_v44  ;;  %v165_v55 = vpack.c.bf16 %v149_v34, %v149_v34  ;;  %vm343_vm8 = vcmask 834560   ;;  %v816_v43 = vld [vmem:[%s957_s26 + $0x6] sm:$0x1] }
  0x22   : > { %643 = vmatpush.bf16.msra.mxu2 %v884_v11  ;;  %v166_v56 = vpack.c.bf16 %v150_v35, %v150_v35  ;;  %v300_v59 = vsel %vm284_vm6, %v299_v32, %v298_v51  ;;  %v167_v61 = vpack.c.bf16 %v151_v39, %v151_v39  ;;  %v168_v62 = vpack.c.bf16 %v152_v40, %v152_v40 }
  0x23   : > { %v302_v0 = vsel %vm287_vm7, %v301_v33, %v300_v59  ;;  %v170_v2 = vpack.c.bf16 %v154_v45, %v154_v45  ;;  %v171_v3 = vpack.c.bf16 %v155_v46, %v155_v46  ;;  %v172_v4 = vpack.c.bf16 %v156_v47, %v156_v47  ;;  %v823_v59 = vld [vmem:[%s957_s26 + $0x14] sm:$0x1] }
  0x24   : > { %v303_v5 = vpack.c.b16 %v302_v0, %v288_v50  ;;  %v169_v6 = vpack.c.bf16 %v153_v52, %v153_v52  ;;  %v173_v7 = vpack.c.bf16 %v157_v53, %v157_v53  ;;  %v174_v8 = vpack.c.bf16 %v158_v54, %v158_v54  ;;  %v819_v53 = vld [vmem:[%s957_s26 + $0xc] sm:$0x1]  ;;  %v820_v54 = vld [vmem:[%s957_s26 + $0xe] sm:$0x1] }
  0x25   : > { %357 = vmatpush.bf16.msra.mxu0 %v877_v17  ;;  %477 = vmatpush.bf16.msra.mxu1 %v871_v18  ;;  %v175_v9 = vpack.c.bf16 %v159_v60, %v159_v60  ;;  %v382_v10 = vunpack.c.l.b16 %v162_v42  ;;  %v383_v11 = vunpack.c.l.b16 %v163_v48  ;;  %v384_v12 = vunpack.c.l.b16 %v164_v49  ;;  %v815_v42 = vld [vmem:[%s957_s26 + $0x4] sm:$0x1]  ;;  %v817_v48 = vld [vmem:[%s957_s26 + $0x8] sm:$0x1]  ;;  %v818_v49 = vld [vmem:[%s957_s26 + $0xa] sm:$0x1] }
  0x26   : > { %644 = vmatpush.bf16.msra.mxu2 %v883_v36  ;;  %v176_v13 = vpack.c.bf16 %v160_v1, %v160_v1  ;;  %v381_v14 = vunpack.c.l.b16 %v161_v41  ;;  %v385_v15 = vunpack.c.l.b16 %v165_v55  ;;  %v386_v16 = vunpack.c.l.b16 %v166_v56  ;;  %v824_v60 = vld [vmem:[%s957_s26 + $0x16] sm:$0x1]  ;;  %v822_v1 = vld [vmem:[%s957_s26 + $0x12] sm:$0x1] }
  0x27   : > { %v387_v17 = vunpack.c.l.b16 %v167_v61  ;;  %v390_v18 = vunpack.c.l.b16 %v170_v2  ;;  %v391_v19 = vunpack.c.l.b16 %v171_v3  ;;  %v392_v20 = vunpack.c.l.b16 %v172_v4  ;;  %v825_v2 = vld [vmem:[%s957_s26 + $0x18] sm:$0x1]  ;;  %v826_v3 = vld [vmem:[%s957_s26 + $0x1a] sm:$0x1] }
  0x28   : > { %v388_v21 = vunpack.c.l.b16 %v168_v62  ;;  %v389_v22 = vunpack.c.l.b16 %v169_v6  ;;  %v393_v23 = vunpack.c.l.b16 %v173_v7  ;;  %v394_v24 = vunpack.c.l.b16 %v174_v8  ;;  %v827_v8 = vld [vmem:[%s957_s26 + $0x1c] sm:$0x1] }
  0x29   : > { %358 = vmatpush.bf16.msra.mxu0 %v876_v57  ;;  %478 = vmatpush.bf16.msra.mxu1 %v870_v58  ;;  %v395_v25 = vunpack.c.l.b16 %v175_v9  ;;  %v397_v26 = vrot.slane %v382_v10, 7  ;;  %v399_v27 = vrot.slane %v383_v11, 6  ;;  %v401_v28 = vrot.slane %v384_v12, 5  ;;  %v821_v58 = vld [vmem:[%s957_s26 + $0x10] sm:$0x1] }
  0x2a   : > { %645 = vmatpush.bf16.msra.mxu2 %v882_v63  ;;  %v396_v29 = vunpack.c.l.b16 %v176_v13  ;;  %v403_v30 = vrot.slane %v385_v15, 4  ;;  %v405_v31 = vrot.slane %v386_v16, 3  ;;  %v411_v32 = vrot.slane %v390_v18, 7  ;;  %v828_v9 = vld [vmem:[%s957_s26 + $0x1e] sm:$0x1] }
  0x2b   : > { %v398_v33 = vsel %vm269_vm1, %v397_v26, %v381_v14  ;;  %v413_v34 = vrot.slane %v391_v19, 6  ;;  %v415_v35 = vrot.slane %v392_v20, 5  ;;  %v417_v36 = vrot.slane %v393_v23, 4  ;;  %v829_v13 = vld [vmem:[%s957_s26 + $0x20] sm:$0x1]  ;;  %s889_s26 = smul.u32 48, %s1129_s10 }
  0x2c   : > { %788 = vmatmul.msk.bf16.vlgmr.msra.gmra.mxu0 %vm343_vm8, %v303_v5  ;;  %v400_v38 = vsel %vm272_vm2, %v399_v27, %v398_v33  ;;  %v407_v39 = vrot.slane %v387_v17, 2  ;;  %v412_v40 = vsel %vm269_vm1, %v411_v32, %v389_v22  ;;  %v419_v41 = vrot.slane %v394_v24, 3  ;;  %s909_s10 = smov 8  }
  0x2d   : > { %v402_v44 = vsel %vm275_vm3, %v401_v28, %v400_v38  ;;  %v409_v45 = vrot.slane %v388_v21, 1  ;;  %v414_v46 = vsel %vm272_vm2, %v413_v34, %v412_v40  ;;  %v421_v47 = vrot.slane %v395_v25, 2  ;;  %s1108_s6 = scalar_lea.vmem %s1127_s2, %s889_s26 }
  0x2e   : > { %v404_v50 = vsel %vm278_vm4, %v403_v30, %v402_v44  ;;  %v416_v51 = vsel %vm275_vm3, %v415_v35, %v414_v46  ;;  %v423_v52 = vrot.slane %v396_v29, 1  ;;  %v502_v55 = vpack.c.bf16 %v814_v37, %v814_v37 }
  0x2f   : > { %v406_v56 = vsel %vm281_vm5, %v405_v31, %v404_v50  ;;  %v418_v57 = vsel %vm278_vm4, %v417_v36, %v416_v51  ;;  %v503_v61 = vpack.c.bf16 %v815_v42, %v815_v42  ;;  %v504_v62 = vpack.c.bf16 %v816_v43, %v816_v43 }
  0x30   : > { %v408_v63 = vsel %vm284_vm6, %v407_v39, %v406_v56  ;;  %v420_v0 = vsel %vm281_vm5, %v419_v41, %v418_v57  ;;  %v505_v4 = vpack.c.bf16 %v817_v48, %v817_v48  ;;  %v506_v5 = vpack.c.bf16 %v818_v49, %v818_v49 }
  0x31   : > { %v410_v6 = vsel %vm287_vm7, %v409_v45, %v408_v63  ;;  %v422_v7 = vsel %vm284_vm6, %v421_v47, %v420_v0  ;;  %v507_v10 = vpack.c.bf16 %v819_v53, %v819_v53  ;;  %v508_v11 = vpack.c.bf16 %v820_v54, %v820_v54 }
  0x32   : > { %v424_v12 = vsel %vm287_vm7, %v423_v52, %v422_v7  ;;  %v509_v14 = vpack.c.bf16 %v821_v58, %v821_v58  ;;  %v511_v15 = vpack.c.bf16 %v823_v59, %v823_v59  ;;  %v512_v16 = vpack.c.bf16 %v824_v60, %v824_v60 }
  0x33   : > { %v425_v17 = vpack.c.b16 %v424_v12, %v410_v6  ;;  %v510_v18 = vpack.c.bf16 %v822_v1, %v822_v1  ;;  %v513_v19 = vpack.c.bf16 %v825_v2, %v825_v2  ;;  %v514_v20 = vpack.c.bf16 %v826_v3, %v826_v3 }
  0x34   : > { %v515_v21 = vpack.c.bf16 %v827_v8, %v827_v8  ;;  %v516_v22 = vpack.c.bf16 %v828_v9, %v828_v9  ;;  %v549_v23 = vunpack.c.l.b16 %v503_v61  ;;  %v550_v24 = vunpack.c.l.b16 %v504_v62 }
  0x35   : > { %813 = vmatmul.msk.bf16.vlgmr.msra.gmra.mxu1 %vm343_vm8, %v425_v17  ;;  %v517_v25 = vpack.c.bf16 %v829_v13, %v829_v13  ;;  %v551_v26 = vunpack.c.l.b16 %v505_v4  ;;  %v552_v27 = vunpack.c.l.b16 %v506_v5  ;;  %v553_v28 = vunpack.c.l.b16 %v507_v10 }
  0x36   : > { %v548_v29 = vunpack.c.l.b16 %v502_v55  ;;  %v554_v30 = vunpack.c.l.b16 %v508_v11  ;;  %v557_v31 = vunpack.c.l.b16 %v511_v15  ;;  %v558_v32 = vunpack.c.l.b16 %v512_v16 }
  0x37   : > { %v555_v33 = vunpack.c.l.b16 %v509_v14  ;;  %v556_v34 = vunpack.c.l.b16 %v510_v18  ;;  %v559_v35 = vunpack.c.l.b16 %v513_v19  ;;  %v560_v36 = vunpack.c.l.b16 %v514_v20 }
  0x38   : > { %v561_v37 = vunpack.c.l.b16 %v515_v21  ;;  %v564_v38 = vrot.slane %v549_v23, 7  ;;  %v566_v39 = vrot.slane %v550_v24, 6  ;;  %v568_v40 = vrot.slane %v551_v26, 5 }
  0x39   : > { %v562_v41 = vunpack.c.l.b16 %v516_v22  ;;  %v563_v42 = vunpack.c.l.b16 %v517_v25  ;;  %v570_v43 = vrot.slane %v552_v27, 4  ;;  %v572_v44 = vrot.slane %v553_v28, 3 }
  0x3a   : > { %v565_v45 = vsel %vm269_vm1, %v564_v38, %v548_v29  ;;  %v578_v46 = vrot.slane %v557_v31, 7  ;;  %v580_v47 = vrot.slane %v558_v32, 6  ;;  %v582_v48 = vrot.slane %v559_v35, 5 }
  0x3b   : > { %v567_v49 = vsel %vm272_vm2, %v566_v39, %v565_v45  ;;  %v574_v50 = vrot.slane %v554_v30, 2  ;;  %v584_v51 = vrot.slane %v560_v36, 4  ;;  %v576_v53 = vrot.slane %v555_v33, 1 }
  0x3c   : > { %v569_v52 = vsel %vm275_vm3, %v568_v40, %v567_v49  ;;  %v579_v54 = vsel %vm269_vm1, %v578_v46, %v556_v34  ;;  %v586_v55 = vrot.slane %v561_v37, 3  ;;  %v588_v58 = vrot.slane %v562_v41, 2 }
  0x3d   : > { %v571_v56 = vsel %vm278_vm4, %v570_v43, %v569_v52  ;;  %v581_v57 = vsel %vm272_vm2, %v580_v47, %v579_v54  ;;  %v590_v61 = vrot.slane %v563_v42, 1  ;;  %vm655_vm9 = vcmask 130048  }
  0x3e   : > { %v573_v59 = vsel %vm281_vm5, %v572_v44, %v571_v56  ;;  %v583_v60 = vsel %vm275_vm3, %v582_v48, %v581_v57  ;;  %v908_v5 = vmov 0.0   ;;  %vm664_vm10 = vcmask 1040384  }
  0x3f   : > { %v575_v62 = vsel %vm284_vm6, %v574_v50, %v573_v59  ;;  %v585_v63 = vsel %vm278_vm4, %v584_v51, %v583_v60  ;;  %654 = vst [vmem:[%s1108_s6] sm:$0xff] %v908_v5  ;;  %vm660_vm11 = vcmask 123904   ;;  %vm677_vm12 = vcmask 1047617  }
  0x40   : > { %v577_v0 = vsel %vm287_vm7, %v576_v53, %v575_v62  ;;  %v587_v1 = vsel %vm281_vm5, %v586_v55, %v585_v63  ;;  %656 = vst.msk [vmem:[%s1108_s6 + $0x8] sm:$0xff] %vm655_vm9, %v908_v5  ;;  %vm679_vm13 = vcmask 64513   ;;  %vm685_vm14 = vcmask 1040448  }
  0x41   : > { %v589_v2 = vsel %vm284_vm6, %v588_v58, %v587_v1  ;;  %657 = vst [vmem:[%s1108_s6 + $0x10] sm:$0xff] %v908_v5  ;;  %vm687_vm15 = vcmask 57344   ;;  %vm681_vm0 = vcmask 1047616   ;;  %vm683_vm1 = vcmask 64512  }
  0x42   : > { %v591_v3 = vsel %vm287_vm7, %v590_v61, %v589_v2  ;;  %658 = vst.msk [vmem:[%s1108_s6 + $0x18] sm:$0xff] %vm655_vm9, %v908_v5 }
  0x43   : > { %v592_v4 = vpack.c.b16 %v591_v3, %v577_v0  ;;  %659 = vst [vmem:[%s1108_s6 + $0x20] sm:$0x3] %v908_v5 }
  0x44   : > { %661 = vst.msk [vmem:[%s1108_s6 + $0x28] sm:$0x3] %vm660_vm11, %v908_v5 }
  0x45   : > { %867 = vmatmul.msk.bf16.vlgmr.msra.gmra.mxu2 %vm343_vm8, %v592_v4 }
  0xa9   : > { %v360_v6 = vpop.f32.mrf.mxu0 }
  0xb1   : > { %v362_v12 = vpop.f32.mrf.mxu0 }
  0xb2   : > { %v480_v7 = vpop.f32.mrf.mxu1 }
  0xb3   : > { %v481_v8 = vadd.f32 %v480_v7, %v360_v6 }
  0xba   : > { %v482_v13 = vpop.f32.mrf.mxu1 }
  0xbb   : > { %v483_v14 = vadd.f32 %v482_v13, %v362_v12 }
  0xc8   : > { %v647_v9 = vpop.f32.mrf.mxu2 }
  0xc9   : > { %v652_v10 = vadd.f32 %v647_v9, %v481_v8 }
  0xcb   : > { %v665_v11 = vrot.slane %v652_v10, 7 }
  0xcd   : > { %668 = vrot.lane.b32.xlu0 %v665_v11, %s909_s10 }
  0xd0   : > { %v649_v15 = vpop.f32.mrf.mxu2 }
  0xd1   : > { %v653_v16 = vadd.f32 %v649_v15, %v483_v14 }
  0xd3   : > { %v666_v17 = vrot.slane %v653_v16, 7 }
  0xd5   : > { %672 = vrot.lane.b32.xlu1 %v666_v17, %s909_s10  ;;  %v667_v18 = vsel %vm664_vm10, %v665_v11, %v666_v17 }
  0xd6   : > { %670 = vrot.lane.b32.xlu0 %v667_v18, %s909_s10 }
 0x13f   : > { %v669_v19 = vpop.permute.xlu0 %668 }
 0x140   : > { %678 = vst.msk [vmem:[%s1108_s6] sm:$0xfe] %vm677_vm12, %v669_v19 }
 0x141   : > { %680 = vst.msk [vmem:[%s1108_s6 + $0x8] sm:$0xfe] %vm679_vm13, %v669_v19 }
 0x147   : > { %v673_v20 = vpop.permute.xlu1 %672 }
 0x148   : > { %686 = vst.msk [vmem:[%s1108_s6 + $0x20] sm:$0x1] %vm685_vm14, %v673_v20  ;;  %v671_v21 = vpop.permute.xlu0 %670 }
 0x149   : > { %688 = vst.msk [vmem:[%s1108_s6 + $0x28] sm:$0x1] %vm687_vm15, %v673_v20 }
 0x14a   : > { %682 = vst.msk [vmem:[%s1108_s6 + $0x10] sm:$0xff] %vm681_vm0, %v671_v21 }
 0x14b   : > { %684 = vst.msk [vmem:[%s1108_s6 + $0x18] sm:$0xff] %vm683_vm1, %v671_v21 }
 0x14c PF: > { %s12_s9 = sadd.s32 1, %s906_s9  }
 0x14d   : > { %p9_p4 = scmp.ge.s32.totalorder %s12_s9, 4  }
 0x14f   :  { %11 = sbr.rel (!%p9_p4) target bundleno = 1 (0x1), region = 61 }

// kernel: tile.35
= control target key start
LH: loop header
LB: loop body
LE: loop exit
PB: predicated region body
PF: predicated region fallthrough
CT: control target
= control target key end

     0   :  { %s28_s0 = inlined_call_operand.vmem [shape: f32[16], index: 0, kind: input, shape index: {}]   ;;  %s29_s1 = inlined_call_operand.vmem [shape: f32[10,16], index: 1, kind: output, shape index: {}]  }
   0x1   :  { %v4_v0 = vld [vmem:[%s28_s0] ss:$0 sm:$0xff] }
   0x2   :  { %5 = vst [vmem:[%s29_s1] sm:$0xff] %v4_v0 }
   0x3   :  { %8 = vst [vmem:[%s29_s1 + $0x8] sm:$0xff] %v4_v0 }

// kernel: tile.36
= control target key start
LH: loop header
LB: loop body
LE: loop exit
PB: predicated region body
PF: predicated region fallthrough
CT: control target
= control target key end

     0   :  { %s76_s10 = smov 112   ;;  %s77_s11 = smov 80   ;;  %vm4_vm0 = vcmask 130048   ;;  %vm10_vm1 = vcmask 1048448   ;;  %vm16_vm2 = vcmask 917248   ;;  %vm22_vm3 = vcmask 786048   ;;  %s123_s0 = inlined_call_operand.vmem [shape: f32[10,16], index: 0, kind: input, shape index: {}]   ;;  %s124_s1 = inlined_call_operand.vmem [shape: f32[1,160], index: 1, kind: output, shape index: {}]  }
   0x1   :  { %v61_v0 = vld [vmem:[%s123_s0 + $0x7] sm:$0x1]   ;;  %v63_v1 = vld [vmem:[%s123_s0 + $0x5] sm:$0x1]   ;;  %v65_v2 = vld [vmem:[%s123_s0 + $0x3] sm:$0x1]  }
   0x2   :  { %8 = vrot.lane.b32.xlu0 %v61_v0, %s76_s10  ;;  %20 = vrot.lane.b32.xlu1 %v63_v1, %s77_s11  ;;  %s78_s14 = smov 48   ;;  %v62_v3 = vld [vmem:[%s123_s0 + $0x6] sm:$0x1]   ;;  %v64_v4 = vld [vmem:[%s123_s0 + $0x4] sm:$0x1]   ;;  %s79_s19 = smov 96  }
   0x3   :  { %32 = vrot.lane.b32.xlu2 %v65_v2, %s78_s14  ;;  %s80_s20 = smov 64   ;;  %v66_v5 = vld [vmem:[%s123_s0 + $0x2] sm:$0x1]   ;;  %s43_s23 = smov 3  ;;  %vm28_vm4 = vcmask 654848   ;;  %vm34_vm5 = vcmask 523648  }
   0x4   :  { %s81_s24 = smov 32   ;;  %v67_v6 = vld [vmem:[%s123_s0 + $0x1] ss:$8 sm:%s43_s23]   ;;  %s82_s27 = smov 16   ;;  %vm40_vm6 = vcmask 392448   ;;  %vm47_vm7 = vcmask 261248  }
   0x5   :  { %s2_s28 = smov 3 }
   0x6   :  { %v3_v7 = vld [vmem:[%s123_s0] ss:$8 sm:%s2_s28]  }
   0x7   :  { %5 = vst.msk [vmem:[#allocation0] ss:$8 sm:$0x3] %vm4_vm0, %v3_v7  }
   0xa   :  { %14 = vrot.lane.b32.xlu0 %v62_v3, %s79_s19  ;;  %26 = vrot.lane.b32.xlu1 %v64_v4, %s80_s20 }
   0xb   :  { %38 = vrot.lane.b32.xlu2 %v66_v5, %s81_s24 }
  0x12   :  { %45 = vrot.lane.b32.xlu0 %v67_v6, %s82_s27 }
  0x5d   :  { %v33_v8 = vpop.permute.xlu2 %32  }
  0x65   :  { %v39_v9 = vpop.permute.xlu2 %38  }
  0x74   :  { %v9_v10 = vpop.permute.xlu0 %8   ;;  %v21_v11 = vpop.permute.xlu1 %20  }
  0x75   :  { %11 = vst.msk [vmem:[#allocation0] sm:$0x1] %vm10_vm1, %v9_v10  }
  0x7c   :  { %v15_v12 = vpop.permute.xlu0 %14   ;;  %v27_v13 = vpop.permute.xlu1 %26  }
  0x7d   :  { %17 = vst.msk [vmem:[#allocation0] sm:$0x1] %vm16_vm2, %v15_v12  }
  0x7e   :  { %23 = vst.msk [vmem:[#allocation0] sm:$0x1] %vm22_vm3, %v21_v11  }
  0x7f   :  { %29 = vst.msk [vmem:[#allocation0] sm:$0x1] %vm28_vm4, %v27_v13  }
  0x80   :  { %35 = vst.msk [vmem:[#allocation0] sm:$0x1] %vm34_vm5, %v33_v8  }
  0x81   :  { %41 = vst.msk [vmem:[#allocation0] sm:$0x1] %vm40_vm6, %v39_v9  }
  0x84   :  { %v46_v14 = vpop.permute.xlu0 %45  }
  0x85   :  { %48 = vst.msk [vmem:[#allocation0] ss:$8 sm:$0x3] %vm47_vm7, %v46_v14  }
  0x8c   :  { %v51_v15 = vld [vmem:[#allocation0] sm:$0x1]  ;;  %v56_v16 = vld [vmem:[#allocation0 + $0x8] sm:$0x1] }
  0x8d   :  { %54 = vst [vmem:[%s124_s1] sm:$0x1] %v51_v15 }
  0x8e   :  { %68 = vst [vmem:[%s124_s1 + $0x1] sm:$0x1] %v56_v16 }

// kernel: tile.45
= control target key start
LH: loop header
LB: loop body
LE: loop exit
PB: predicated region body
PF: predicated region fallthrough
CT: control target
= control target key end

     0   :  { %s22_s0 = inlined_call_operand.vmem [shape: f32[32], index: 0, kind: input, shape index: {}]   ;;  %s23_s1 = inlined_call_operand.vmem [shape: f32[6,32], index: 1, kind: output, shape index: {}]  }
   0x1   :  { %v4_v0 = vld [vmem:[%s22_s0] ss:$0 sm:$0xff] }
   0x2   :  { %5 = vst [vmem:[%s23_s1] sm:$0xff] %v4_v0 }

// kernel: tile.46
= control target key start
LH: loop header
LB: loop body
LE: loop exit
PB: predicated region body
PF: predicated region fallthrough
CT: control target
= control target key end

     0   :  { %s44_s8 = smov 96   ;;  %s19_s9 = smov 3  ;;  %vm4_vm0 = vcmask 261120   ;;  %vm10_vm1 = vcmask 1048320   ;;  %vm16_vm2 = vcmask 785920   ;;  %vm23_vm3 = vcmask 523520   ;;  %s75_s0 = inlined_call_operand.vmem [shape: f32[6,32], index: 0, kind: input, shape index: {}]   ;;  %s76_s1 = inlined_call_operand.vmem [shape: f32[1,192], index: 1, kind: output, shape index: {}]  }
   0x1   :  { %v37_v0 = vld [vmem:[%s75_s0 + $0x3] sm:$0x1]   ;;  %v39_v1 = vld [vmem:[%s75_s0 + $0x1] ss:$4 sm:%s19_s9]   ;;  %s45_s12 = smov 32   ;;  %s46_s15 = smov 64  }
   0x2   :  { %8 = vrot.lane.b32.xlu0 %v37_v0, %s44_s8  ;;  %21 = vrot.lane.b32.xlu1 %v39_v1, %s45_s12  ;;  %v38_v2 = vld [vmem:[%s75_s0 + $0x2] sm:$0x1]   ;;  %s2_s16 = smov 3 }
   0x3   :  { %v3_v3 = vld [vmem:[%s75_s0] ss:$4 sm:%s2_s16]  }
   0x4   :  { %5 = vst.msk [vmem:[#allocation0] ss:$8 sm:$0x3] %vm4_vm0, %v3_v3  }
   0xa   :  { %14 = vrot.lane.b32.xlu0 %v38_v2, %s46_s15 }
  0x74   :  { %v9_v4 = vpop.permute.xlu0 %8   ;;  %v22_v5 = vpop.permute.xlu1 %21  }
  0x75   :  { %11 = vst.msk [vmem:[#allocation0] sm:$0x1] %vm10_vm1, %v9_v4  }
  0x7c   :  { %v15_v6 = vpop.permute.xlu0 %14  }
  0x7d   :  { %17 = vst.msk [vmem:[#allocation0] sm:$0x1] %vm16_vm2, %v15_v6  }
  0x7e   :  { %24 = vst.msk [vmem:[#allocation0] ss:$8 sm:$0x3] %vm23_vm3, %v22_v5  }
  0x85   :  { %v27_v7 = vld [vmem:[#allocation0] sm:$0x1]  ;;  %v32_v8 = vld [vmem:[#allocation0 + $0x8] sm:$0x1] }
  0x86   :  { %30 = vst [vmem:[%s76_s1] sm:$0x1] %v27_v7 }
  0x87   :  { %40 = vst [vmem:[%s76_s1 + $0x1] sm:$0x1] %v32_v8 }

// kernel: discriminator_forward.5
= control target key start
LH: loop header
LB: loop body
LE: loop exit
PB: predicated region body
PF: predicated region fallthrough
CT: control target
= control target key end

     0   :  { %s1653_s21 = smov 0   ;;  %s2079_s0 = inlined_call_operand.vmem [shape: f32[2,9,2,144], index: 0, kind: input, shape index: {}]   ;;  %s2080_s1 = inlined_call_operand.vmem [shape: bf16[3,144,128], index: 1, kind: input, shape index: {}]   ;;  %s2081_s2 = inlined_call_operand.vmem [shape: f32[1,144], index: 2, kind: input, shape index: {}]   ;;  %s2082_s3 = inlined_call_operand.vmem [shape: f32[1,144], index: 3, kind: input, shape index: {}]   ;;  %s2083_s4 = inlined_call_operand.vmem [shape: f32[9,2,144], index: 4, kind: input, shape index: {}]   ;;  %s2084_s5 = inlined_call_operand.vmem [shape: f32[2,10,160], index: 5, kind: output, shape index: {0}]   ;;  %s2085_s6 = inlined_call_operand.vmem [shape: f32[2,2,128], index: 6, kind: output, shape index: {1}]  }
   0x1 LB: > { %s1365_s22 = sadd.s32 4294967295, %s1614_s21   ;;  %p1369_p0 = scmp.ge.s32.totalorder %s1614_s21, 1  ;;  %s1614_s21 = sphi %s1653_s21, %s17_s21  }
   0x2   : > { %p215_p1 = scmp.lt.s32.totalorder %s1614_s21, 3 }
   0x4   : > { %p216_p2 = pnand %p1369_p0, %p215_p1 }
   0x5   : > { %p249_p3 = scmp.lt.s32.totalorder (!%p216_p2), %s1365_s22, 1  ;;  %s1617_s29 = smov (!%p216_p2), 16  }
   0x6   : > { %219 = sbr.rel (%p216_p2) target bundleno = 386 (0x182), region = 40 }
   0xb   : > { %v1577_v0 = vld [vmem:[%s2080_s1 + $0x38] sm:$0xff]  ;;  %v1586_v1 = vld [vmem:[%s2080_s1 + $0x80] sm:$0xff]  ;;  %v1576_v2 = vld [vmem:[%s2080_s1 + $0x30] sm:$0xff]  ;;  %s2087_s22 = smov (!%p249_p3, %s1365_s22), 1  ;;  %vm286_vm0 = vcmask 1041409   ;;  %vm289_vm1 = vcmask 1042434  }
   0xc   : > { %903 = vmatpush.bf16.msra.mxu2 %v1577_v0  ;;  %757 = vmatpush.bf16.msra.mxu0 %v1586_v1  ;;  %v1585_v3 = vld [vmem:[%s2080_s1 + $0x78] sm:$0xff]  ;;  %v1587_v4 = vld [vmem:[%s2080_s1 + $0x88] sm:$0xff]  ;;  %v1594_v6 = vld [vmem:[%s2080_s1 + $0xc0] sm:$0xff]  ;;  %s1597_s25 = smul.u32 36, %s2087_s22  ;;  %vm292_vm2 = vcmask 1043459   ;;  %vm284_vm3 = vcmask 1040384  }
   0xd   : > { %v1595_v5 = vld [vmem:[%s2080_s1 + $0xc8] sm:$0xff]  ;;  %777 = vmatpush.bf16.msra.mxu1 %v1587_v4  ;;  %v1584_v8 = vld [vmem:[%s2080_s1 + $0x70] sm:$0xff]  ;;  %v1578_v9 = vld [vmem:[%s2080_s1 + $0x40] sm:$0xff]  ;;  %vm295_vm4 = vcmask 1044484   ;;  %vm298_vm5 = vcmask 1045509   ;;  %vm301_vm6 = vcmask 1046534  }
   0xe   : > { %v1575_v7 = vld [vmem:[%s2080_s1 + $0x28] sm:$0xff]  ;;  %v279_v10 = vld [vmem:[%s2081_s2] sm:$0x3]  ;;  %923 = vmatpush.bf16.msra.mxu3 %v1578_v9  ;;  %v1593_v15 = vld [vmem:[%s2080_s1 + $0xb8] sm:$0xff]  ;;  %vm304_vm7 = vcmask 1046528   ;;  %s1712_s10 = scalar_lea.vmem %s2079_s0, %s1597_s25  ;;  %s1569_s25 = sshll.u32 %s2087_s22, 5 }
   0xf   : > { %v323_v11 = vld [vmem:[%s2082_s3] sm:$0x3]  ;;  %v281_v12 = vperm.slane %v279_v10, 0  ;;  %v282_v13 = vperm.slane %v279_v10, 1  ;;  %v1583_v17 = vld [vmem:[%s2080_s1 + $0x68] sm:$0xff]  ;;  %v1592_v24 = vld [vmem:[%s2080_s1 + $0xb0] sm:$0xff]  ;;  %s2062_s28 = scalar_lea.vmem %s2084_s5, %s1569_s25 }
  0x10   : > { %904 = vmatpush.bf16.msra.mxu2 %v1576_v2  ;;  %758 = vmatpush.bf16.msra.mxu0 %v1585_v3  ;;  %v326_v14 = vperm.slane %v323_v11, 1  ;;  %v1574_v16 = vld [vmem:[%s2080_s1 + $0x20] sm:$0xff]  ;;  %v325_v19 = vperm.slane %v323_v11, 0  ;;  %v1573_v29 = vld [vmem:[%s2080_s1 + $0x18] sm:$0xff]  ;;  %v1572_v54 = vld [vmem:[%s2080_s1 + $0x10] sm:$0xff]  ;;  %s1373_s30 = sshll.u32 %s2087_s22, 1 }
  0x11   : > { %1204 = vmatpush.bf16.msrb.mxu1 %v1595_v5  ;;  %v283_v18 = vrot.slane %v282_v13, 7  ;;  %v1582_v30 = vld [vmem:[%s2080_s1 + $0x60] sm:$0xff]  ;;  %v1390_v41 = vld [vmem:[%s1712_s10 + $0x9] ss:$2 sm:$0x3]  ;;  %v1581_v55 = vld [vmem:[%s2080_s1 + $0x58] sm:$0xff]  ;;  %s262_s8 = scalar_lea.vmem %s2085_s6, %s1373_s30 }
  0x12   : > { %v327_v23 = vrot.slane %v326_v14, 7  ;;  %v1388_v35 = vld [vmem:[%s1712_s10 + $0x1] ss:$2 sm:$0x3]  ;;  %v1571_v9 = vld [vmem:[%s2080_s1 + $0x8] sm:$0xff]  ;;  %v1580_v10 = vld [vmem:[%s2080_s1 + $0x50] sm:$0xff] }
  0x13   : > { %v287_v20 = vsel %vm286_vm0, %v281_v12, %v283_v18  ;;  %v290_v21 = vsel %vm289_vm1, %v281_v12, %v283_v18  ;;  %v293_v22 = vsel %vm292_vm2, %v281_v12, %v283_v18  ;;  %v1721_v25 = vsel %vm284_vm3, %v281_v12, %v283_v18  ;;  %v1389_v40 = vld [vmem:[%s1712_s10 + $0x5] ss:$2 sm:$0x3]  ;;  %v1391_v42 = vld [vmem:[%s1712_s10 + $0xd] ss:$2 sm:$0x3] }
  0x14   : > { %905 = vmatpush.bf16.msra.mxu2 %v1575_v7  ;;  %759 = vmatpush.bf16.msra.mxu0 %v1584_v8  ;;  %v1723_v26 = vrot.slane %v287_v20, 1  ;;  %v1725_v27 = vrot.slane %v290_v21, 2  ;;  %v296_v28 = vsel %vm295_vm4, %v281_v12, %v283_v18  ;;  %v1734_v31 = vrot.slane %v293_v22, 3  ;;  %v1392_v47 = vld [vmem:[%s1712_s10 + $0x11] ss:$2 sm:$0x3] }
  0x15   : > { %1205 = vmatpush.bf16.msrb.mxu1 %v1594_v6  ;;  %v299_v32 = vsel %vm298_vm5, %v281_v12, %v283_v18  ;;  %v302_v33 = vsel %vm301_vm6, %v281_v12, %v283_v18  ;;  %v305_v34 = vsel %vm304_vm7, %v283_v18, %v281_v12  ;;  %v1740_v36 = vrot.slane %v296_v28, 4  ;;  %v1393_v48 = vld [vmem:[%s1712_s10 + $0x15] ss:$2 sm:$0x3]  ;;  %v1570_v20 = vld [vmem:[%s2080_s1] sm:$0xff] }
  0x16   : > { %v1742_v37 = vrot.slane %v299_v32, 5  ;;  %v1744_v38 = vrot.slane %v302_v33, 6  ;;  %v1746_v39 = vrot.slane %v305_v34, 7  ;;  %v329_v43 = vsel %vm286_vm0, %v325_v19, %v327_v23  ;;  %v1394_v53 = vld [vmem:[%s1712_s10 + $0x19] ss:$2 sm:$0x3] }
  0x17   : > { %v331_v44 = vsel %vm289_vm1, %v325_v19, %v327_v23  ;;  %v333_v45 = vsel %vm292_vm2, %v325_v19, %v327_v23  ;;  %v335_v46 = vsel %vm295_vm4, %v325_v19, %v327_v23  ;;  %v1758_v49 = vsel %vm284_vm3, %v325_v19, %v327_v23  ;;  %v1395_v60 = vld [vmem:[%s1712_s10 + $0x1d] ss:$2 sm:$0x3]  ;;  %v264_v18 = vld [vmem:[%s1712_s10] ss:$2 sm:$0x3] }
  0x18   : > { %906 = vmatpush.bf16.msra.mxu2 %v1574_v16  ;;  %760 = vmatpush.bf16.msra.mxu0 %v1583_v17  ;;  %v1760_v50 = vrot.slane %v329_v43, 1  ;;  %v1762_v51 = vrot.slane %v331_v44, 2  ;;  %v1764_v52 = vrot.slane %v333_v45, 3  ;;  %v1773_v56 = vrot.slane %v335_v46, 4 }
  0x19   : > { %1206 = vmatpush.bf16.msrb.mxu1 %v1593_v15  ;;  %v337_v57 = vsel %vm298_vm5, %v325_v19, %v327_v23  ;;  %v339_v58 = vsel %vm301_vm6, %v325_v19, %v327_v23  ;;  %v341_v59 = vsel %vm304_vm7, %v327_v23, %v325_v19  ;;  %v496_v0 = vmul.f32 %v1388_v35, %v1721_v25  ;;  %v1374_v19 = vld [vmem:[%s1712_s10 + $0x4] ss:$2 sm:$0x3]  ;;  %v1396_v21 = vld [vmem:[%s2083_s4 + $0x1] ss:$2 sm:$0x3] }
  0x1a   : > { %v1779_v61 = vrot.slane %v337_v57, 5  ;;  %v1781_v62 = vrot.slane %v339_v58, 6  ;;  %v1783_v63 = vrot.slane %v341_v59, 7  ;;  %v497_v1 = vmul.f32 %v1389_v40, %v1723_v26  ;;  %v1397_v22 = vld [vmem:[%s2083_s4 + $0x5] ss:$2 sm:$0x3] }
  0x1b   : > { %v498_v2 = vmul.f32 %v1390_v41, %v1725_v27  ;;  %v499_v3 = vmul.f32 %v1391_v42, %v1734_v31  ;;  %v500_v4 = vmul.f32 %v1392_v47, %v1740_v36  ;;  %v501_v5 = vmul.f32 %v1393_v48, %v1742_v37  ;;  %v1400_v32 = vld [vmem:[%s2083_s4 + $0x11] ss:$2 sm:$0x3]  ;;  %v1401_v33 = vld [vmem:[%s2083_s4 + $0x15] ss:$2 sm:$0x3] }
  0x1c   : > { %907 = vmatpush.bf16.msra.mxu2 %v1573_v29  ;;  %761 = vmatpush.bf16.msra.mxu0 %v1582_v30  ;;  %v502_v6 = vmul.f32 %v1394_v53, %v1744_v38  ;;  %v503_v7 = vmul.f32 %v1395_v60, %v1746_v39  ;;  %v504_v8 = vadd.f32 %v496_v0, %v1758_v49  ;;  %v1398_v29 = vld [vmem:[%s2083_s4 + $0x9] ss:$2 sm:$0x3]  ;;  %v1399_v30 = vld [vmem:[%s2083_s4 + $0xd] ss:$2 sm:$0x3] }
  0x1d   : > { %1207 = vmatpush.bf16.msrb.mxu1 %v1592_v24  ;;  %v505_v11 = vadd.f32 %v497_v1, %v1760_v50  ;;  %v506_v12 = vadd.f32 %v498_v2, %v1762_v51  ;;  %v507_v13 = vadd.f32 %v499_v3, %v1764_v52  ;;  %v508_v14 = vadd.f32 %v500_v4, %v1773_v56  ;;  %v1403_v57 = vld [vmem:[%s2083_s4 + $0x1d] ss:$2 sm:$0x3] }
  0x1e   : > { %v509_v15 = vadd.f32 %v501_v5, %v1779_v61  ;;  %v510_v16 = vadd.f32 %v502_v6, %v1781_v62  ;;  %v511_v17 = vadd.f32 %v503_v7, %v1783_v63  ;;  %vm512_vm8 = vcmp.gt.f32.partialorder %v504_v8, 0.0 }
  0x1f   : > { %vm513_vm9 = vcmp.gt.f32.partialorder %v505_v11, 0.0  ;;  %vm514_vm10 = vcmp.gt.f32.partialorder %v506_v12, 0.0  ;;  %vm515_vm11 = vcmp.gt.f32.partialorder %v507_v13, 0.0  ;;  %vm516_vm12 = vcmp.gt.f32.partialorder %v508_v14, 0.0 }
  0x20   : > { %908 = vmatpush.bf16.msra.mxu2 %v1572_v54  ;;  %762 = vmatpush.bf16.msra.mxu0 %v1581_v55  ;;  %vm517_vm13 = vcmp.gt.f32.partialorder %v509_v15, 0.0  ;;  %vm518_vm14 = vcmp.gt.f32.partialorder %v510_v16, 0.0  ;;  %vm519_vm15 = vcmp.gt.f32.partialorder %v511_v17, 0.0  ;;  %v520_v23 = vmul.f32 0.2, %v504_v8 }
  0x21   : > { %v521_v24 = vmul.f32 0.2, %v505_v11  ;;  %v522_v28 = vmul.f32 0.2, %v506_v12  ;;  %v1831_v34 = vmul.f32 %v1721_v25, %v264_v18  ;;  %v523_v35 = vmul.f32 0.2, %v507_v13 }
  0x22   : > { %v524_v40 = vmul.f32 0.2, %v508_v14  ;;  %v525_v41 = vmul.f32 0.2, %v509_v15  ;;  %v1834_v42 = vmul.f32 %v1374_v19, %v1723_v26  ;;  %v526_v43 = vmul.f32 0.2, %v510_v16 }
  0x23   : > { %v527_v44 = vmul.f32 0.2, %v511_v17  ;;  %v528_v45 = vsel %vm512_vm8, %v504_v8, %v520_v23  ;;  %v529_v46 = vsel %vm513_vm9, %v505_v11, %v521_v24  ;;  %v530_v47 = vsel %vm514_vm10, %v506_v12, %v522_v28  ;;  %v1402_v55 = vld [vmem:[%s2083_s4 + $0x19] ss:$2 sm:$0x3] }
  0x24   : > { %909 = vmatpush.bf16.msra.mxu2 %v1571_v9  ;;  %763 = vmatpush.bf16.msra.mxu0 %v1580_v10  ;;  %v531_v48 = vsel %vm515_vm11, %v507_v13, %v523_v35  ;;  %v532_v53 = vsel %vm516_vm12, %v508_v14, %v524_v40  ;;  %v533_v54 = vsel %vm517_vm13, %v509_v15, %v525_v41  ;;  %vm680_vm3 = vcmask 1047559   ;;  %v1378_v41 = vld [vmem:[%s1712_s10 + $0x14] ss:$2 sm:$0x3] }
  0x25   : > { %v534_v58 = vsel %vm518_vm14, %v510_v16, %v526_v43  ;;  %v535_v59 = vsel %vm519_vm15, %v511_v17, %v527_v44  ;;  %v1850_v60 = vmul.f32 %v1396_v21, %v528_v45  ;;  %v1852_v0 = vmul.f32 %v1397_v22, %v529_v46  ;;  %v1375_v21 = vld [vmem:[%s1712_s10 + $0x8] ss:$2 sm:$0x3]  ;;  %v1379_v43 = vld [vmem:[%s1712_s10 + $0x18] ss:$2 sm:$0x3] }
  0x26   : > { %v1854_v1 = vmul.f32 %v1398_v29, %v530_v47  ;;  %v1856_v2 = vmul.f32 %v1399_v30, %v531_v48  ;;  %v1858_v3 = vmul.f32 %v1400_v32, %v532_v53  ;;  %v1860_v4 = vmul.f32 %v1401_v33, %v533_v54  ;;  %v1376_v29 = vld [vmem:[%s1712_s10 + $0xc] ss:$2 sm:$0x3]  ;;  %v1377_v30 = vld [vmem:[%s1712_s10 + $0x10] ss:$2 sm:$0x3] }
  0x27   : > { %v1862_v5 = vmul.f32 %v1402_v55, %v534_v58  ;;  %v1864_v6 = vmul.f32 %v1403_v57, %v535_v59  ;;  %v569_v7 = vperm.slane %v1850_v60, 1  ;;  %v571_v8 = vperm.slane %v1852_v0, 1  ;;  %v1380_v47 = vld [vmem:[%s1712_s10 + $0x1c] ss:$2 sm:$0x3] }
  0x28   : > { %910 = vmatpush.bf16.msra.mxu2 %v1570_v20  ;;  %v573_v9 = vperm.slane %v1854_v1, 1  ;;  %v575_v10 = vperm.slane %v1856_v2, 1  ;;  %v577_v11 = vperm.slane %v1858_v3, 1  ;;  %v579_v12 = vperm.slane %v1860_v4, 1 }
  0x29   : > { %v581_v13 = vperm.slane %v1862_v5, 1  ;;  %v583_v14 = vperm.slane %v1864_v6, 1  ;;  %v601_v15 = vpack.c.bf16 %v569_v7, %v569_v7  ;;  %v603_v16 = vpack.c.bf16 %v571_v8, %v571_v8 }
  0x2a   : > { %v605_v17 = vpack.c.bf16 %v573_v9, %v573_v9  ;;  %v607_v18 = vpack.c.bf16 %v575_v10, %v575_v10  ;;  %v609_v19 = vpack.c.bf16 %v577_v11, %v577_v11  ;;  %v611_v20 = vpack.c.bf16 %v579_v12, %v579_v12 }
  0x2b   : > { %v613_v22 = vpack.c.bf16 %v581_v13, %v581_v13  ;;  %v615_v23 = vpack.c.bf16 %v583_v14, %v583_v14  ;;  %v652_v24 = vunpack.c.l.b16 %v601_v15  ;;  %v654_v28 = vunpack.c.l.b16 %v603_v16 }
  0x2c   : > { %v656_v32 = vunpack.c.l.b16 %v605_v17  ;;  %v658_v33 = vunpack.c.l.b16 %v607_v18  ;;  %v660_v35 = vunpack.c.l.b16 %v609_v19  ;;  %v662_v40 = vunpack.c.l.b16 %v611_v20 }
  0x2d   : > { %v664_v44 = vunpack.c.l.b16 %v613_v22  ;;  %v666_v45 = vunpack.c.l.b16 %v615_v23  ;;  %v682_v46 = vrot.slane %v654_v28, 7  ;;  %vm753_vm7 = vcmask 130048  }
  0x2e   : > { %v317_v48 = vmul.f32 %v1375_v21, %v1725_v27  ;;  %v684_v53 = vrot.slane %v656_v32, 6  ;;  %v686_v54 = vrot.slane %v658_v33, 5  ;;  %v688_v55 = vrot.slane %v660_v35, 4  ;;  %v1381_v33 = vld [vmem:[%s2083_s4 + $0x4] ss:$2 sm:$0x3] }
  0x2f   : > { %v690_v57 = vrot.slane %v662_v40, 3  ;;  %v683_v58 = vsel %vm286_vm0, %v682_v46, %v652_v24  ;;  %v692_v59 = vrot.slane %v664_v44, 2  ;;  %v694_v7 = vrot.slane %v666_v45, 1  ;;  %v1382_v35 = vld [vmem:[%s2083_s4 + $0x8] ss:$2 sm:$0x3] }
  0x30   : > { %v318_v8 = vmul.f32 %v1376_v29, %v1734_v31  ;;  %v685_v9 = vsel %vm289_vm1, %v684_v53, %v683_v58  ;;  %v319_v10 = vmul.f32 %v1377_v30, %v1740_v36  ;;  %v320_v11 = vmul.f32 %v1378_v41, %v1742_v37  ;;  %v383_v29 = vld [vmem:[%s2083_s4] ss:$2 sm:$0x3]  ;;  %v1383_v40 = vld [vmem:[%s2083_s4 + $0xc] ss:$2 sm:$0x3] }
  0x31   : > { %v321_v12 = vmul.f32 %v1379_v43, %v1744_v38  ;;  %v687_v13 = vsel %vm292_vm2, %v686_v54, %v685_v9  ;;  %v322_v14 = vmul.f32 %v1380_v47, %v1746_v39  ;;  %v351_v15 = vadd.f32 %v1758_v49, %v1831_v34  ;;  %v1579_v41 = vld [vmem:[%s2080_s1 + $0x48] sm:$0xff]  ;;  %v1384_v47 = vld [vmem:[%s2083_s4 + $0x10] ss:$2 sm:$0x3] }
  0x32   : > { %v352_v16 = vadd.f32 %v1760_v50, %v1834_v42  ;;  %v689_v17 = vsel %vm295_vm4, %v688_v55, %v687_v13  ;;  %v353_v18 = vadd.f32 %v1762_v51, %v317_v48  ;;  %v354_v19 = vadd.f32 %v1764_v52, %v318_v8  ;;  %v1496_v42 = vld [vmem:[%s1712_s10 + $0x4] ss:$2 sm:$0x3]  ;;  %v1591_v43 = vld [vmem:[%s2080_s1 + $0xa8] sm:$0xff]  ;;  %764 = vmatpush.bf16.msra.mxu0 %v1579_v41 }
  0x33   : > { %v355_v20 = vadd.f32 %v1773_v56, %v319_v10  ;;  %v691_v21 = vsel %vm298_vm5, %v690_v57, %v689_v17  ;;  %v356_v22 = vadd.f32 %v1779_v61, %v320_v11  ;;  %v357_v23 = vadd.f32 %v1781_v62, %v321_v12  ;;  %v1385_v48 = vld [vmem:[%s2083_s4 + $0x14] ss:$2 sm:$0x3]  ;;  %v1386_v53 = vld [vmem:[%s2083_s4 + $0x18] ss:$2 sm:$0x3]  ;;  %1208 = vmatpush.bf16.msrb.mxu1 %v1591_v43 }
  0x34   : > { %v358_v24 = vadd.f32 %v1783_v63, %v322_v14  ;;  %v693_v34 = vsel %vm301_vm6, %v692_v59, %v691_v21  ;;  %vm359_vm8 = vcmp.gt.f32.partialorder %v351_v15, 0.0  ;;  %vm360_vm9 = vcmp.gt.f32.partialorder %v352_v16, 0.0  ;;  %v1596_v11 = vld [vmem:[%s2080_s1 + $0xd0] sm:$0xff] }
  0x35   : > { %vm361_vm10 = vcmp.gt.f32.partialorder %v353_v18, 0.0  ;;  %v695_v28 = vsel %vm680_vm3, %v694_v7, %v693_v34  ;;  %vm362_vm11 = vcmp.gt.f32.partialorder %v354_v19, 0.0  ;;  %vm363_vm12 = vcmp.gt.f32.partialorder %v355_v20, 0.0  ;;  %1224 = vmatpush.bf16.msrb.mxu3 %v1596_v11 }
  0x36   : > { %vm364_vm13 = vcmp.gt.f32.partialorder %v356_v22, 0.0  ;;  %v697_v30 = vpack.c.b16 %v695_v28, %v695_v28  ;;  %vm365_vm14 = vcmp.gt.f32.partialorder %v357_v23, 0.0  ;;  %vm366_vm15 = vcmp.gt.f32.partialorder %v358_v24, 0.0 }
  0x37   : > { %v367_v32 = vmul.f32 0.2, %v351_v15  ;;  %v368_v44 = vmul.f32 0.2, %v352_v16  ;;  %v369_v45 = vmul.f32 0.2, %v353_v18  ;;  %v1932_v54 = vmul.f32 %v1496_v42, %v1721_v25 }
  0x38   : > { %v370_v46 = vmul.f32 0.2, %v354_v19  ;;  %1458 = vmatmul.msk.bf16.vlgmr.msra.gmra.mxu1 %vm753_vm7, %v697_v30  ;;  %v371_v55 = vmul.f32 0.2, %v355_v20  ;;  %v372_v57 = vmul.f32 0.2, %v356_v22 }
  0x39   : > { %v373_v58 = vmul.f32 0.2, %v357_v23  ;;  %v375_v59 = vsel %vm359_vm8, %v351_v15, %v367_v32  ;;  %v374_v7 = vmul.f32 0.2, %v358_v24  ;;  %v376_v8 = vsel %vm360_vm9, %v352_v16, %v368_v44 }
  0x3a   : > { %v377_v9 = vsel %vm361_vm10, %v353_v18, %v369_v45  ;;  %v378_v10 = vsel %vm362_vm11, %v354_v19, %v370_v46  ;;  %v1387_v25 = vld [vmem:[%s2083_s4 + $0x1c] ss:$2 sm:$0x3]  ;;  %v379_v12 = vsel %vm363_vm12, %v355_v20, %v371_v55  ;;  %v380_v13 = vsel %vm364_vm13, %v356_v22, %v372_v57 }
  0x3b   : > { %v381_v14 = vsel %vm365_vm14, %v357_v23, %v373_v58  ;;  %v398_v15 = vmul.f32 %v383_v29, %v375_v59  ;;  %v382_v16 = vsel %vm366_vm15, %v358_v24, %v374_v7  ;;  %v399_v17 = vmul.f32 %v1381_v33, %v376_v8 }
  0x3c   : > { %v400_v18 = vmul.f32 %v1382_v35, %v377_v9  ;;  %v401_v19 = vmul.f32 %v1383_v40, %v378_v10  ;;  %v402_v21 = vmul.f32 %v1384_v47, %v379_v12  ;;  %v403_v34 = vmul.f32 %v1385_v48, %v380_v13  ;;  %v1590_v47 = vld [vmem:[%s2080_s1 + $0xa0] sm:$0xff]  ;;  %v1589_v10 = vld [vmem:[%s2080_s1 + $0x98] sm:$0xff] }
  0x3d   : > { %v404_v42 = vmul.f32 %v1386_v53, %v381_v14  ;;  %v405_v28 = vmul.f32 %v1387_v25, %v382_v16  ;;  %v414_v30 = vperm.slane %v398_v15, 0  ;;  %v416_v32 = vperm.slane %v399_v17, 0  ;;  %1209 = vmatpush.bf16.msrb.mxu1 %v1590_v47 }
  0x3e   : > { %v418_v41 = vperm.slane %v400_v18, 0  ;;  %v420_v43 = vperm.slane %v401_v19, 0  ;;  %v422_v20 = vperm.slane %v402_v21, 0  ;;  %v424_v44 = vperm.slane %v403_v34, 0 }
  0x3f   : > { %v426_v22 = vperm.slane %v404_v42, 0  ;;  %v428_v45 = vperm.slane %v405_v28, 0  ;;  %v446_v23 = vpack.c.bf16 %v414_v30, %v414_v30  ;;  %v448_v29 = vpack.c.bf16 %v416_v32, %v416_v32 }
  0x40   : > { %v450_v46 = vpack.c.bf16 %v418_v41, %v418_v41  ;;  %v452_v24 = vpack.c.bf16 %v420_v43, %v420_v43  ;;  %v454_v33 = vpack.c.bf16 %v422_v20, %v422_v20  ;;  %v456_v35 = vpack.c.bf16 %v424_v44, %v424_v44 }
  0x41   : > { %v458_v40 = vpack.c.bf16 %v426_v22, %v426_v22  ;;  %v460_v55 = vpack.c.bf16 %v428_v45, %v428_v45  ;;  %v799_v48 = vunpack.c.l.b16 %v446_v23  ;;  %v801_v53 = vunpack.c.l.b16 %v448_v29  ;;  %1210 = vmatpush.bf16.msrb.mxu1 %v1589_v10 }
  0x42   : > { %v803_v57 = vunpack.c.l.b16 %v450_v46  ;;  %v805_v58 = vunpack.c.l.b16 %v452_v24  ;;  %v807_v59 = vunpack.c.l.b16 %v454_v33  ;;  %v809_v7 = vunpack.c.l.b16 %v456_v35  ;;  %v1588_v46 = vld [vmem:[%s2080_s1 + $0x90] sm:$0xff] }
  0x43   : > { %v811_v8 = vunpack.c.l.b16 %v458_v40  ;;  %v813_v9 = vunpack.c.l.b16 %v460_v55  ;;  %v815_v25 = vrot.slane %v801_v53, 7  ;;  %v415_v13 = vperm.slane %v398_v15, 1 }
  0x44   : > { %v817_v11 = vrot.slane %v803_v57, 6  ;;  %v819_v12 = vrot.slane %v805_v58, 5  ;;  %v821_v14 = vrot.slane %v807_v59, 4  ;;  %v823_v16 = vrot.slane %v809_v7, 3 }
  0x45   : > { %v825_v30 = vrot.slane %v811_v8, 2  ;;  %v827_v32 = vrot.slane %v813_v9, 1  ;;  %v816_v41 = vsel %vm286_vm0, %v815_v25, %v799_v48  ;;  %v417_v43 = vperm.slane %v399_v17, 1  ;;  %1211 = vmatpush.bf16.msrb.mxu1 %v1588_v46 }
  0x46   : > { %v419_v20 = vperm.slane %v400_v18, 1  ;;  %v421_v44 = vperm.slane %v401_v19, 1  ;;  %v818_v22 = vsel %vm289_vm1, %v817_v11, %v816_v41  ;;  %v423_v45 = vperm.slane %v402_v21, 1 }
  0x47   : > { %v425_v23 = vperm.slane %v403_v34, 1  ;;  %v427_v29 = vperm.slane %v404_v42, 1  ;;  %v820_v15 = vsel %vm292_vm2, %v819_v12, %v818_v22  ;;  %v429_v24 = vperm.slane %v405_v28, 1 }
  0x48   : > { %v447_v33 = vpack.c.bf16 %v415_v13, %v415_v13  ;;  %v449_v35 = vpack.c.bf16 %v417_v43, %v417_v43  ;;  %v822_v40 = vsel %vm295_vm4, %v821_v14, %v820_v15  ;;  %v451_v17 = vpack.c.bf16 %v419_v20, %v419_v20 }
  0x49   : > { %v453_v18 = vpack.c.bf16 %v421_v44, %v421_v44  ;;  %v455_v19 = vpack.c.bf16 %v423_v45, %v423_v45  ;;  %v824_v55 = vsel %vm298_vm5, %v823_v16, %v822_v40  ;;  %v457_v21 = vpack.c.bf16 %v425_v23, %v425_v23 }
  0x4a   : > { %v459_v34 = vpack.c.bf16 %v427_v29, %v427_v29  ;;  %v461_v42 = vpack.c.bf16 %v429_v24, %v429_v24  ;;  %v826_v47 = vsel %vm301_vm6, %v825_v30, %v824_v55  ;;  %v800_v48 = vunpack.c.l.b16 %v447_v33 }
  0x4b   : > { %v802_v53 = vunpack.c.l.b16 %v449_v35  ;;  %v804_v57 = vunpack.c.l.b16 %v451_v17  ;;  %v828_v28 = vsel %vm680_vm3, %v827_v32, %v826_v47  ;;  %v806_v58 = vunpack.c.l.b16 %v453_v18  ;;  %v1497_v17 = vld [vmem:[%s1712_s10 + $0x8] ss:$2 sm:$0x3] }
  0x4c   : > { %v808_v59 = vunpack.c.l.b16 %v455_v19  ;;  %v810_v7 = vunpack.c.l.b16 %v457_v21  ;;  %v843_v8 = vpack.c.b16 %v828_v28, %v828_v28  ;;  %v812_v9 = vunpack.c.l.b16 %v459_v34  ;;  %v1498_v21 = vld [vmem:[%s1712_s10 + $0xc] ss:$2 sm:$0x3]  ;;  %v1499_v34 = vld [vmem:[%s1712_s10 + $0x10] ss:$2 sm:$0x3] }
  0x4d   : > { %v814_v10 = vunpack.c.l.b16 %v461_v42  ;;  %v829_v25 = vrot.slane %v802_v53, 7  ;;  %v831_v11 = vrot.slane %v804_v57, 6  ;;  %v833_v12 = vrot.slane %v806_v58, 5  ;;  %v1500_v57 = vld [vmem:[%s1712_s10 + $0x14] ss:$2 sm:$0x3] }
  0x4e   : > { %v835_v13 = vrot.slane %v808_v59, 4  ;;  %v837_v14 = vrot.slane %v810_v7, 3  ;;  %911 = vmatmul.bf16.vlgmr.msra.gmra.mxu2 %v843_v8  ;;  %v839_v30 = vrot.slane %v812_v9, 2  ;;  %v568_v43 = vperm.slane %v1850_v60, 0 }
  0x4f   : > { %v830_v16 = vsel %vm286_vm0, %v829_v25, %v800_v48  ;;  %v841_v41 = vrot.slane %v814_v10, 1  ;;  %v570_v20 = vperm.slane %v1852_v0, 0  ;;  %v572_v44 = vperm.slane %v1854_v1, 0  ;;  %v1501_v28 = vld [vmem:[%s1712_s10 + $0x18] ss:$2 sm:$0x3] }
  0x50   : > { %v832_v32 = vsel %vm289_vm1, %v831_v11, %v830_v16  ;;  %v574_v22 = vperm.slane %v1856_v2, 0  ;;  %v576_v23 = vperm.slane %v1858_v3, 0  ;;  %v578_v29 = vperm.slane %v1860_v4, 0  ;;  %v1502_v9 = vld [vmem:[%s1712_s10 + $0x1c] ss:$2 sm:$0x3] }
  0x51   : > { %v834_v45 = vsel %vm292_vm2, %v833_v12, %v832_v32  ;;  %v580_v46 = vperm.slane %v1862_v5, 0  ;;  %v582_v60 = vperm.slane %v1864_v6, 0  ;;  %v600_v24 = vpack.c.bf16 %v568_v43, %v568_v43  ;;  %v1503_v12 = vld [vmem:[%s1712_s10 + $0x20] ss:$2 sm:$0x3] }
  0x52   : > { %v836_v15 = vsel %vm295_vm4, %v835_v13, %v834_v45  ;;  %v602_v0 = vpack.c.bf16 %v570_v20, %v570_v20  ;;  %v604_v2 = vpack.c.bf16 %v572_v44, %v572_v44  ;;  %v606_v33 = vpack.c.bf16 %v574_v22, %v574_v22 }
  0x53   : > { %v838_v1 = vsel %vm298_vm5, %v837_v14, %v836_v15  ;;  %v608_v35 = vpack.c.bf16 %v576_v23, %v576_v23  ;;  %v610_v4 = vpack.c.bf16 %v578_v29, %v578_v29  ;;  %v612_v40 = vpack.c.bf16 %v580_v46, %v580_v46 }
  0x54   : > { %v840_v3 = vsel %vm301_vm6, %v839_v30, %v838_v1  ;;  %v614_v5 = vpack.c.bf16 %v582_v60, %v582_v60  ;;  %v651_v6 = vunpack.c.l.b16 %v600_v24  ;;  %v653_v19 = vunpack.c.l.b16 %v602_v0  ;;  %v1507_v60 = vld [vmem:[%s2083_s4 + $0x10] ss:$2 sm:$0x3]  ;;  %v1508_v24 = vld [vmem:[%s2083_s4 + $0x14] ss:$2 sm:$0x3] }
  0x55   : > { %v842_v18 = vsel %vm680_vm3, %v841_v41, %v840_v3  ;;  %v655_v55 = vunpack.c.l.b16 %v604_v2  ;;  %v657_v47 = vunpack.c.l.b16 %v606_v33  ;;  %v659_v48 = vunpack.c.l.b16 %v608_v35  ;;  %v1509_v0 = vld [vmem:[%s2083_s4 + $0x18] ss:$2 sm:$0x3] }
  0x56   : > { %v844_v42 = vpack.c.b16 %v842_v18, %v842_v18  ;;  %v661_v53 = vunpack.c.l.b16 %v610_v4  ;;  %v663_v58 = vunpack.c.l.b16 %v612_v40  ;;  %v665_v59 = vunpack.c.l.b16 %v614_v5 }
  0x57   : > { %v667_v7 = vrot.slane %v653_v19, 7  ;;  %v669_v8 = vrot.slane %v655_v55, 6  ;;  %v671_v10 = vrot.slane %v657_v47, 5  ;;  %v673_v25 = vrot.slane %v659_v48, 4 }
  0x58   : > { %1495 = vmatmul.msk.bf16.vlgmr.msra.gmra.mxu3 %vm753_vm7, %v844_v42  ;;  %v675_v11 = vrot.slane %v661_v53, 3  ;;  %v946_v13 = vmul.f32 %v1497_v17, %v1723_v26  ;;  %v677_v16 = vrot.slane %v663_v58, 2  ;;  %v679_v30 = vrot.slane %v665_v59, 1  ;;  %v1510_v19 = vld [vmem:[%s2083_s4 + $0x1c] ss:$2 sm:$0x3] }
  0x59   : > { %v668_v14 = vsel %vm286_vm0, %v667_v7, %v651_v6  ;;  %v947_v41 = vmul.f32 %v1498_v21, %v1725_v27  ;;  %v948_v32 = vmul.f32 %v1499_v34, %v1734_v31  ;;  %v949_v20 = vmul.f32 %v1500_v57, %v1740_v36  ;;  %v1511_v55 = vld [vmem:[%s2083_s4 + $0x20] ss:$2 sm:$0x3] }
  0x5a   : > { %v670_v43 = vsel %vm289_vm1, %v669_v8, %v668_v14  ;;  %v950_v44 = vmul.f32 %v1501_v28, %v1742_v37  ;;  %v951_v45 = vmul.f32 %v1502_v9, %v1744_v38  ;;  %v952_v26 = vmul.f32 %v1503_v12, %v1746_v39 }
  0x5b   : > { %v672_v22 = vsel %vm292_vm2, %v671_v10, %v670_v43  ;;  %v953_v23 = vadd.f32 %v1932_v54, %v1758_v49  ;;  %v954_v27 = vadd.f32 %v946_v13, %v1760_v50  ;;  %v955_v46 = vadd.f32 %v947_v41, %v1762_v51  ;;  %v1506_v54 = vld [vmem:[%s2083_s4 + $0xc] ss:$2 sm:$0x3] }
  0x5c   : > { %v674_v29 = vsel %vm295_vm4, %v673_v25, %v672_v22  ;;  %v956_v31 = vadd.f32 %v948_v32, %v1764_v52  ;;  %v957_v37 = vadd.f32 %v949_v20, %v1773_v56  ;;  %v958_v15 = vadd.f32 %v950_v44, %v1779_v61  ;;  %v1504_v52 = vld [vmem:[%s2083_s4 + $0x4] ss:$2 sm:$0x3]  ;;  %v1505_v56 = vld [vmem:[%s2083_s4 + $0x8] ss:$2 sm:$0x3] }
  0x5d   : > { %v676_v36 = vsel %vm298_vm5, %v675_v11, %v674_v29  ;;  %v959_v38 = vadd.f32 %v951_v45, %v1781_v62  ;;  %v960_v49 = vadd.f32 %v952_v26, %v1783_v63  ;;  %vm961_vm8 = vcmp.gt.f32.partialorder %v953_v23, 0.0 }
  0x5e   : > { %v678_v39 = vsel %vm301_vm6, %v677_v16, %v676_v36  ;;  %vm962_vm9 = vcmp.gt.f32.partialorder %v954_v27, 0.0  ;;  %vm963_vm10 = vcmp.gt.f32.partialorder %v955_v46, 0.0  ;;  %vm964_vm11 = vcmp.gt.f32.partialorder %v956_v31, 0.0 }
  0x5f   : > { %v681_v50 = vsel %vm680_vm3, %v679_v30, %v678_v39  ;;  %vm965_vm12 = vcmp.gt.f32.partialorder %v957_v37, 0.0  ;;  %vm966_vm13 = vcmp.gt.f32.partialorder %v958_v15, 0.0  ;;  %vm967_vm14 = vcmp.gt.f32.partialorder %v959_v38, 0.0 }
  0x60   : > { %v696_v51 = vpack.c.b16 %v681_v50, %v681_v50  ;;  %vm968_vm15 = vcmp.gt.f32.partialorder %v960_v49, 0.0  ;;  %v969_v61 = vmul.f32 0.2, %v953_v23  ;;  %v970_v62 = vmul.f32 0.2, %v954_v27 }
  0x61   : > { %v971_v63 = vmul.f32 0.2, %v955_v46  ;;  %v972_v1 = vmul.f32 0.2, %v956_v31  ;;  %v973_v2 = vmul.f32 0.2, %v957_v37 }
  0x62   : > { %765 = vmatmul.bf16.vlgmr.msra.gmra.mxu0 %v696_v51  ;;  %v974_v33 = vmul.f32 0.2, %v958_v15  ;;  %v975_v35 = vmul.f32 0.2, %v959_v38  ;;  %v976_v3 = vmul.f32 0.2, %v960_v49  ;;  %v977_v4 = vsel %vm961_vm8, %v953_v23, %v969_v61 }
  0x63   : > { %v978_v40 = vsel %vm962_vm9, %v954_v27, %v970_v62  ;;  %v979_v5 = vsel %vm963_vm10, %v955_v46, %v971_v63  ;;  %v980_v17 = vsel %vm964_vm11, %v956_v31, %v972_v1  ;;  %v981_v18 = vsel %vm965_vm12, %v957_v37, %v973_v2 }
  0x64   : > { %v982_v6 = vsel %vm966_vm13, %v958_v15, %v974_v33  ;;  %v983_v21 = vsel %vm967_vm14, %v959_v38, %v975_v35  ;;  %v984_v34 = vsel %vm968_vm15, %v960_v49, %v976_v3  ;;  %v1001_v42 = vmul.f32 %v1504_v52, %v977_v4 }
  0x65   : > { %v1002_v47 = vmul.f32 %v1505_v56, %v978_v40  ;;  %v1003_v48 = vmul.f32 %v1506_v54, %v979_v5  ;;  %v1004_v53 = vmul.f32 %v1507_v60, %v980_v17  ;;  %v1005_v57 = vmul.f32 %v1508_v24, %v981_v18 }
  0x66   : > { %v1006_v28 = vmul.f32 %v1509_v0, %v982_v6  ;;  %v1007_v58 = vmul.f32 %v1510_v19, %v983_v21  ;;  %v1008_v59 = vmul.f32 %v1511_v55, %v984_v34  ;;  %v1017_v7 = vperm.slane %v1001_v42, 0 }
  0x67   : > { %v1019_v8 = vperm.slane %v1002_v47, 0  ;;  %v1021_v9 = vperm.slane %v1003_v48, 0  ;;  %v1023_v10 = vperm.slane %v1004_v53, 0  ;;  %v1025_v25 = vperm.slane %v1005_v57, 0 }
  0x68   : > { %v1027_v11 = vperm.slane %v1006_v28, 0  ;;  %v1029_v12 = vperm.slane %v1007_v58, 0  ;;  %v1031_v13 = vperm.slane %v1008_v59, 0  ;;  %v1049_v14 = vpack.c.bf16 %v1017_v7, %v1017_v7 }
  0x69   : > { %v1051_v16 = vpack.c.bf16 %v1019_v8, %v1019_v8  ;;  %v1053_v30 = vpack.c.bf16 %v1021_v9, %v1021_v9  ;;  %v1055_v41 = vpack.c.bf16 %v1023_v10, %v1023_v10  ;;  %v1057_v43 = vpack.c.bf16 %v1025_v25, %v1025_v25 }
  0x6a   : > { %v1059_v32 = vpack.c.bf16 %v1027_v11, %v1027_v11  ;;  %v1061_v20 = vpack.c.bf16 %v1029_v12, %v1029_v12  ;;  %v1063_v44 = vpack.c.bf16 %v1031_v13, %v1031_v13  ;;  %v1100_v22 = vunpack.c.l.b16 %v1049_v14 }
  0x6b   : > { %v1102_v45 = vunpack.c.l.b16 %v1051_v16  ;;  %v1104_v26 = vunpack.c.l.b16 %v1053_v30  ;;  %v1106_v23 = vunpack.c.l.b16 %v1055_v41  ;;  %v1108_v29 = vunpack.c.l.b16 %v1057_v43 }
  0x6c   : > { %v1110_v27 = vunpack.c.l.b16 %v1059_v32  ;;  %v1112_v46 = vunpack.c.l.b16 %v1061_v20  ;;  %v1114_v31 = vunpack.c.l.b16 %v1063_v44  ;;  %v1018_v37 = vperm.slane %v1001_v42, 1 }
  0x6d   : > { %v1116_v36 = vrot.slane %v1102_v45, 7  ;;  %v1118_v15 = vrot.slane %v1104_v26, 6  ;;  %v1120_v38 = vrot.slane %v1106_v23, 5  ;;  %v1122_v39 = vrot.slane %v1108_v29, 4 }
  0x6e   : > { %v1124_v49 = vrot.slane %v1110_v27, 3  ;;  %v1126_v51 = vrot.slane %v1112_v46, 2  ;;  %v1128_v52 = vrot.slane %v1114_v31, 1  ;;  %v1020_v56 = vperm.slane %v1002_v47, 1 }
  0x6f   : > { %v1117_v50 = vsel %vm286_vm0, %v1116_v36, %v1100_v22  ;;  %v1022_v62 = vperm.slane %v1003_v48, 1  ;;  %v1024_v63 = vperm.slane %v1004_v53, 1  ;;  %v1026_v54 = vperm.slane %v1005_v57, 1 }
  0x70   : > { %v1119_v61 = vsel %vm289_vm1, %v1118_v15, %v1117_v50  ;;  %v1028_v24 = vperm.slane %v1006_v28, 1  ;;  %v1030_v0 = vperm.slane %v1007_v58, 1  ;;  %v1032_v1 = vperm.slane %v1008_v59, 1 }
  0x71   : > { %v1121_v60 = vsel %vm292_vm2, %v1120_v38, %v1119_v61  ;;  %v1050_v33 = vpack.c.bf16 %v1018_v37, %v1018_v37  ;;  %v1052_v35 = vpack.c.bf16 %v1020_v56, %v1020_v56  ;;  %v1054_v3 = vpack.c.bf16 %v1022_v62, %v1022_v62 }
  0x72   : > { %v1123_v2 = vsel %vm295_vm4, %v1122_v39, %v1121_v60  ;;  %v1056_v40 = vpack.c.bf16 %v1024_v63, %v1024_v63  ;;  %v1058_v5 = vpack.c.bf16 %v1026_v54, %v1026_v54  ;;  %v1060_v17 = vpack.c.bf16 %v1028_v24, %v1028_v24 }
  0x73   : > { %v1125_v4 = vsel %vm298_vm5, %v1124_v49, %v1123_v2  ;;  %v1062_v6 = vpack.c.bf16 %v1030_v0, %v1030_v0  ;;  %v1064_v19 = vpack.c.bf16 %v1032_v1, %v1032_v1  ;;  %v1101_v55 = vunpack.c.l.b16 %v1050_v33 }
  0x74   : > { %v1127_v18 = vsel %vm301_vm6, %v1126_v51, %v1125_v4  ;;  %v1103_v34 = vunpack.c.l.b16 %v1052_v35  ;;  %v1105_v42 = vunpack.c.l.b16 %v1054_v3  ;;  %v1107_v47 = vunpack.c.l.b16 %v1056_v40 }
  0x75   : > { %v1129_v21 = vsel %vm680_vm3, %v1128_v52, %v1127_v18  ;;  %v1109_v53 = vunpack.c.l.b16 %v1058_v5  ;;  %v1111_v57 = vunpack.c.l.b16 %v1060_v17  ;;  %v1113_v28 = vunpack.c.l.b16 %v1062_v6 }
  0x76   : > { %v1144_v48 = vpack.c.b16 %v1129_v21, %v1129_v21  ;;  %v1115_v58 = vunpack.c.l.b16 %v1064_v19  ;;  %v1130_v59 = vrot.slane %v1103_v34, 7  ;;  %v1132_v7 = vrot.slane %v1105_v42, 6 }
  0x77   : > { %v1134_v8 = vrot.slane %v1107_v47, 5  ;;  %v1136_v9 = vrot.slane %v1109_v53, 4  ;;  %v1138_v25 = vrot.slane %v1111_v57, 3  ;;  %v1140_v12 = vrot.slane %v1113_v28, 2 }
  0x78   : > { %1212 = vmatmul.bf16.vlgmr.msrb.gmra.mxu1 %v1144_v48  ;;  %v1131_v10 = vsel %vm286_vm0, %v1130_v59, %v1101_v55  ;;  %v1142_v14 = vrot.slane %v1115_v58, 1  ;;  %vm1247_vm0 = vcmask 261120   ;;  %v1616_v31 = vmov 0.0  }
  0x79   : > { %v1133_v11 = vsel %vm289_vm1, %v1132_v7, %v1131_v10  ;;  %1246 = vst [vmem:[%s2062_s28] sm:$0xff] %v1616_v31  ;;  %vm1250_vm1 = vcmask 254976  }
  0x7a   : > { %v1135_v13 = vsel %vm292_vm2, %v1134_v8, %v1133_v11  ;;  %1248 = vst.msk [vmem:[%s2062_s28 + $0x8] sm:$0xff] %vm1247_vm0, %v1616_v31  ;;  %vm1257_vm2 = vcmask 1047681  }
  0x7b   : > { %v1137_v16 = vsel %vm295_vm4, %v1136_v9, %v1135_v13  ;;  %1249 = vst [vmem:[%s2062_s28 + $0x10] sm:$0x3] %v1616_v31  ;;  %vm1259_vm4 = vcmask 130049  }
  0x7c   : > { %v1139_v30 = vsel %vm298_vm5, %v1138_v25, %v1137_v16  ;;  %1251 = vst.msk [vmem:[%s2062_s28 + $0x18] sm:$0x3] %vm1250_vm1, %v1616_v31  ;;  %vm1261_vm5 = vcmask 1040512  }
  0x7d   : > { %v1141_v41 = vsel %vm301_vm6, %v1140_v12, %v1139_v30  ;;  %vm1263_vm6 = vcmask 122880  }
  0x7e   : > { %v1143_v43 = vsel %vm680_vm3, %v1142_v14, %v1141_v41 }
  0x7f   : > { %v1145_v32 = vpack.c.b16 %v1143_v43, %v1143_v43 }
  0x81   : > { %1566 = vmatmul.msk.bf16.vlgmr.msrb.gmra.mxu3 %vm753_vm7, %v1145_v32 }
  0xb5   : > { %v779_v20 = vpop.f32.mrf.mxu1 }
  0xbd   : > { %v781_v44 = vpop.f32.mrf.mxu1 }
  0xd1   : > { %v912_v22 = vpop.f32.mrf.mxu2 }
  0xd9   : > { %v914_v45 = vpop.f32.mrf.mxu2 }
  0xdb   : > { %v925_v26 = vpop.f32.mrf.mxu3 }
  0xdf   : > { %v766_v23 = vpop.f32.mrf.mxu0 }
  0xe0   : > { %v780_v37 = vadd.f32 %v779_v20, %v766_v23 }
  0xe2   : > { %v913_v15 = vadd.f32 %v912_v22, %v780_v37 }
  0xe3   : > { %v927_v29 = vpop.f32.mrf.mxu3 }
  0xe4   : > { %v926_v39 = vadd.f32 %v925_v26, %v913_v15 }
  0xe7   : > { %v768_v27 = vpop.f32.mrf.mxu0 }
  0xf5   : > { %v1213_v46 = vpop.f32.mrf.mxu1 }
  0xfd   : > { %v1215_v36 = vpop.f32.mrf.mxu1 }
 0x104   : > { %v1226_v38 = vpop.f32.mrf.mxu3 }
 0x105   : > { %v1227_v49 = vadd.f32 %v1226_v38, %v1213_v46 }
 0x107   : > { %v1230_v50 = vadd.f32 %v1227_v49, %v926_v39 }
 0x109   : > { %v1231_v51 = vrot.slane %v1230_v50, 4  ;;  %v1238_v52 = vmul.f32 %v1230_v50, %v1230_v50  ;;  %v1253_v56 = vrot.slane %v1230_v50, 7 }
 0x10b   : > { %v1232_v61 = vadd.f32 %v1231_v51, %v1230_v50  ;;  %v1239_v62 = vrot.slane %v1238_v52, 4  ;;  %1254 = vrot.lane.b32.xlu0 %v1253_v56, %s1617_s29 }
 0x10c   : > { %v1228_v63 = vpop.f32.mrf.mxu3 }
 0x10d   : > { %v1233_v54 = vrot.slane %v1232_v61, 2  ;;  %v1240_v60 = vadd.f32 %v1239_v62, %v1238_v52 }
 0x10f   : > { %v1234_v24 = vadd.f32 %v1233_v54, %v1232_v61  ;;  %v1241_v0 = vrot.slane %v1240_v60, 2 }
 0x111   : > { %v1235_v1 = vrot.slane %v1234_v24, 1  ;;  %v1242_v2 = vadd.f32 %v1241_v0, %v1240_v60 }
 0x113   : > { %v1236_v33 = vadd.f32 %v1235_v1, %v1234_v24  ;;  %v1243_v35 = vrot.slane %v1242_v2, 1 }
 0x115   : > { %1237 = vst [vmem:[%s262_s8] sm:$0x1] %v1236_v33  ;;  %v1244_v3 = vadd.f32 %v1243_v35, %v1242_v2 }
 0x117   : > { %1245 = vst [vmem:[%s262_s8 + $0x1] sm:$0x1] %v1244_v3 }
 0x17d   : > { %v1255_v4 = vpop.permute.xlu0 %1254 }
 0x17e   : > { %1258 = vst.msk [vmem:[%s2062_s28] sm:$0xfe] %vm1257_vm2, %v1255_v4 }
 0x17f   : > { %1260 = vst.msk [vmem:[%s2062_s28 + $0x8] sm:$0xfe] %vm1259_vm4, %v1255_v4 }
 0x180   : > { %1262 = vst.msk [vmem:[%s2062_s28 + $0x10] sm:$0x1] %vm1261_vm5, %v1255_v4 }
 0x181   : > { %1264 = vst.msk [vmem:[%s2062_s28 + $0x18] sm:$0x1] %vm1263_vm6, %v1255_v4 }
 0x182 PF: > { %s17_s21 = sadd.s32 1, %s1614_s21  }
 0x183   : > { %p14_p4 = scmp.ge.s32.totalorder %s17_s21, 4  }
 0x185   :  { %16 = sbr.rel (!%p14_p4) target bundleno = 1 (0x1), region = 130 }

// kernel: discriminator_forward.6
= control target key start
LH: loop header
LB: loop body
LE: loop exit
PB: predicated region body
PF: predicated region fallthrough
CT: control target
= control target key end

     0   :  { %s1331_s21 = smov 0   ;;  %s1599_s0 = inlined_call_operand.vmem [shape: f32[2,5,2,160], index: 0, kind: input, shape index: {}]   ;;  %s1600_s1 = inlined_call_operand.vmem [shape: bf16[3,160,128], index: 1, kind: input, shape index: {}]   ;;  %s1601_s2 = inlined_call_operand.vmem [shape: f32[1,160], index: 2, kind: input, shape index: {}]   ;;  %s1602_s3 = inlined_call_operand.vmem [shape: f32[1,160], index: 3, kind: input, shape index: {}]   ;;  %s1603_s4 = inlined_call_operand.vmem [shape: f32[5,2,160], index: 4, kind: input, shape index: {}]   ;;  %s1604_s5 = inlined_call_operand.vmem [shape: f32[2,6,192], index: 5, kind: output, shape index: {0}]   ;;  %s1605_s6 = inlined_call_operand.vmem [shape: f32[2,2,128], index: 6, kind: output, shape index: {1}]  }
   0x1 LB: > { %s1048_s22 = sadd.s32 4294967295, %s1292_s21   ;;  %p1052_p0 = scmp.ge.s32.totalorder %s1292_s21, 1  ;;  %s1292_s21 = sphi %s1331_s21, %s17_s21  }
   0x2   : > { %p215_p1 = scmp.lt.s32.totalorder %s1292_s21, 3 }
   0x4   : > { %p216_p2 = pnand %p1052_p0, %p215_p1 }
   0x5   : > { %p249_p3 = scmp.lt.s32.totalorder (!%p216_p2), %s1048_s22, 1  ;;  %s1295_s9 = smov (!%p216_p2), 32  }
   0x6   : > { %219 = sbr.rel (%p216_p2) target bundleno = 330 (0x14a), region = 40 }
   0xb   : > { %v1252_v0 = vld [vmem:[%s1600_s1 + $0x38] sm:$0xff]  ;;  %v1262_v1 = vld [vmem:[%s1600_s1 + $0x88] sm:$0xff]  ;;  %v1251_v3 = vld [vmem:[%s1600_s1 + $0x30] sm:$0xff]  ;;  %s1607_s22 = smov (!%p249_p3, %s1048_s22), 1  ;;  %vm276_vm0 = vcmask 1040384   ;;  %vm278_vm1 = vcmask 1041409  }
   0xc   : > { %v1264_v2 = vld [vmem:[%s1600_s1 + $0x98] sm:$0xff]  ;;  %690 = vmatpush.bf16.msra.mxu2 %v1252_v0  ;;  %570 = vmatpush.bf16.msra.mxu0 %v1262_v1  ;;  %v1261_v4 = vld [vmem:[%s1600_s1 + $0x80] sm:$0xff]  ;;  %v1263_v5 = vld [vmem:[%s1600_s1 + $0x90] sm:$0xff]  ;;  %s1275_s15 = smul.u32 20, %s1607_s22  ;;  %vm281_vm2 = vcmask 1042434   ;;  %vm284_vm3 = vcmask 1043459  }
   0xd   : > { %589 = vmatpush.bf16.msra.mxu1 %v1264_v2  ;;  %v1272_v6 = vld [vmem:[%s1600_s1 + $0xd8] sm:$0xff]  ;;  %v1254_v7 = vld [vmem:[%s1600_s1 + $0x48] sm:$0xff]  ;;  %v1253_v10 = vld [vmem:[%s1600_s1 + $0x40] sm:$0xff]  ;;  %vm566_vm12 = vcmask 261120   ;;  %s1244_s28 = sshll.u32 %s1607_s22, 4  ;;  %s1056_s10 = sshll.u32 %s1607_s22, 1 }
   0xe   : > { %v1250_v8 = vld [vmem:[%s1600_s1 + $0x28] sm:$0xff]  ;;  %v1260_v9 = vld [vmem:[%s1600_s1 + $0x78] sm:$0xff]  ;;  %709 = vmatpush.bf16.msra.mxu3 %v1254_v7  ;;  %v271_v11 = vld [vmem:[%s1601_s2] sm:$0x3]  ;;  %s1387_s8 = scalar_lea.vmem %s1599_s0, %s1275_s15  ;;  %s1586_s7 = scalar_lea.vmem %s1604_s5, %s1244_s28 }
   0xf   : > { %v295_v12 = vld [vmem:[%s1602_s3] sm:$0x3]  ;;  %v1271_v13 = vld [vmem:[%s1600_s1 + $0xd0] sm:$0xff]  ;;  %v273_v14 = vperm.slane %v271_v11, 0  ;;  %v274_v15 = vperm.slane %v271_v11, 1  ;;  %v1270_v22 = vld [vmem:[%s1600_s1 + $0xc8] sm:$0xff]  ;;  %s262_s13 = scalar_lea.vmem %s1605_s6, %s1056_s10 }
  0x10   : > { %691 = vmatpush.bf16.msra.mxu2 %v1251_v3  ;;  %571 = vmatpush.bf16.msra.mxu0 %v1261_v4  ;;  %v298_v16 = vperm.slane %v295_v12, 1  ;;  %v1249_v17 = vld [vmem:[%s1600_s1 + $0x20] sm:$0xff]  ;;  %v1259_v18 = vld [vmem:[%s1600_s1 + $0x70] sm:$0xff]  ;;  %v297_v20 = vperm.slane %v295_v12, 0  ;;  %v1248_v24 = vld [vmem:[%s1600_s1 + $0x18] sm:$0xff] }
  0x11   : > { %590 = vmatpush.bf16.msra.mxu1 %v1263_v5  ;;  %v275_v19 = vrot.slane %v274_v15, 7  ;;  %v1063_v23 = vld [vmem:[%s1387_s8 + $0x1] ss:$2 sm:$0x3]  ;;  %v1258_v25 = vld [vmem:[%s1600_s1 + $0x68] sm:$0xff]  ;;  %v1247_v53 = vld [vmem:[%s1600_s1 + $0x10] sm:$0xff] }
  0x12   : > { %v299_v21 = vrot.slane %v298_v16, 7  ;;  %710 = vmatpush.bf16.msra.mxu3 %v1253_v10  ;;  %v1064_v30 = vld [vmem:[%s1387_s8 + $0x5] ss:$2 sm:$0x3]  ;;  %v1274_v0 = vld [vmem:[%s1600_s1 + $0xe8] sm:$0xff]  ;;  %v1268_v7 = vld [vmem:[%s1600_s1 + $0xb8] sm:$0xff] }
  0x13   : > { %v1406_v26 = vsel %vm276_vm0, %v273_v14, %v275_v19  ;;  %v279_v27 = vsel %vm278_vm1, %v273_v14, %v275_v19  ;;  %v282_v28 = vsel %vm281_vm2, %v273_v14, %v275_v19  ;;  %v285_v29 = vsel %vm284_vm3, %v273_v14, %v275_v19  ;;  %v1065_v31 = vld [vmem:[%s1387_s8 + $0x9] ss:$2 sm:$0x3]  ;;  %v1066_v36 = vld [vmem:[%s1387_s8 + $0xd] ss:$2 sm:$0x3] }
  0x14   : > { %692 = vmatpush.bf16.msra.mxu2 %v1250_v8  ;;  %572 = vmatpush.bf16.msra.mxu0 %v1260_v9  ;;  %v1413_v32 = vrot.slane %v279_v27, 1  ;;  %v1415_v33 = vrot.slane %v282_v28, 2  ;;  %v1417_v34 = vrot.slane %v285_v29, 3  ;;  %v1420_v35 = vsel %vm276_vm0, %v297_v20, %v299_v21  ;;  %v264_v40 = vld [vmem:[%s1387_s8] ss:$2 sm:$0x3] }
  0x15   : > { %899 = vmatpush.bf16.msrb.mxu1 %v1272_v6  ;;  %v301_v37 = vsel %vm278_vm1, %v297_v20, %v299_v21  ;;  %v303_v38 = vsel %vm281_vm2, %v297_v20, %v299_v21  ;;  %v305_v39 = vsel %vm284_vm3, %v297_v20, %v299_v21  ;;  %v1057_v41 = vld [vmem:[%s1387_s8 + $0x4] ss:$2 sm:$0x3]  ;;  %v394_v45 = vmul.f32 %v1063_v23, %v1406_v26  ;;  %v1058_v46 = vld [vmem:[%s1387_s8 + $0x8] ss:$2 sm:$0x3] }
  0x16   : > { %v1428_v42 = vrot.slane %v301_v37, 1  ;;  %v1430_v43 = vrot.slane %v303_v38, 2  ;;  %v1432_v44 = vrot.slane %v305_v39, 3  ;;  %v1269_v47 = vld [vmem:[%s1600_s1 + $0xc0] sm:$0xff]  ;;  %v395_v48 = vmul.f32 %v1064_v30, %v1413_v32  ;;  %918 = vmatpush.bf16.msrb.mxu3 %v1274_v0  ;;  %v1256_v14 = vld [vmem:[%s1600_s1 + $0x58] sm:$0xff]  ;;  %v1267_v27 = vld [vmem:[%s1600_s1 + $0xb0] sm:$0xff] }
  0x17   : > { %v396_v49 = vmul.f32 %v1065_v31, %v1415_v33  ;;  %v397_v50 = vmul.f32 %v1066_v36, %v1417_v34  ;;  %v1059_v51 = vld [vmem:[%s1387_s8 + $0xc] ss:$2 sm:$0x3]  ;;  %v291_v52 = vmul.f32 %v1406_v26, %v264_v40  ;;  %v398_v54 = vadd.f32 %v394_v45, %v1420_v35  ;;  %v1067_v55 = vld [vmem:[%s1603_s4 + $0x1] ss:$2 sm:$0x3] }
  0x18   : > { %693 = vmatpush.bf16.msra.mxu2 %v1249_v17  ;;  %573 = vmatpush.bf16.msra.mxu0 %v1259_v18  ;;  %v292_v56 = vmul.f32 %v1057_v41, %v1413_v32  ;;  %v293_v57 = vmul.f32 %v1058_v46, %v1415_v33  ;;  %v294_v58 = vmul.f32 %v1059_v51, %v1417_v34  ;;  %v1257_v59 = vld [vmem:[%s1600_s1 + $0x60] sm:$0xff]  ;;  %v1069_v2 = vld [vmem:[%s1603_s4 + $0x9] ss:$2 sm:$0x3]  ;;  %v1255_v41 = vld [vmem:[%s1600_s1 + $0x50] sm:$0xff] }
  0x19   : > { %900 = vmatpush.bf16.msrb.mxu1 %v1271_v13  ;;  %v399_v60 = vadd.f32 %v395_v48, %v1428_v42  ;;  %v400_v61 = vadd.f32 %v396_v49, %v1430_v43  ;;  %v401_v62 = vadd.f32 %v397_v50, %v1432_v44  ;;  %v1068_v63 = vld [vmem:[%s1603_s4 + $0x5] ss:$2 sm:$0x3]  ;;  %vm402_vm4 = vcmp.gt.f32.partialorder %v398_v54, 0.0  ;;  %v1246_v13 = vld [vmem:[%s1600_s1 + $0x8] sm:$0xff] }
  0x1a   : > { %v406_v1 = vmul.f32 0.2, %v398_v54  ;;  %v1070_v3 = vld [vmem:[%s1603_s4 + $0xd] ss:$2 sm:$0x3]  ;;  %v311_v4 = vadd.f32 %v1420_v35, %v291_v52  ;;  %v312_v5 = vadd.f32 %v1428_v42, %v292_v56  ;;  %v313_v11 = vadd.f32 %v1430_v43, %v293_v57  ;;  %v1273_v12 = vld [vmem:[%s1600_s1 + $0xe0] sm:$0xff] }
  0x1b   : > { %vm403_vm5 = vcmp.gt.f32.partialorder %v399_v60, 0.0  ;;  %vm404_vm6 = vcmp.gt.f32.partialorder %v400_v61, 0.0  ;;  %vm405_vm7 = vcmp.gt.f32.partialorder %v401_v62, 0.0  ;;  %v407_v6 = vmul.f32 0.2, %v399_v60  ;;  %919 = vmatpush.bf16.msrb.mxu3 %v1273_v12  ;;  %v1245_v40 = vld [vmem:[%s1600_s1] sm:$0xff] }
  0x1c   : > { %694 = vmatpush.bf16.msra.mxu2 %v1248_v24  ;;  %574 = vmatpush.bf16.msra.mxu0 %v1258_v25  ;;  %v408_v8 = vmul.f32 0.2, %v400_v61  ;;  %v409_v9 = vmul.f32 0.2, %v401_v62  ;;  %v410_v10 = vsel %vm402_vm4, %v398_v54, %v406_v1  ;;  %v314_v17 = vadd.f32 %v1432_v44, %v294_v58  ;;  %v1266_v54 = vld [vmem:[%s1600_s1 + $0xa8] sm:$0xff] }
  0x1d   : > { %901 = vmatpush.bf16.msrb.mxu1 %v1270_v22  ;;  %v411_v15 = vsel %vm403_vm5, %v399_v60, %v407_v6  ;;  %v1487_v16 = vmul.f32 %v1067_v55, %v410_v10  ;;  %vm315_vm8 = vcmp.gt.f32.partialorder %v311_v4, 0.0  ;;  %vm316_vm9 = vcmp.gt.f32.partialorder %v312_v5, 0.0  ;;  %v327_v24 = vld [vmem:[%s1603_s4] ss:$2 sm:$0x3] }
  0x1e   : > { %v412_v18 = vsel %vm404_vm6, %v400_v61, %v408_v8  ;;  %v413_v19 = vsel %vm405_vm7, %v401_v62, %v409_v9  ;;  %v1492_v20 = vmul.f32 %v1068_v63, %v411_v15  ;;  %vm317_vm10 = vcmp.gt.f32.partialorder %v313_v11, 0.0  ;;  %v1060_v25 = vld [vmem:[%s1603_s4 + $0x4] ss:$2 sm:$0x3] }
  0x1f   : > { %v1494_v21 = vmul.f32 %v1069_v2, %v412_v18  ;;  %v1496_v22 = vmul.f32 %v1070_v3, %v413_v19  ;;  %v431_v23 = vperm.slane %v1487_v16, 1  ;;  %vm318_vm11 = vcmp.gt.f32.partialorder %v314_v17, 0.0  ;;  %v1061_v31 = vld [vmem:[%s1603_s4 + $0x8] ss:$2 sm:$0x3] }
  0x20   : > { %695 = vmatpush.bf16.msra.mxu2 %v1247_v53  ;;  %575 = vmatpush.bf16.msra.mxu0 %v1257_v59  ;;  %v433_v28 = vperm.slane %v1492_v20, 1  ;;  %v319_v29 = vmul.f32 0.2, %v311_v4  ;;  %v320_v30 = vmul.f32 0.2, %v312_v5  ;;  %vm954_vm4 = vcmask 258049  }
  0x21   : > { %902 = vmatpush.bf16.msrb.mxu1 %v1269_v47  ;;  %v435_v36 = vperm.slane %v1494_v21, 1  ;;  %v437_v37 = vperm.slane %v1496_v22, 1  ;;  %v447_v38 = vpack.c.bf16 %v431_v23, %v431_v23  ;;  %v321_v39 = vmul.f32 0.2, %v313_v11 }
  0x22   : > { %v449_v45 = vpack.c.bf16 %v433_v28, %v433_v28  ;;  %v322_v46 = vmul.f32 0.2, %v314_v17  ;;  %v323_v47 = vsel %vm315_vm8, %v311_v4, %v319_v29  ;;  %v324_v48 = vsel %vm316_vm9, %v312_v5, %v320_v30  ;;  %v1062_v49 = vld [vmem:[%s1603_s4 + $0xc] ss:$2 sm:$0x3] }
  0x23   : > { %v451_v50 = vpack.c.bf16 %v435_v36, %v435_v36  ;;  %v453_v51 = vpack.c.bf16 %v437_v37, %v437_v37  ;;  %v484_v52 = vunpack.c.l.b16 %v447_v38  ;;  %v325_v53 = vsel %vm317_vm10, %v313_v11, %v321_v39 }
  0x24   : > { %696 = vmatpush.bf16.msra.mxu2 %v1246_v13  ;;  %576 = vmatpush.bf16.msra.mxu0 %v1256_v14  ;;  %v486_v55 = vunpack.c.l.b16 %v449_v45  ;;  %v326_v56 = vsel %vm318_vm11, %v314_v17, %v322_v46  ;;  %v334_v57 = vmul.f32 %v327_v24, %v323_v47  ;;  %v335_v58 = vmul.f32 %v1060_v25, %v324_v48  ;;  %v1173_v48 = vld [vmem:[%s1387_s8 + $0x4] ss:$2 sm:$0x3] }
  0x25   : > { %903 = vmatpush.bf16.msrb.mxu1 %v1268_v7  ;;  %v488_v59 = vunpack.c.l.b16 %v451_v50  ;;  %v490_v60 = vunpack.c.l.b16 %v453_v51  ;;  %v336_v61 = vmul.f32 %v1061_v31, %v325_v53  ;;  %v337_v62 = vmul.f32 %v1062_v49, %v326_v56  ;;  %v1265_v7 = vld [vmem:[%s1600_s1 + $0xa0] sm:$0xff]  ;;  %v1174_v53 = vld [vmem:[%s1387_s8 + $0x8] ss:$2 sm:$0x3] }
  0x26   : > { %v497_v63 = vrot.slane %v486_v55, 7  ;;  %v343_v0 = vperm.slane %v334_v57, 1  ;;  %v345_v1 = vperm.slane %v335_v58, 1  ;;  %v342_v2 = vperm.slane %v334_v57, 0 }
  0x27   : > { %v499_v3 = vrot.slane %v488_v59, 6  ;;  %v501_v4 = vrot.slane %v490_v60, 5  ;;  %v347_v5 = vperm.slane %v336_v61, 1  ;;  %v349_v6 = vperm.slane %v337_v62, 1 }
  0x28   : > { %697 = vmatpush.bf16.msra.mxu2 %v1245_v40  ;;  %577 = vmatpush.bf16.msra.mxu0 %v1255_v41  ;;  %v498_v8 = vsel %vm278_vm1, %v497_v63, %v484_v52  ;;  %v359_v9 = vpack.c.bf16 %v343_v0, %v343_v0  ;;  %v361_v10 = vpack.c.bf16 %v345_v1, %v345_v1  ;;  %v344_v11 = vperm.slane %v335_v58, 0 }
  0x29   : > { %904 = vmatpush.bf16.msrb.mxu1 %v1267_v27  ;;  %v500_v12 = vsel %vm281_vm2, %v499_v3, %v498_v8  ;;  %v363_v13 = vpack.c.bf16 %v347_v5, %v347_v5  ;;  %v365_v14 = vpack.c.bf16 %v349_v6, %v349_v6  ;;  %v346_v15 = vperm.slane %v336_v61, 0  ;;  %v1175_v61 = vld [vmem:[%s1387_s8 + $0xc] ss:$2 sm:$0x3] }
  0x2a   : > { %v502_v17 = vsel %vm284_vm3, %v501_v4, %v500_v12  ;;  %v605_v18 = vunpack.c.l.b16 %v359_v9  ;;  %v607_v19 = vunpack.c.l.b16 %v361_v10  ;;  %v348_v23 = vperm.slane %v337_v62, 0  ;;  %v1176_v62 = vld [vmem:[%s1387_s8 + $0x10] ss:$2 sm:$0x3] }
  0x2b   : > { %v504_v24 = vpack.c.b16 %v502_v17, %v502_v17  ;;  %v609_v25 = vunpack.c.l.b16 %v363_v13  ;;  %v611_v27 = vunpack.c.l.b16 %v365_v14  ;;  %v358_v28 = vpack.c.bf16 %v342_v2, %v342_v2  ;;  %v1177_v14 = vld [vmem:[%s1603_s4 + $0x4] ss:$2 sm:$0x3] }
  0x2c   : > { %v618_v29 = vrot.slane %v607_v19, 7  ;;  %v360_v30 = vpack.c.bf16 %v344_v11, %v344_v11  ;;  %v362_v31 = vpack.c.bf16 %v346_v15, %v346_v15  ;;  %v364_v36 = vpack.c.bf16 %v348_v23, %v348_v23 }
  0x2d   : > { %905 = vmatpush.bf16.msrb.mxu1 %v1266_v54  ;;  %v620_v37 = vrot.slane %v609_v25, 6  ;;  %v622_v38 = vrot.slane %v611_v27, 5  ;;  %v604_v39 = vunpack.c.l.b16 %v358_v28  ;;  %v430_v40 = vperm.slane %v1487_v16, 0 }
  0x2e   : > { %1131 = vmatmul.msk.bf16.vlgmr.msra.gmra.mxu1 %vm566_vm12, %v504_v24  ;;  %v619_v41 = vsel %vm278_vm1, %v618_v29, %v605_v18  ;;  %v606_v45 = vunpack.c.l.b16 %v360_v30  ;;  %v608_v46 = vunpack.c.l.b16 %v362_v31  ;;  %v610_v47 = vunpack.c.l.b16 %v364_v36 }
  0x2f   : > { %v621_v49 = vsel %vm281_vm2, %v620_v37, %v619_v41  ;;  %v432_v50 = vperm.slane %v1492_v20, 0  ;;  %v434_v51 = vperm.slane %v1494_v21, 0  ;;  %v436_v52 = vperm.slane %v1496_v22, 0 }
  0x30   : > { %v623_v54 = vsel %vm284_vm3, %v622_v38, %v621_v49  ;;  %v612_v16 = vrot.slane %v606_v45, 7  ;;  %v614_v55 = vrot.slane %v608_v46, 6  ;;  %v616_v56 = vrot.slane %v610_v47, 5 }
  0x31   : > { %906 = vmatpush.bf16.msrb.mxu1 %v1265_v7  ;;  %v625_v57 = vpack.c.b16 %v623_v54, %v623_v54  ;;  %v446_v58 = vpack.c.bf16 %v430_v40, %v430_v40  ;;  %v448_v59 = vpack.c.bf16 %v432_v50, %v432_v50  ;;  %v450_v60 = vpack.c.bf16 %v434_v51, %v434_v51 }
  0x32   : > { %v613_v63 = vsel %vm278_vm1, %v612_v16, %v604_v39  ;;  %v452_v0 = vpack.c.bf16 %v436_v52, %v436_v52  ;;  %v724_v20 = vmul.f32 %v1173_v48, %v1406_v26  ;;  %v725_v21 = vmul.f32 %v1174_v53, %v1413_v32 }
  0x33   : > { %1172 = vmatmul.msk.bf16.vlgmr.msra.gmra.mxu3 %vm566_vm12, %v625_v57  ;;  %v615_v22 = vsel %vm281_vm2, %v614_v55, %v613_v63  ;;  %v483_v1 = vunpack.c.l.b16 %v446_v58  ;;  %v485_v2 = vunpack.c.l.b16 %v448_v59  ;;  %v487_v3 = vunpack.c.l.b16 %v450_v60 }
  0x34   : > { %v617_v4 = vsel %vm284_vm3, %v616_v56, %v615_v22  ;;  %v489_v5 = vunpack.c.l.b16 %v452_v0  ;;  %v726_v6 = vmul.f32 %v1175_v61, %v1415_v33  ;;  %v727_v7 = vmul.f32 %v1176_v62, %v1417_v34 }
  0x35   : > { %v624_v8 = vpack.c.b16 %v617_v4, %v617_v4  ;;  %v491_v9 = vrot.slane %v485_v2, 7  ;;  %v493_v10 = vrot.slane %v487_v3, 6  ;;  %v728_v26 = vadd.f32 %v724_v20, %v1420_v35  ;;  %v1178_v35 = vld [vmem:[%s1603_s4 + $0x8] ss:$2 sm:$0x3] }
  0x36   : > { %v495_v32 = vrot.slane %v489_v5, 5  ;;  %v729_v11 = vadd.f32 %v725_v21, %v1428_v42  ;;  %v730_v12 = vadd.f32 %v726_v6, %v1430_v43  ;;  %v731_v13 = vadd.f32 %v727_v7, %v1432_v44  ;;  %v1179_v42 = vld [vmem:[%s1603_s4 + $0xc] ss:$2 sm:$0x3] }
  0x37   : > { %698 = vmatmul.bf16.vlgmr.msra.gmra.mxu2 %v624_v8  ;;  %v492_v33 = vsel %vm278_vm1, %v491_v9, %v483_v1  ;;  %vm732_vm13 = vcmp.gt.f32.partialorder %v728_v26, 0.0  ;;  %v736_v34 = vmul.f32 0.2, %v728_v26  ;;  %v1180_v44 = vld [vmem:[%s1603_s4 + $0x10] ss:$2 sm:$0x3] }
  0x38   : > { %v494_v43 = vsel %vm281_vm2, %v493_v10, %v492_v33  ;;  %vm733_vm14 = vcmp.gt.f32.partialorder %v729_v11, 0.0  ;;  %vm734_vm15 = vcmp.gt.f32.partialorder %v730_v12, 0.0  ;;  %vm735_vm0 = vcmp.gt.f32.partialorder %v731_v13, 0.0 }
  0x39   : > { %v496_v15 = vsel %vm284_vm3, %v495_v32, %v494_v43  ;;  %v737_v17 = vmul.f32 0.2, %v729_v11  ;;  %v738_v18 = vmul.f32 0.2, %v730_v12  ;;  %v739_v19 = vmul.f32 0.2, %v731_v13 }
  0x3a   : > { %v503_v23 = vpack.c.b16 %v496_v15, %v496_v15  ;;  %v740_v24 = vsel %vm732_vm13, %v728_v26, %v736_v34  ;;  %v1294_v34 = vmov 0.0  }
  0x3b   : > { %v741_v25 = vsel %vm733_vm14, %v729_v11, %v737_v17  ;;  %v742_v27 = vsel %vm734_vm15, %v730_v12, %v738_v18  ;;  %v743_v28 = vsel %vm735_vm0, %v731_v13, %v739_v19  ;;  %v752_v29 = vmul.f32 %v1177_v14, %v740_v24  ;;  %944 = vst [vmem:[%s1586_s7] sm:$0x3f] %v1294_v34 }
  0x3c   : > { %578 = vmatmul.bf16.vlgmr.msra.gmra.mxu0 %v503_v23  ;;  %v753_v30 = vmul.f32 %v1178_v35, %v741_v25  ;;  %v754_v31 = vmul.f32 %v1179_v42, %v742_v27  ;;  %v755_v36 = vmul.f32 %v1180_v44, %v743_v28 }
  0x3d   : > { %v760_v37 = vperm.slane %v752_v29, 0  ;;  %v761_v38 = vperm.slane %v752_v29, 1 }
  0x3e   : > { %v762_v39 = vperm.slane %v753_v30, 0  ;;  %v764_v40 = vperm.slane %v754_v31, 0  ;;  %v766_v41 = vperm.slane %v755_v36, 0  ;;  %v763_v45 = vperm.slane %v753_v30, 1 }
  0x3f   : > { %v776_v46 = vpack.c.bf16 %v760_v37, %v760_v37  ;;  %v765_v47 = vperm.slane %v754_v31, 1  ;;  %v767_v48 = vperm.slane %v755_v36, 1  ;;  %v777_v49 = vpack.c.bf16 %v761_v38, %v761_v38 }
  0x40   : > { %v778_v50 = vpack.c.bf16 %v762_v39, %v762_v39  ;;  %v780_v51 = vpack.c.bf16 %v764_v40, %v764_v40  ;;  %v782_v52 = vpack.c.bf16 %v766_v41, %v766_v41  ;;  %v779_v53 = vpack.c.bf16 %v763_v45, %v763_v45 }
  0x41   : > { %v813_v54 = vunpack.c.l.b16 %v776_v46  ;;  %v781_v16 = vpack.c.bf16 %v765_v47, %v765_v47  ;;  %v783_v55 = vpack.c.bf16 %v767_v48, %v767_v48  ;;  %v814_v56 = vunpack.c.l.b16 %v777_v49 }
  0x42   : > { %v815_v57 = vunpack.c.l.b16 %v778_v50  ;;  %v817_v58 = vunpack.c.l.b16 %v780_v51  ;;  %v819_v59 = vunpack.c.l.b16 %v782_v52  ;;  %v816_v60 = vunpack.c.l.b16 %v779_v53 }
  0x43   : > { %v818_v61 = vunpack.c.l.b16 %v781_v16  ;;  %v820_v62 = vunpack.c.l.b16 %v783_v55 }
  0x44   : > { %v821_v63 = vrot.slane %v815_v57, 7  ;;  %v823_v0 = vrot.slane %v817_v58, 6  ;;  %v825_v20 = vrot.slane %v819_v59, 5  ;;  %v827_v21 = vrot.slane %v816_v60, 7 }
  0x45   : > { %v829_v22 = vrot.slane %v818_v61, 6  ;;  %v831_v1 = vrot.slane %v820_v62, 5 }
  0x46   : > { %v822_v2 = vsel %vm278_vm1, %v821_v63, %v813_v54  ;;  %v828_v3 = vsel %vm278_vm1, %v827_v21, %v814_v56  ;;  %vm945_vm1 = vcmask 521216  }
  0x47   : > { %v824_v4 = vsel %vm281_vm2, %v823_v0, %v822_v2  ;;  %v830_v5 = vsel %vm281_vm2, %v829_v22, %v828_v3  ;;  %946 = vst.msk [vmem:[%s1586_s7 + $0x8] sm:$0x3f] %vm945_vm1, %v1294_v34  ;;  %vm926_vm2 = vcmask 1043456  }
  0x48   : > { %v826_v6 = vsel %vm284_vm3, %v825_v20, %v824_v4  ;;  %v832_v7 = vsel %vm284_vm3, %v831_v1, %v830_v5  ;;  %vm952_vm3 = vcmask 1044737  }
  0x49   : > { %v833_v8 = vpack.c.b16 %v826_v6, %v826_v6  ;;  %v834_v9 = vpack.c.b16 %v832_v7, %v832_v7 }
  0x4b   : > { %907 = vmatmul.bf16.vlgmr.msrb.gmra.mxu1 %v833_v8  ;;  %1241 = vmatmul.msk.bf16.vlgmr.msrb.gmra.mxu3 %vm566_vm12, %v834_v9 }
  0xab   : > { %v592_v10 = vpop.f32.mrf.mxu1 }
  0xb3   : > { %v594_v26 = vpop.f32.mrf.mxu1 }
  0xb6   : > { %v712_v32 = vpop.f32.mrf.mxu3 }
  0xb9   : > { %v579_v11 = vpop.f32.mrf.mxu0 }
  0xba   : > { %v699_v12 = vpop.f32.mrf.mxu2  ;;  %v593_v35 = vadd.f32 %v592_v10, %v579_v11 }
  0xbc   : > { %v700_v43 = vadd.f32 %v699_v12, %v593_v35 }
  0xbe   : > { %v714_v13 = vpop.f32.mrf.mxu3  ;;  %v713_v15 = vadd.f32 %v712_v32, %v700_v43 }
  0xc1   : > { %v581_v14 = vpop.f32.mrf.mxu0 }
  0xc2   : > { %v701_v33 = vpop.f32.mrf.mxu2 }
  0xc8   : > { %v908_v42 = vpop.f32.mrf.mxu1 }
  0xce   : > { %v921_v44 = vpop.f32.mrf.mxu3 }
  0xcf   : > { %v922_v17 = vadd.f32 %v921_v44, %v908_v42 }
  0xd0   : > { %v910_v18 = vpop.f32.mrf.mxu1 }
  0xd1   : > { %v925_v19 = vadd.f32 %v922_v17, %v713_v15 }
  0xd3   : > { %v927_v23 = vsel %vm926_vm2, %v925_v19, 0.0  ;;  %v935_v24 = vmul.f32 %v925_v19, %v925_v19  ;;  %v948_v25 = vrot.slane %v925_v19, 7 }
  0xd4   : > { %v928_v27 = vrot.slane %v927_v23, 4 }
  0xd5   : > { %v936_v28 = vsel %vm926_vm2, %v935_v24, 0.0  ;;  %949 = vrot.lane.b32.xlu0 %v948_v25, %s1295_s9 }
  0xd6   : > { %v929_v29 = vadd.f32 %v928_v27, %v927_v23  ;;  %v937_v30 = vrot.slane %v936_v28, 4  ;;  %v923_v31 = vpop.f32.mrf.mxu3 }
  0xd8   : > { %v930_v36 = vrot.slane %v929_v29, 2  ;;  %v938_v37 = vadd.f32 %v937_v30, %v936_v28 }
  0xda   : > { %v931_v38 = vadd.f32 %v930_v36, %v929_v29  ;;  %v939_v39 = vrot.slane %v938_v37, 2 }
  0xdc   : > { %v932_v40 = vrot.slane %v931_v38, 1  ;;  %v940_v41 = vadd.f32 %v939_v39, %v938_v37 }
  0xde   : > { %v933_v45 = vadd.f32 %v932_v40, %v931_v38  ;;  %v941_v46 = vrot.slane %v940_v41, 1 }
  0xe0   : > { %934 = vst [vmem:[%s262_s13] sm:$0x1] %v933_v45  ;;  %v942_v47 = vadd.f32 %v941_v46, %v940_v41 }
  0xe2   : > { %943 = vst [vmem:[%s262_s13 + $0x1] sm:$0x1] %v942_v47 }
 0x147   : > { %v950_v48 = vpop.permute.xlu0 %949 }
 0x148   : > { %953 = vst.msk [vmem:[%s1586_s7] sm:$0x1e] %vm952_vm3, %v950_v48 }
 0x149   : > { %955 = vst.msk [vmem:[%s1586_s7 + $0x8] sm:$0x1e] %vm954_vm4, %v950_v48 }
 0x14a PF: > { %s17_s21 = sadd.s32 1, %s1292_s21  }
 0x14b   : > { %p14_p4 = scmp.ge.s32.totalorder %s17_s21, 4  }
 0x14d   :  { %16 = sbr.rel (!%p14_p4) target bundleno = 1 (0x1), region = 106 }

// kernel: discriminator_forward.7
= control target key start
LH: loop header
LB: loop body
LE: loop exit
PB: predicated region body
PF: predicated region fallthrough
CT: control target
= control target key end

     0   :  { %s1216_s21 = smov 0   ;;  %s1394_s0 = inlined_call_operand.vmem [shape: f32[2,3,2,192], index: 0, kind: input, shape index: {}]   ;;  %s1395_s1 = inlined_call_operand.vmem [shape: bf16[3,192,128], index: 1, kind: input, shape index: {}]   ;;  %s1396_s2 = inlined_call_operand.vmem [shape: f32[1,192], index: 2, kind: input, shape index: {}]   ;;  %s1397_s3 = inlined_call_operand.vmem [shape: f32[1,192], index: 3, kind: input, shape index: {}]   ;;  %s1398_s4 = inlined_call_operand.vmem [shape: f32[3,2,192], index: 4, kind: input, shape index: {}]   ;;  %s1399_s5 = inlined_call_operand.vmem [shape: f32[2,2,128], index: 5, kind: output, shape index: {0}]   ;;  %s1400_s6 = inlined_call_operand.vmem [shape: f32[2,2,128], index: 6, kind: output, shape index: {1}]  }
   0x1 LB: > { %s913_s22 = sadd.s32 4294967295, %s1179_s21   ;;  %p917_p0 = scmp.ge.s32.totalorder %s1179_s21, 1  ;;  %s1179_s21 = sphi %s1216_s21, %s17_s21  }
   0x2   : > { %p215_p1 = scmp.lt.s32.totalorder %s1179_s21, 3 }
   0x4   : > { %p216_p2 = pnand %p917_p0, %p215_p1 }
   0x5   : > { %p248_p3 = scmp.lt.s32.totalorder (!%p216_p2), %s913_s22, 1 }
   0x6   : > { %219 = sbr.rel (%p216_p2) target bundleno = 212 (0xd4), region = 40 }
   0xb   : > { %v1147_v0 = vld [vmem:[%s1395_s1 + $0x98] sm:$0xff]  ;;  %v1146_v3 = vld [vmem:[%s1395_s1 + $0x90] sm:$0xff]  ;;  %s1402_s22 = smov (!%p248_p3, %s913_s22), 1  ;;  %v1145_v8 = vld [vmem:[%s1395_s1 + $0x88] sm:$0xff]  ;;  %vm270_vm0 = vcmask 1040384   ;;  %vm272_vm1 = vcmask 1041409  }
   0xc   : > { %v1151_v1 = vld [vmem:[%s1395_s1 + $0xb8] sm:$0xff]  ;;  %490 = vmatpush.bf16.msra.mxu0 %v1147_v0  ;;  %v1150_v4 = vld [vmem:[%s1395_s1 + $0xb0] sm:$0xff]  ;;  %v1149_v9 = vld [vmem:[%s1395_s1 + $0xa8] sm:$0xff]  ;;  %s1164_s19 = smul.u32 12, %s1402_s22  ;;  %vm486_vm8 = vcmask 523264   ;;  %s919_s27 = sshll.u32 %s1402_s22, 1 }
   0xd   : > { %v1135_v2 = vld [vmem:[%s1395_s1 + $0x38] sm:$0xff]  ;;  %507 = vmatpush.bf16.msra.mxu1 %v1151_v1  ;;  %v1134_v5 = vld [vmem:[%s1395_s1 + $0x30] sm:$0xff]  ;;  %v1133_v10 = vld [vmem:[%s1395_s1 + $0x28] sm:$0xff]  ;;  %s256_s30 = scalar_lea.vmem %s1399_s5, %s919_s27  ;;  %vm808_vm9 = vcmask 1041408   ;;  %s260_s8 = scalar_lea.vmem %s1400_s6, %s919_s27 }
   0xe   : > { %606 = vmatpush.bf16.msra.mxu2 %v1135_v2  ;;  %v1139_v6 = vld [vmem:[%s1395_s1 + $0x58] sm:$0xff]  ;;  %v1138_v7 = vld [vmem:[%s1395_s1 + $0x50] sm:$0xff]  ;;  %v265_v11 = vld [vmem:[%s1396_s2] sm:$0x3]  ;;  %s1281_s14 = scalar_lea.vmem %s1394_s0, %s1164_s19 }
   0xf   : > { %623 = vmatpush.bf16.msra.mxu3 %v1139_v6  ;;  %v279_v12 = vld [vmem:[%s1397_s3] sm:$0x3]  ;;  %v1137_v13 = vld [vmem:[%s1395_s1 + $0x48] sm:$0xff]  ;;  %v267_v14 = vperm.slane %v265_v11, 0  ;;  %v268_v15 = vperm.slane %v265_v11, 1  ;;  %v1159_v21 = vld [vmem:[%s1395_s1 + $0xf8] sm:$0xff] }
  0x10   : > { %491 = vmatpush.bf16.msra.mxu0 %v1146_v3  ;;  %v281_v16 = vperm.slane %v279_v12, 0  ;;  %v282_v17 = vperm.slane %v279_v12, 1  ;;  %v1144_v18 = vld [vmem:[%s1395_s1 + $0x80] sm:$0xff]  ;;  %v1143_v33 = vld [vmem:[%s1395_s1 + $0x78] sm:$0xff]  ;;  %v1158_v40 = vld [vmem:[%s1395_s1 + $0xf0] sm:$0xff] }
  0x11   : > { %508 = vmatpush.bf16.msra.mxu1 %v1150_v4  ;;  %v1148_v19 = vld [vmem:[%s1395_s1 + $0xa0] sm:$0xff]  ;;  %v269_v22 = vrot.slane %v268_v15, 7  ;;  %v1163_v38 = vld [vmem:[%s1395_s1 + $0x118] sm:$0xff]  ;;  %v1142_v41 = vld [vmem:[%s1395_s1 + $0x70] sm:$0xff] }
  0x12   : > { %607 = vmatpush.bf16.msra.mxu2 %v1134_v5  ;;  %v1132_v20 = vld [vmem:[%s1395_s1 + $0x20] sm:$0xff]  ;;  %v283_v23 = vrot.slane %v282_v17, 7  ;;  %v1131_v39 = vld [vmem:[%s1395_s1 + $0x18] sm:$0xff]  ;;  %v1130_v47 = vld [vmem:[%s1395_s1 + $0x10] sm:$0xff] }
  0x13   : > { %624 = vmatpush.bf16.msra.mxu3 %v1138_v7  ;;  %v923_v24 = vld [vmem:[%s1281_s14 + $0x1] ss:$2 sm:$0x3]  ;;  %v262_v26 = vld [vmem:[%s1281_s14] ss:$2 sm:$0x3]  ;;  %v271_v27 = vsel %vm270_vm0, %v267_v14, %v269_v22  ;;  %v273_v28 = vsel %vm272_vm1, %v267_v14, %v269_v22 }
  0x14   : > { %492 = vmatpush.bf16.msra.mxu0 %v1145_v8  ;;  %v1136_v25 = vld [vmem:[%s1395_s1 + $0x40] sm:$0xff]  ;;  %v284_v29 = vsel %vm270_vm0, %v281_v16, %v283_v23  ;;  %v285_v30 = vsel %vm272_vm1, %v281_v16, %v283_v23  ;;  %v274_v34 = vrot.slane %v273_v28, 1  ;;  %v344_v36 = vmul.f32 %v923_v24, %v271_v27  ;;  %v1157_v48 = vld [vmem:[%s1395_s1 + $0xe8] sm:$0xff]  ;;  %v1162_v49 = vld [vmem:[%s1395_s1 + $0x110] sm:$0xff] }
  0x15   : > { %509 = vmatpush.bf16.msra.mxu1 %v1149_v9  ;;  %v924_v31 = vld [vmem:[%s1281_s14 + $0x5] ss:$2 sm:$0x3]  ;;  %v921_v32 = vld [vmem:[%s1281_s14 + $0x4] ss:$2 sm:$0x3]  ;;  %v277_v37 = vmul.f32 %v271_v27, %v262_v26 }
  0x16   : > { %608 = vmatpush.bf16.msra.mxu2 %v1133_v10  ;;  %v286_v35 = vrot.slane %v285_v30, 1  ;;  %v345_v42 = vmul.f32 %v924_v31, %v274_v34  ;;  %v346_v43 = vadd.f32 %v344_v36, %v284_v29  ;;  %v925_v44 = vld [vmem:[%s1398_s4 + $0x1] ss:$2 sm:$0x3]  ;;  %v278_v45 = vmul.f32 %v921_v32, %v274_v34  ;;  %v1141_v2 = vld [vmem:[%s1395_s1 + $0x68] sm:$0xff]  ;;  %v1155_v30 = vld [vmem:[%s1395_s1 + $0xd8] sm:$0xff] }
  0x17   : > { %625 = vmatpush.bf16.msra.mxu3 %v1137_v13  ;;  %v289_v46 = vadd.f32 %v284_v29, %v277_v37  ;;  %v1049_v50 = vld [vmem:[%s1281_s14 + $0x4] ss:$2 sm:$0x3]  ;;  %v926_v53 = vld [vmem:[%s1398_s4 + $0x5] ss:$2 sm:$0x3] }
  0x18   : > { %493 = vmatpush.bf16.msra.mxu0 %v1144_v18  ;;  %v347_v51 = vadd.f32 %v345_v42, %v286_v35  ;;  %vm348_vm2 = vcmp.gt.f32.partialorder %v346_v43, 0.0  ;;  %v350_v52 = vmul.f32 0.2, %v346_v43  ;;  %v290_v54 = vadd.f32 %v286_v35, %v278_v45  ;;  %v1050_v55 = vld [vmem:[%s1281_s14 + $0x8] ss:$2 sm:$0x3] }
  0x19   : > { %510 = vmatpush.bf16.msra.mxu1 %v1148_v19  ;;  %vm291_vm3 = vcmp.gt.f32.partialorder %v289_v46, 0.0  ;;  %v293_v56 = vmul.f32 0.2, %v289_v46  ;;  %v297_v57 = vld [vmem:[%s1398_s4] ss:$2 sm:$0x3]  ;;  %v636_v58 = vmul.f32 %v1049_v50, %v271_v27  ;;  %v637_v59 = vmul.f32 %v1050_v55, %v274_v34 }
  0x1a   : > { %609 = vmatpush.bf16.msra.mxu2 %v1132_v20  ;;  %vm349_vm4 = vcmp.gt.f32.partialorder %v347_v51, 0.0  ;;  %v351_v60 = vmul.f32 0.2, %v347_v51  ;;  %v352_v61 = vsel %vm348_vm2, %v346_v43, %v350_v52  ;;  %vm292_vm5 = vcmp.gt.f32.partialorder %v290_v54, 0.0  ;;  %v1161_v5 = vld [vmem:[%s1395_s1 + $0x108] sm:$0xff]  ;;  %v1156_v11 = vld [vmem:[%s1395_s1 + $0xe0] sm:$0xff] }
  0x1b   : > { %626 = vmatpush.bf16.msra.mxu3 %v1136_v25  ;;  %v358_v62 = vmul.f32 %v925_v44, %v352_v61  ;;  %v294_v63 = vmul.f32 0.2, %v290_v54  ;;  %v295_v0 = vsel %vm291_vm3, %v289_v46, %v293_v56  ;;  %v922_v1 = vld [vmem:[%s1398_s4 + $0x4] ss:$2 sm:$0x3]  ;;  %v638_v6 = vadd.f32 %v636_v58, %v284_v29  ;;  %v1129_v7 = vld [vmem:[%s1395_s1 + $0x8] sm:$0xff] }
  0x1c   : > { %494 = vmatpush.bf16.msra.mxu0 %v1143_v33  ;;  %v353_v3 = vsel %vm349_vm4, %v347_v51, %v351_v60  ;;  %v300_v4 = vmul.f32 %v297_v57, %v295_v0  ;;  %v639_v16 = vadd.f32 %v637_v59, %v286_v35  ;;  %v1140_v23 = vld [vmem:[%s1395_s1 + $0x60] sm:$0xff]  ;;  %v1052_v44 = vld [vmem:[%s1398_s4 + $0x8] ss:$2 sm:$0x3] }
  0x1d   : > { %781 = vmatpush.bf16.msrb.mxu1 %v1159_v21  ;;  %v359_v8 = vmul.f32 %v926_v53, %v353_v3  ;;  %v363_v9 = vperm.slane %v358_v62, 1  ;;  %v296_v10 = vsel %vm292_vm5, %v290_v54, %v294_v63  ;;  %v362_v12 = vperm.slane %v358_v62, 0  ;;  %v1160_v26 = vld [vmem:[%s1395_s1 + $0x100] sm:$0xff]  ;;  %v1153_v62 = vld [vmem:[%s1395_s1 + $0xc8] sm:$0xff] }
  0x1e   : > { %610 = vmatpush.bf16.msra.mxu2 %v1131_v39  ;;  %v301_v13 = vmul.f32 %v922_v1, %v296_v10  ;;  %v305_v14 = vperm.slane %v300_v4, 1  ;;  %v304_v15 = vperm.slane %v300_v4, 0  ;;  %v1128_v29 = vld [vmem:[%s1395_s1] sm:$0xff]  ;;  %vm640_vm6 = vcmp.gt.f32.partialorder %v638_v6, 0.0 }
  0x1f   : > { %798 = vmatpush.bf16.msrb.mxu3 %v1163_v38  ;;  %v365_v17 = vperm.slane %v359_v8, 1  ;;  %v371_v18 = vpack.c.bf16 %v363_v9, %v363_v9  ;;  %v364_v19 = vperm.slane %v359_v8, 0  ;;  %v370_v20 = vpack.c.bf16 %v362_v12, %v362_v12  ;;  %v1051_v39 = vld [vmem:[%s1398_s4 + $0x4] ss:$2 sm:$0x3] }
  0x20   : > { %495 = vmatpush.bf16.msra.mxu0 %v1142_v41  ;;  %v307_v21 = vperm.slane %v301_v13, 1  ;;  %v313_v22 = vpack.c.bf16 %v305_v14, %v305_v14  ;;  %v306_v24 = vperm.slane %v301_v13, 0  ;;  %v312_v25 = vpack.c.bf16 %v304_v15, %v304_v15 }
  0x21   : > { %782 = vmatpush.bf16.msrb.mxu1 %v1158_v40  ;;  %v373_v27 = vpack.c.bf16 %v365_v17, %v365_v17  ;;  %v404_v28 = vunpack.c.l.b16 %v371_v18  ;;  %v372_v31 = vpack.c.bf16 %v364_v19, %v364_v19  ;;  %v403_v34 = vunpack.c.l.b16 %v370_v20 }
  0x22   : > { %611 = vmatpush.bf16.msra.mxu2 %v1130_v47  ;;  %v315_v32 = vpack.c.bf16 %v307_v21, %v307_v21  ;;  %v521_v33 = vunpack.c.l.b16 %v313_v22  ;;  %v314_v35 = vpack.c.bf16 %v306_v24, %v306_v24  ;;  %vm641_vm7 = vcmp.gt.f32.partialorder %v639_v16, 0.0  ;;  %v1154_v47 = vld [vmem:[%s1395_s1 + $0xd0] sm:$0xff] }
  0x23   : > { %799 = vmatpush.bf16.msrb.mxu3 %v1162_v49  ;;  %v406_v36 = vunpack.c.l.b16 %v373_v27  ;;  %v405_v37 = vunpack.c.l.b16 %v372_v31  ;;  %v642_v38 = vmul.f32 0.2, %v638_v6  ;;  %v520_v41 = vunpack.c.l.b16 %v312_v25 }
  0x24   : > { %496 = vmatpush.bf16.msra.mxu0 %v1141_v2  ;;  %v523_v40 = vunpack.c.l.b16 %v315_v32  ;;  %v522_v42 = vunpack.c.l.b16 %v314_v35  ;;  %v643_v43 = vmul.f32 0.2, %v639_v16 }
  0x25   : > { %783 = vmatpush.bf16.msrb.mxu1 %v1157_v48  ;;  %v409_v45 = vrot.slane %v406_v36, 7  ;;  %v407_v46 = vrot.slane %v405_v37, 7  ;;  %v644_v48 = vsel %vm640_vm6, %v638_v6, %v642_v38 }
  0x26   : > { %612 = vmatpush.bf16.msra.mxu2 %v1129_v7  ;;  %v526_v49 = vrot.slane %v523_v40, 7  ;;  %v524_v50 = vrot.slane %v522_v42, 7  ;;  %v645_v51 = vsel %vm641_vm7, %v639_v16, %v643_v43  ;;  %v650_v52 = vmul.f32 %v1051_v39, %v644_v48  ;;  %v1152_v7 = vld [vmem:[%s1395_s1 + $0xc0] sm:$0xff] }
  0x27   : > { %800 = vmatpush.bf16.msrb.mxu3 %v1161_v5  ;;  %v410_v53 = vsel %vm272_vm1, %v409_v45, %v404_v28  ;;  %v408_v54 = vsel %vm272_vm1, %v407_v46, %v403_v34  ;;  %v651_v55 = vmul.f32 %v1052_v44, %v645_v51 }
  0x28   : > { %497 = vmatpush.bf16.msra.mxu0 %v1140_v23  ;;  %v412_v56 = vpack.c.b16 %v410_v53, %v410_v53  ;;  %v527_v57 = vsel %vm272_vm1, %v526_v49, %v521_v33  ;;  %v411_v58 = vpack.c.b16 %v408_v54, %v408_v54  ;;  %v525_v59 = vsel %vm272_vm1, %v524_v50, %v520_v41 }
  0x29   : > { %784 = vmatpush.bf16.msrb.mxu1 %v1156_v11  ;;  %v529_v60 = vpack.c.b16 %v527_v57, %v527_v57  ;;  %v528_v61 = vpack.c.b16 %v525_v59, %v525_v59  ;;  %v655_v63 = vperm.slane %v650_v52, 1  ;;  %v657_v0 = vperm.slane %v651_v55, 1 }
  0x2a   : > { %613 = vmatpush.bf16.msra.mxu2 %v1128_v29  ;;  %999 = vmatmul.msk.bf16.vlgmr.msra.gmra.mxu1 %vm486_vm8, %v412_v56  ;;  %v654_v1 = vperm.slane %v650_v52, 0  ;;  %v656_v2 = vperm.slane %v651_v55, 0 }
  0x2b   : > { %801 = vmatpush.bf16.msrb.mxu3 %v1160_v26  ;;  %498 = vmatmul.bf16.vlgmr.msra.gmra.mxu0 %v411_v58  ;;  %v665_v3 = vpack.c.bf16 %v657_v0, %v657_v0  ;;  %v663_v4 = vpack.c.bf16 %v655_v63, %v655_v63 }
  0x2c   : > { %1048 = vmatmul.msk.bf16.vlgmr.msra.gmra.mxu3 %vm486_vm8, %v529_v60  ;;  %v662_v5 = vpack.c.bf16 %v654_v1, %v654_v1  ;;  %v664_v6 = vpack.c.bf16 %v656_v2, %v656_v2 }
  0x2d   : > { %785 = vmatpush.bf16.msrb.mxu1 %v1155_v30  ;;  %614 = vmatmul.bf16.vlgmr.msra.gmra.mxu2 %v528_v61  ;;  %v698_v8 = vunpack.c.l.b16 %v665_v3  ;;  %v696_v11 = vunpack.c.l.b16 %v663_v4 }
  0x2e   : > { %v697_v9 = vunpack.c.l.b16 %v664_v6  ;;  %v695_v10 = vunpack.c.l.b16 %v662_v5 }
  0x2f   : > { %v701_v12 = vrot.slane %v698_v8, 7 }
  0x30   : > { %v699_v13 = vrot.slane %v697_v9, 7 }
  0x31   : > { %786 = vmatpush.bf16.msrb.mxu1 %v1154_v47  ;;  %v702_v15 = vsel %vm272_vm1, %v701_v12, %v696_v11 }
  0x32   : > { %v700_v14 = vsel %vm272_vm1, %v699_v13, %v695_v10  ;;  %v704_v17 = vpack.c.b16 %v702_v15, %v702_v15 }
  0x33   : > { %v703_v16 = vpack.c.b16 %v700_v14, %v700_v14 }
  0x35   : > { %787 = vmatpush.bf16.msrb.mxu1 %v1153_v62 }
  0x39   : > { %788 = vmatpush.bf16.msrb.mxu1 %v1152_v7 }
  0x3c   : > { %789 = vmatmul.bf16.vlgmr.msrb.gmra.mxu1 %v703_v16  ;;  %1125 = vmatmul.msk.bf16.vlgmr.msrb.gmra.mxu3 %vm486_vm8, %v704_v17 }
  0xa7   : > { %v512_v18 = vpop.f32.mrf.mxu1 }
  0xa8   : > { %v499_v19 = vpop.f32.mrf.mxu0 }
  0xa9   : > { %v513_v27 = vadd.f32 %v512_v18, %v499_v19 }
  0xaf   : > { %v628_v20 = vpop.f32.mrf.mxu3  ;;  %v514_v22 = vpop.f32.mrf.mxu1 }
  0xb0   : > { %v615_v21 = vpop.f32.mrf.mxu2  ;;  %v501_v23 = vpop.f32.mrf.mxu0 }
  0xb1   : > { %v616_v28 = vadd.f32 %v615_v21, %v513_v27 }
  0xb3   : > { %v629_v30 = vadd.f32 %v628_v20, %v616_v28 }
  0xb7   : > { %v630_v24 = vpop.f32.mrf.mxu3 }
  0xb8   : > { %v617_v25 = vpop.f32.mrf.mxu2 }
  0xb9   : > { %v790_v26 = vpop.f32.mrf.mxu1 }
  0xbf   : > { %v803_v29 = vpop.f32.mrf.mxu3 }
  0xc0   : > { %v804_v31 = vadd.f32 %v803_v29, %v790_v26 }
  0xc1   : > { %v792_v32 = vpop.f32.mrf.mxu1 }
  0xc2   : > { %v807_v33 = vadd.f32 %v804_v31, %v629_v30 }
  0xc4   : > { %v809_v34 = vsel %vm808_vm9, %v807_v33, 0.0  ;;  %v817_v35 = vmul.f32 %v807_v33, %v807_v33  ;;  %826 = vst [vmem:[%s256_s30] sm:$0x3] %v807_v33 }
  0xc5   : > { %v810_v36 = vrot.slane %v809_v34, 4 }
  0xc6   : > { %v818_v37 = vsel %vm808_vm9, %v817_v35, 0.0 }
  0xc7   : > { %v811_v38 = vadd.f32 %v810_v36, %v809_v34  ;;  %v819_v39 = vrot.slane %v818_v37, 4  ;;  %v805_v40 = vpop.f32.mrf.mxu3 }
  0xc9   : > { %v812_v41 = vrot.slane %v811_v38, 2  ;;  %v820_v42 = vadd.f32 %v819_v39, %v818_v37 }
  0xcb   : > { %v813_v43 = vadd.f32 %v812_v41, %v811_v38  ;;  %v821_v44 = vrot.slane %v820_v42, 2 }
  0xcd   : > { %v814_v45 = vrot.slane %v813_v43, 1  ;;  %v822_v46 = vadd.f32 %v821_v44, %v820_v42 }
  0xcf   : > { %v815_v47 = vadd.f32 %v814_v45, %v813_v43  ;;  %v823_v48 = vrot.slane %v822_v46, 1 }
  0xd1   : > { %816 = vst [vmem:[%s260_s8] sm:$0x1] %v815_v47  ;;  %v824_v49 = vadd.f32 %v823_v48, %v822_v46 }
  0xd3   : > { %825 = vst [vmem:[%s260_s8 + $0x1] sm:$0x1] %v824_v49 }
  0xd4 PF: > { %s17_s21 = sadd.s32 1, %s1179_s21  }
  0xd5   : > { %p14_p4 = scmp.ge.s32.totalorder %s17_s21, 4  }
  0xd7   :  { %16 = sbr.rel (!%p14_p4) target bundleno = 1 (0x1), region = 94 }

</bundles_post_ra>
